<compile_context>
chip_gen: v7x
topology: tpu7x:2x2x1
jax: 0.10.0
libtpu: 0.0.40
codegen_flags: <defaults>
</compile_context>

<pallas_src>
import numpy as np
import jax
import jax.numpy as jnp
from jax.experimental import pallas as pl
from jax.experimental.pallas import tpu as pltpu


def _round_up(x, m):
    return ((x + m - 1) // m) * m


# ----------------------------------------------------------------------------
# Fused Pallas kernel: encoder bank + q head for one batch tile
# ----------------------------------------------------------------------------
def fused_qfunc_kernel(obs_ref, act_ref,
                       w1o_ref, w1a_ref, b1_ref, w2_ref, b2_ref,
                       qw1_ref, qb1_ref, qw2_ref, qb2_ref, qw3_ref, qb3_ref,
                       o_ref):
    n_players = qw1_ref.shape[0]
    tb = o_ref.shape[0]
    hq_width = qw1_ref.shape[2]

    w1o = w1o_ref[...]          # (obs_dim, H1p)
    w1a = w1a_ref[...]          # (action_dim, H1p)
    b1 = b1_ref[...]            # (1, H1p)
    w2 = w2_ref[...]            # (H1p, H2p)
    b2 = b2_ref[...]            # (1, H2p)

    # Accumulate q-head first-layer pre-activations per player (no lane concat).
    hq = jnp.zeros((tb, hq_width), jnp.float32)
    for p in range(n_players):                     # static unroll, n_players small
        xo = obs_ref[:, p, :]                      # (tb, obs_dim)
        xa = act_ref[:, p, :]                      # (tb, action_dim)
        h = (jnp.dot(xo, w1o, preferred_element_type=jnp.float32)
             + jnp.dot(xa, w1a, preferred_element_type=jnp.float32) + b1)
        h = jnp.maximum(h, 0.01 * h)               # LeakyReLU (all encoders at once)
        z = jnp.dot(h, w2, preferred_element_type=jnp.float32) + b2
        z = jnp.maximum(z, 0.01 * z)               # LeakyReLU
        hq = hq + jnp.dot(z, qw1_ref[p], preferred_element_type=jnp.float32)

    # q head: Linear->ReLU->Linear->ReLU->Linear (identity output act)
    h = jnp.maximum(hq + qb1_ref[...], 0.0)
    h = jnp.maximum(jnp.dot(h, qw2_ref[...], preferred_element_type=jnp.float32)
                    + qb2_ref[...], 0.0)
    o_ref[...] = (jnp.dot(h, qw3_ref[...], preferred_element_type=jnp.float32)
                  + qb3_ref[...])


def mlpq_forward(obs, act, packed):
    """obs: (B, P, obs_dim), act: (B, P, action_dim) -> (B, n_players)."""
    (w1o, w1a, b1, w2, b2, qw1, qb1, qw2, qb2, qw3, qb3) = packed
    B, P, obs_dim = obs.shape
    action_dim = act.shape[-1]
    n_players = qw1.shape[0]
    out_w = qw3.shape[1]                           # padded to 128 lanes

    # Batch tile: whole batch if small, otherwise 128-row tiles (parallel grid).
    tb = B if B <= 128 else 128
    Bp = _round_up(B, tb)
    if Bp != B:
        obs = jnp.pad(obs, ((0, Bp - B), (0, 0), (0, 0)))
        act = jnp.pad(act, ((0, Bp - B), (0, 0), (0, 0)))
    grid = (Bp // tb,)

    full2 = lambda a: pl.BlockSpec(a.shape, lambda i: (0, 0))
    full3 = lambda a: pl.BlockSpec(a.shape, lambda i: (0, 0, 0))

    out = pl.pallas_call(
        fused_qfunc_kernel,
        out_shape=jax.ShapeDtypeStruct((Bp, out_w), jnp.float32),
        grid=grid,
        in_specs=[
            pl.BlockSpec((tb, P, obs_dim), lambda i: (i, 0, 0)),
            pl.BlockSpec((tb, P, action_dim), lambda i: (i, 0, 0)),
            full2(w1o), full2(w1a), full2(b1), full2(w2), full2(b2),
            full3(qw1), full2(qb1), full2(qw2), full2(qb2), full2(qw3), full2(qb3),
        ],
        out_specs=pl.BlockSpec((tb, out_w), lambda i: (i, 0)),
        compiler_params=pltpu.CompilerParams(
            dimension_semantics=("parallel",)),
    )(obs, act, w1o, w1a, b1, w2, b2, qw1, qb1, qw2, qb2, qw3, qb3)

    return out[:B, :n_players]


# ----------------------------------------------------------------------------
# Parameter construction (mimics nn.Linear default init) + block assembly
# ----------------------------------------------------------------------------
def linear_init(key, fan_in, fan_out):
    kw, kb = jax.random.split(key)
    bound = 1.0 / np.sqrt(fan_in)
    w = jax.random.uniform(kw, (fan_in, fan_out), jnp.float32, -bound, bound)
    b = jax.random.uniform(kb, (fan_out,), jnp.float32, -bound, bound)
    return np.asarray(w), np.asarray(b)


def build_params(key, obs_dim, action_dim, hidden_sizes, teammates, rivals):
    n_players = teammates + 1
    prop_offset, teammate_offset, rival_offset = 2, 12, 9
    rival_start = 9 * rival_offset + 12 * n_players      # exactly as the module
    E = 9 + teammates + rivals
    H1, H2 = 32, 64
    assert obs_dim == E * H2, "module consistency: q input dim == encoded width"
    assert len(hidden_sizes) == 2, "kernel hardcodes two q hidden layers"

    # raw per-encoder params (kept for the pure-JAX reference)
    in_dims = [prop_offset + action_dim] * 9 + [12] * teammates + [9] * rivals
    enc_raw = []
    for din in in_dims:
        key, k1, k2 = jax.random.split(key, 3)
        w1, b1 = linear_init(k1, din, H1)
        w2, b2 = linear_init(k2, H1, H2)
        enc_raw.append((w1, b1, w2, b2))

    # raw q-head params
    sizes = [n_players * obs_dim] + list(hidden_sizes) + [n_players]
    q_raw = []
    for j in range(len(sizes) - 1):
        key, kq = jax.random.split(key)
        q_raw.append(linear_init(kq, sizes[j], sizes[j + 1]))

    # ---- assemble block-structured encoder weights (lane-padded) ----
    H1_tot, H2_tot = E * H1, E * H2
    H1p, H2p = _round_up(H1_tot, 128), _round_up(H2_tot, 128)

    w1o = np.zeros((obs_dim, H1p), np.float32)
    w1a = np.zeros((action_dim, H1p), np.float32)
    b1 = np.zeros((1, H1p), np.float32)
    w2 = np.zeros((H1p, H2p), np.float32)
    b2 = np.zeros((1, H2p), np.float32)

    for e, (ew1, eb1, ew2, eb2) in enumerate(enc_raw):
        c1 = slice(H1 * e, H1 * (e + 1))
        c2 = slice(H2 * e, H2 * (e + 1))
        if e < 9:                                          # prop encoders: [obs slice || act]
            w1o[prop_offset * e: prop_offset * (e + 1), c1] = ew1[:prop_offset]
            w1a[:, c1] = ew1[prop_offset:]
        elif e < 9 + teammates:                            # teammate encoders
            i = e - 9
            s = prop_offset * 9 + teammate_offset * i
            w1o[s: s + teammate_offset, c1] = ew1
        else:                                              # rival encoders
            i = e - 9 - teammates
            s = rival_start + rival_offset * i
            w1o[s: s + rival_offset, c1] = ew1
        b1[0, c1] = eb1
        w2[H1 * e: H1 * (e + 1), c2] = ew2                 # block diagonal
        b2[0, c2] = eb2

    # ---- q head, split per player and lane-padded to multiples of 128 ----
    (qw1_r, qb1_r), (qw2_r, qb2_r), (qw3_r, qb3_r) = q_raw
    Hq1, Hq2 = hidden_sizes
    Hq1p, Hq2p = _round_up(Hq1, 128), _round_up(Hq2, 128)
    n_out_p = _round_up(n_players, 128)

    qw1 = np.zeros((n_players, H2p, Hq1p), np.float32)
    for p in range(n_players):
        qw1[p, :H2_tot, :Hq1] = qw1_r[p * obs_dim:(p + 1) * obs_dim, :]
    qb1 = np.zeros((1, Hq1p), np.float32); qb1[0, :Hq1] = qb1_r
    qw2 = np.zeros((Hq1p, Hq2p), np.float32); qw2[:Hq1, :Hq2] = qw2_r
    qb2 = np.zeros((1, Hq2p), np.float32); qb2[0, :Hq2] = qb2_r
    qw3 = np.zeros((Hq2p, n_out_p), np.float32); qw3[:Hq2, :n_players] = qw3_r
    qb3 = np.zeros((1, n_out_p), np.float32); qb3[0, :n_players] = qb3_r

    packed = tuple(jnp.asarray(a) for a in
                   (w1o, w1a, b1, w2, b2, qw1, qb1, qw2, qb2, qw3, qb3))
    enc_raw = [tuple(jnp.asarray(a) for a in t) for t in enc_raw]
    q_raw = [tuple(jnp.asarray(a) for a in t) for t in q_raw]
    return enc_raw, q_raw, packed


# ----------------------------------------------------------------------------
# Pure-JAX reference (mirrors the PyTorch module) for verification
# ----------------------------------------------------------------------------
def reference_forward(obs, act, enc_raw, q_raw, teammates, rivals):
    B, P, obs_dim = obs.shape
    n_players = teammates + 1
    prop_offset, teammate_offset, rival_offset = 2, 12, 9
    rival_start = 9 * rival_offset + 12 * n_players
    leaky = lambda x: jnp.maximum(x, 0.01 * x)

    def enc(x, params):
        w1, b1, w2, b2 = params
        return leaky(leaky(x @ w1 + b1) @ w2 + b2)

    encoded = []
    for p in range(n_players):
        feats = []
        for e in range(9):
            x = jnp.concatenate(
                [obs[:, p, prop_offset * e: prop_offset * (e + 1)], act[:, p, :]], axis=1)
            feats.append(enc(x, enc_raw[e]))
        for i in range(teammates):
            s = prop_offset * 9 + teammate_offset * i
            feats.append(enc(obs[:, p, s: s + teammate_offset], enc_raw[9 + i]))
        for i in range(rivals):
            s = rival_start + rival_offset * i
            feats.append(enc(obs[:, p, s: s + rival_offset], enc_raw[9 + teammates + i]))
        encoded.append(jnp.concatenate(feats, axis=-1))
    z = jnp.concatenate(encoded, axis=-1)

    (w1, b1), (w2, b2), (w3, b3) = q_raw
    h = jnp.maximum(z @ w1 + b1, 0.0)
    h = jnp.maximum(h @ w2 + b2, 0.0)
    return h @ w3 + b3


# ----------------------------------------------------------------------------
if __name__ == "__main__":
    teammates, rivals = 1, 1
    n_players = teammates + 1
    action_dim = 6
    E = 9 + teammates + rivals
    obs_dim = E * 64          # required so q's input dim matches the encoded width
    hidden_sizes = (64, 64)
    B = 2

    key = jax.random.PRNGKey(0)
    kp, ko, ka = jax.random.split(key, 3)
    enc_raw, q_raw, packed = build_params(kp, obs_dim, action_dim,
                                          hidden_sizes, teammates, rivals)

    obs = jax.random.normal(ko, (B, n_players, obs_dim), jnp.float32)
    act = jax.random.normal(ka, (B, n_players, action_dim), jnp.float32)

    q = mlpq_forward(obs, act, packed)
    q = jax.block_until_ready(q)

    q_ref = reference_forward(obs, act, enc_raw, q_raw, teammates, rivals)
    np.testing.assert_allclose(np.asarray(q), np.asarray(q_ref), rtol=1e-3, atol=1e-3)

    assert q.shape == (B, n_players)
    print("KERNEL_OK")
</pallas_src>

<mosaic_0001>
module attributes {stable_mosaic.version = 11 : i64} {
  func.func @fused_qfunc_kernel(%arg0: i32, %arg1: memref<2x2x704xf32, #tpu.memory_space<vmem>>, %arg2: memref<2x2x6xf32, #tpu.memory_space<vmem>>, %arg3: memref<704x384xf32, #tpu.memory_space<vmem>>, %arg4: memref<6x384xf32, #tpu.memory_space<vmem>>, %arg5: memref<1x384xf32, #tpu.memory_space<vmem>>, %arg6: memref<384x768xf32, #tpu.memory_space<vmem>>, %arg7: memref<1x768xf32, #tpu.memory_space<vmem>>, %arg8: memref<2x768x128xf32, #tpu.memory_space<vmem>>, %arg9: memref<1x128xf32, #tpu.memory_space<vmem>>, %arg10: memref<128x128xf32, #tpu.memory_space<vmem>>, %arg11: memref<1x128xf32, #tpu.memory_space<vmem>>, %arg12: memref<128x128xf32, #tpu.memory_space<vmem>>, %arg13: memref<1x128xf32, #tpu.memory_space<vmem>>, %arg14: memref<2x128xf32, #tpu.memory_space<vmem>>) attributes {dimension_semantics = [#tpu.dimension_semantics<parallel>], iteration_bounds = array<i64: 1>, scalar_prefetch = 0 : i64, scratch_operands = 0 : i64, tpu.core_type = #tpu.core_type<tc>, window_params = [{transform_indices = @transform_0, window_bounds = array<i64: 2, 2, 704>}, {transform_indices = @transform_1, window_bounds = array<i64: 2, 2, 6>}, {pipeline_mode = #tpu.pipeline_mode<synchronous>, transform_indices = @transform_2, window_bounds = array<i64: 704, 384>}, {pipeline_mode = #tpu.pipeline_mode<synchronous>, transform_indices = @transform_3, window_bounds = array<i64: 6, 384>}, {pipeline_mode = #tpu.pipeline_mode<synchronous>, transform_indices = @transform_4, window_bounds = array<i64: 1, 384>}, {pipeline_mode = #tpu.pipeline_mode<synchronous>, transform_indices = @transform_5, window_bounds = array<i64: 384, 768>}, {pipeline_mode = #tpu.pipeline_mode<synchronous>, transform_indices = @transform_6, window_bounds = array<i64: 1, 768>}, {pipeline_mode = #tpu.pipeline_mode<synchronous>, transform_indices = @transform_7, window_bounds = array<i64: 2, 768, 128>}, {pipeline_mode = #tpu.pipeline_mode<synchronous>, transform_indices = @transform_8, window_bounds = array<i64: 1, 128>}, {pipeline_mode = #tpu.pipeline_mode<synchronous>, transform_indices = @transform_9, window_bounds = array<i64: 128, 128>}, {pipeline_mode = #tpu.pipeline_mode<synchronous>, transform_indices = @transform_10, window_bounds = array<i64: 1, 128>}, {pipeline_mode = #tpu.pipeline_mode<synchronous>, transform_indices = @transform_11, window_bounds = array<i64: 128, 128>}, {pipeline_mode = #tpu.pipeline_mode<synchronous>, transform_indices = @transform_12, window_bounds = array<i64: 1, 128>}, {transform_indices = @transform_13, window_bounds = array<i64: 2, 128>}]} {
    %c0 = arith.constant 0 : index
    %c0_0 = arith.constant 0 : index
    %0 = vector.load %arg3[%c0, %c0_0] : memref<704x384xf32, #tpu.memory_space<vmem>>, vector<704x384xf32>
    %c0_1 = arith.constant 0 : index
    %c0_2 = arith.constant 0 : index
    %1 = vector.load %arg4[%c0_1, %c0_2] : memref<6x384xf32, #tpu.memory_space<vmem>>, vector<6x384xf32>
    %c0_3 = arith.constant 0 : index
    %c0_4 = arith.constant 0 : index
    %2 = vector.load %arg5[%c0_3, %c0_4] : memref<1x384xf32, #tpu.memory_space<vmem>>, vector<1x384xf32>
    %c0_5 = arith.constant 0 : index
    %c0_6 = arith.constant 0 : index
    %3 = vector.load %arg6[%c0_5, %c0_6] : memref<384x768xf32, #tpu.memory_space<vmem>>, vector<384x768xf32>
    %c0_7 = arith.constant 0 : index
    %c0_8 = arith.constant 0 : index
    %4 = vector.load %arg7[%c0_7, %c0_8] : memref<1x768xf32, #tpu.memory_space<vmem>>, vector<1x768xf32>
    %cst = arith.constant 0.000000e+00 : f32
    %5 = vector.broadcast %cst : f32 to vector<2x128xf32>
    %c0_9 = arith.constant 0 : index
    %c0_10 = arith.constant 0 : index
    %c0_11 = arith.constant 0 : index
    %6 = vector.load %arg1[%c0_9, %c0_10, %c0_11] : memref<2x2x704xf32, #tpu.memory_space<vmem>>, vector<2x1x704xf32>
    %7 = vector.shape_cast %6 : vector<2x1x704xf32> to vector<2x704xf32>
    %c0_12 = arith.constant 0 : index
    %c0_13 = arith.constant 0 : index
    %c0_14 = arith.constant 0 : index
    %8 = vector.load %arg2[%c0_12, %c0_13, %c0_14] : memref<2x2x6xf32, #tpu.memory_space<vmem>>, vector<2x1x6xf32>
    %9 = vector.shape_cast %8 : vector<2x1x6xf32> to vector<2x6xf32>
    %cst_15 = arith.constant dense<0.000000e+00> : vector<2x384xf32>
    %10 = tpu.matmul %7, %0, %cst_15 {dimension_numbers = #tpu.dot_dimension_numbers<[1], [0], [0], [1], [0, 0, 1, 1], [], []>} : vector<2x704xf32>, vector<704x384xf32>, vector<2x384xf32> -> vector<2x384xf32>
    %cst_16 = arith.constant dense<0.000000e+00> : vector<2x384xf32>
    %11 = tpu.matmul %9, %1, %cst_16 {dimension_numbers = #tpu.dot_dimension_numbers<[1], [0], [0], [1], [0, 0, 1, 1], [], []>} : vector<2x6xf32>, vector<6x384xf32>, vector<2x384xf32> -> vector<2x384xf32>
    %12 = arith.addf %10, %11 : vector<2x384xf32>
    %13 = vector.broadcast %2 : vector<1x384xf32> to vector<2x384xf32>
    %14 = arith.addf %12, %13 : vector<2x384xf32>
    %cst_17 = arith.constant 0.00999999977 : f32
    %15 = vector.broadcast %cst_17 : f32 to vector<2x384xf32>
    %16 = arith.mulf %15, %14 : vector<2x384xf32>
    %17 = arith.maximumf %14, %16 : vector<2x384xf32>
    %cst_18 = arith.constant dense<0.000000e+00> : vector<2x768xf32>
    %18 = tpu.matmul %17, %3, %cst_18 {dimension_numbers = #tpu.dot_dimension_numbers<[1], [0], [0], [1], [0, 0, 1, 1], [], []>} : vector<2x384xf32>, vector<384x768xf32>, vector<2x768xf32> -> vector<2x768xf32>
    %19 = vector.broadcast %4 : vector<1x768xf32> to vector<2x768xf32>
    %20 = arith.addf %18, %19 : vector<2x768xf32>
    %cst_19 = arith.constant 0.00999999977 : f32
    %21 = vector.broadcast %cst_19 : f32 to vector<2x768xf32>
    %22 = arith.mulf %21, %20 : vector<2x768xf32>
    %23 = arith.maximumf %20, %22 : vector<2x768xf32>
    %c0_20 = arith.constant 0 : index
    %c0_21 = arith.constant 0 : index
    %c0_22 = arith.constant 0 : index
    %24 = vector.load %arg8[%c0_20, %c0_21, %c0_22] : memref<2x768x128xf32, #tpu.memory_space<vmem>>, vector<1x768x128xf32>
    %25 = vector.shape_cast %24 : vector<1x768x128xf32> to vector<768x128xf32>
    %cst_23 = arith.constant dense<0.000000e+00> : vector<2x128xf32>
    %26 = tpu.matmul %23, %25, %cst_23 {dimension_numbers = #tpu.dot_dimension_numbers<[1], [0], [0], [1], [0, 0, 1, 1], [], []>} : vector<2x768xf32>, vector<768x128xf32>, vector<2x128xf32> -> vector<2x128xf32>
    %27 = arith.addf %5, %26 : vector<2x128xf32>
    %c0_24 = arith.constant 0 : index
    %c1 = arith.constant 1 : index
    %c0_25 = arith.constant 0 : index
    %28 = vector.load %arg1[%c0_24, %c1, %c0_25] : memref<2x2x704xf32, #tpu.memory_space<vmem>>, vector<2x1x704xf32>
    %29 = vector.shape_cast %28 : vector<2x1x704xf32> to vector<2x704xf32>
    %c0_26 = arith.constant 0 : index
    %c1_27 = arith.constant 1 : index
    %c0_28 = arith.constant 0 : index
    %30 = vector.load %arg2[%c0_26, %c1_27, %c0_28] : memref<2x2x6xf32, #tpu.memory_space<vmem>>, vector<2x1x6xf32>
    %31 = vector.shape_cast %30 : vector<2x1x6xf32> to vector<2x6xf32>
    %cst_29 = arith.constant dense<0.000000e+00> : vector<2x384xf32>
    %32 = tpu.matmul %29, %0, %cst_29 {dimension_numbers = #tpu.dot_dimension_numbers<[1], [0], [0], [1], [0, 0, 1, 1], [], []>} : vector<2x704xf32>, vector<704x384xf32>, vector<2x384xf32> -> vector<2x384xf32>
    %cst_30 = arith.constant dense<0.000000e+00> : vector<2x384xf32>
    %33 = tpu.matmul %31, %1, %cst_30 {dimension_numbers = #tpu.dot_dimension_numbers<[1], [0], [0], [1], [0, 0, 1, 1], [], []>} : vector<2x6xf32>, vector<6x384xf32>, vector<2x384xf32> -> vector<2x384xf32>
    %34 = arith.addf %32, %33 : vector<2x384xf32>
    %35 = vector.broadcast %2 : vector<1x384xf32> to vector<2x384xf32>
    %36 = arith.addf %34, %35 : vector<2x384xf32>
    %cst_31 = arith.constant 0.00999999977 : f32
    %37 = vector.broadcast %cst_31 : f32 to vector<2x384xf32>
    %38 = arith.mulf %37, %36 : vector<2x384xf32>
    %39 = arith.maximumf %36, %38 : vector<2x384xf32>
    %cst_32 = arith.constant dense<0.000000e+00> : vector<2x768xf32>
    %40 = tpu.matmul %39, %3, %cst_32 {dimension_numbers = #tpu.dot_dimension_numbers<[1], [0], [0], [1], [0, 0, 1, 1], [], []>} : vector<2x384xf32>, vector<384x768xf32>, vector<2x768xf32> -> vector<2x768xf32>
    %41 = vector.broadcast %4 : vector<1x768xf32> to vector<2x768xf32>
    %42 = arith.addf %40, %41 : vector<2x768xf32>
    %cst_33 = arith.constant 0.00999999977 : f32
    %43 = vector.broadcast %cst_33 : f32 to vector<2x768xf32>
    %44 = arith.mulf %43, %42 : vector<2x768xf32>
    %45 = arith.maximumf %42, %44 : vector<2x768xf32>
    %c1_34 = arith.constant 1 : index
    %c0_35 = arith.constant 0 : index
    %c0_36 = arith.constant 0 : index
    %46 = vector.load %arg8[%c1_34, %c0_35, %c0_36] : memref<2x768x128xf32, #tpu.memory_space<vmem>>, vector<1x768x128xf32>
    %47 = vector.shape_cast %46 : vector<1x768x128xf32> to vector<768x128xf32>
    %cst_37 = arith.constant dense<0.000000e+00> : vector<2x128xf32>
    %48 = tpu.matmul %45, %47, %cst_37 {dimension_numbers = #tpu.dot_dimension_numbers<[1], [0], [0], [1], [0, 0, 1, 1], [], []>} : vector<2x768xf32>, vector<768x128xf32>, vector<2x128xf32> -> vector<2x128xf32>
    %49 = arith.addf %27, %48 : vector<2x128xf32>
    %c0_38 = arith.constant 0 : index
    %c0_39 = arith.constant 0 : index
    %50 = vector.load %arg9[%c0_38, %c0_39] : memref<1x128xf32, #tpu.memory_space<vmem>>, vector<1x128xf32>
    %51 = vector.broadcast %50 : vector<1x128xf32> to vector<2x128xf32>
    %52 = arith.addf %49, %51 : vector<2x128xf32>
    %cst_40 = arith.constant 0.000000e+00 : f32
    %53 = vector.broadcast %cst_40 : f32 to vector<2x128xf32>
    %54 = arith.maximumf %52, %53 : vector<2x128xf32>
    %c0_41 = arith.constant 0 : index
    %c0_42 = arith.constant 0 : index
    %55 = vector.load %arg10[%c0_41, %c0_42] : memref<128x128xf32, #tpu.memory_space<vmem>>, vector<128x128xf32>
    %cst_43 = arith.constant dense<0.000000e+00> : vector<2x128xf32>
    %56 = tpu.matmul %54, %55, %cst_43 {dimension_numbers = #tpu.dot_dimension_numbers<[1], [0], [0], [1], [0, 0, 1, 1], [], []>} : vector<2x128xf32>, vector<128x128xf32>, vector<2x128xf32> -> vector<2x128xf32>
    %c0_44 = arith.constant 0 : index
    %c0_45 = arith.constant 0 : index
    %57 = vector.load %arg11[%c0_44, %c0_45] : memref<1x128xf32, #tpu.memory_space<vmem>>, vector<1x128xf32>
    %58 = vector.broadcast %57 : vector<1x128xf32> to vector<2x128xf32>
    %59 = arith.addf %56, %58 : vector<2x128xf32>
    %cst_46 = arith.constant 0.000000e+00 : f32
    %60 = vector.broadcast %cst_46 : f32 to vector<2x128xf32>
    %61 = arith.maximumf %59, %60 : vector<2x128xf32>
    %c0_47 = arith.constant 0 : index
    %c0_48 = arith.constant 0 : index
    %62 = vector.load %arg12[%c0_47, %c0_48] : memref<128x128xf32, #tpu.memory_space<vmem>>, vector<128x128xf32>
    %cst_49 = arith.constant dense<0.000000e+00> : vector<2x128xf32>
    %63 = tpu.matmul %61, %62, %cst_49 {dimension_numbers = #tpu.dot_dimension_numbers<[1], [0], [0], [1], [0, 0, 1, 1], [], []>} : vector<2x128xf32>, vector<128x128xf32>, vector<2x128xf32> -> vector<2x128xf32>
    %c0_50 = arith.constant 0 : index
    %c0_51 = arith.constant 0 : index
    %64 = vector.load %arg13[%c0_50, %c0_51] : memref<1x128xf32, #tpu.memory_space<vmem>>, vector<1x128xf32>
    %65 = vector.broadcast %64 : vector<1x128xf32> to vector<2x128xf32>
    %66 = arith.addf %63, %65 : vector<2x128xf32>
    %c0_52 = arith.constant 0 : index
    %c0_53 = arith.constant 0 : index
    %67 = vector.load %arg14[%c0_52, %c0_53] : memref<2x128xf32, #tpu.memory_space<vmem>>, vector<2x128xf32>
    tpu.vector_store %arg14[%c0_52, %c0_53], %66 {strides = array<i32>} : memref<2x128xf32, #tpu.memory_space<vmem>>, vector<2x128xf32>,
    return
  }
  func.func @transform_0(%arg0: i32) -> (i32, i32, i32) {
    %c0_i32 = arith.constant 0 : i32
    %c0_i32_0 = arith.constant 0 : i32
    %c0_i32_1 = arith.constant 0 : i32
    return %arg0, %c0_i32, %c0_i32_0 : i32, i32, i32
  }
  func.func @transform_1(%arg0: i32) -> (i32, i32, i32) {
    %c0_i32 = arith.constant 0 : i32
    %c0_i32_0 = arith.constant 0 : i32
    %c0_i32_1 = arith.constant 0 : i32
    return %arg0, %c0_i32, %c0_i32_0 : i32, i32, i32
  }
  func.func @transform_2(%arg0: i32) -> (i32, i32) {
    %c0_i32 = arith.constant 0 : i32
    %c0_i32_0 = arith.constant 0 : i32
    %c0_i32_1 = arith.constant 0 : i32
    return %c0_i32, %c0_i32_0 : i32, i32
  }
  func.func @transform_3(%arg0: i32) -> (i32, i32) {
    %c0_i32 = arith.constant 0 : i32
    %c0_i32_0 = arith.constant 0 : i32
    %c0_i32_1 = arith.constant 0 : i32
    return %c0_i32, %c0_i32_0 : i32, i32
  }
  func.func @transform_4(%arg0: i32) -> (i32, i32) {
    %c0_i32 = arith.constant 0 : i32
    %c0_i32_0 = arith.constant 0 : i32
    %c0_i32_1 = arith.constant 0 : i32
    return %c0_i32, %c0_i32_0 : i32, i32
  }
  func.func @transform_5(%arg0: i32) -> (i32, i32) {
    %c0_i32 = arith.constant 0 : i32
    %c0_i32_0 = arith.constant 0 : i32
    %c0_i32_1 = arith.constant 0 : i32
    return %c0_i32, %c0_i32_0 : i32, i32
  }
  func.func @transform_6(%arg0: i32) -> (i32, i32) {
    %c0_i32 = arith.constant 0 : i32
    %c0_i32_0 = arith.constant 0 : i32
    %c0_i32_1 = arith.constant 0 : i32
    return %c0_i32, %c0_i32_0 : i32, i32
  }
  func.func @transform_7(%arg0: i32) -> (i32, i32, i32) {
    %c0_i32 = arith.constant 0 : i32
    %c0_i32_0 = arith.constant 0 : i32
    %c0_i32_1 = arith.constant 0 : i32
    %c0_i32_2 = arith.constant 0 : i32
    return %c0_i32, %c0_i32_0, %c0_i32_1 : i32, i32, i32
  }
  func.func @transform_8(%arg0: i32) -> (i32, i32) {
    %c0_i32 = arith.constant 0 : i32
    %c0_i32_0 = arith.constant 0 : i32
    %c0_i32_1 = arith.constant 0 : i32
    return %c0_i32, %c0_i32_0 : i32, i32
  }
  func.func @transform_9(%arg0: i32) -> (i32, i32) {
    %c0_i32 = arith.constant 0 : i32
    %c0_i32_0 = arith.constant 0 : i32
    %c0_i32_1 = arith.constant 0 : i32
    return %c0_i32, %c0_i32_0 : i32, i32
  }
  func.func @transform_10(%arg0: i32) -> (i32, i32) {
    %c0_i32 = arith.constant 0 : i32
    %c0_i32_0 = arith.constant 0 : i32
    %c0_i32_1 = arith.constant 0 : i32
    return %c0_i32, %c0_i32_0 : i32, i32
  }
  func.func @transform_11(%arg0: i32) -> (i32, i32) {
    %c0_i32 = arith.constant 0 : i32
    %c0_i32_0 = arith.constant 0 : i32
    %c0_i32_1 = arith.constant 0 : i32
    return %c0_i32, %c0_i32_0 : i32, i32
  }
  func.func @transform_12(%arg0: i32) -> (i32, i32) {
    %c0_i32 = arith.constant 0 : i32
    %c0_i32_0 = arith.constant 0 : i32
    %c0_i32_1 = arith.constant 0 : i32
    return %c0_i32, %c0_i32_0 : i32, i32
  }
  func.func @transform_13(%arg0: i32) -> (i32, i32) {
    %c0_i32 = arith.constant 0 : i32
    %c0_i32_0 = arith.constant 0 : i32
    return %arg0, %c0_i32 : i32, i32
  }
}

</mosaic_0001>

<bundles_post_ra>
// kernel: tpu_custom_call.1
= control target key start
LH: loop header
LB: loop body
LE: loop exit
PB: predicated region body
PF: predicated region fallthrough
CT: control target
= control target key end

     0   :  { %18 = vsyncpa [#allocation3], 0  ;;  %s7727_s0 = inlined_call_operand.hbm [shape: f32[2,2,704], index: 0, kind: input, shape index: {}]   ;;  %s7728_s1 = inlined_call_operand.hbm [shape: f32[2,2,6], index: 1, kind: input, shape index: {}]   ;;  %s7729_s2 = inlined_call_operand.hbm [shape: f32[704,384], index: 2, kind: input, shape index: {}]   ;;  %s7730_s3 = inlined_call_operand.hbm [shape: f32[6,384], index: 3, kind: input, shape index: {}]   ;;  %s7731_s4 = inlined_call_operand.hbm [shape: f32[1,384], index: 4, kind: input, shape index: {}]   ;;  %s7732_s5 = inlined_call_operand.hbm [shape: f32[384,768], index: 5, kind: input, shape index: {}]   ;;  %s7733_s6 = inlined_call_operand.hbm [shape: f32[1,768], index: 6, kind: input, shape index: {}]   ;;  %s7734_s7 = inlined_call_operand.hbm [shape: f32[2,768,128], index: 7, kind: input, shape index: {}]   ;;  %s7735_s8 = inlined_call_operand.hbm [shape: f32[1,128], index: 8, kind: input, shape index: {}]   ;;  %s7736_s9 = inlined_call_operand.hbm [shape: f32[128,128], index: 9, kind: input, shape index: {}]   ;;  %s7737_s10 = inlined_call_operand.hbm [shape: f32[1,128], index: 10, kind: input, shape index: {}]   ;;  %s7738_s11 = inlined_call_operand.hbm [shape: f32[128,128], index: 11, kind: input, shape index: {}]   ;;  %s7739_s12 = inlined_call_operand.hbm [shape: f32[1,128], index: 12, kind: input, shape index: {}]   ;;  %s7740_s13 = inlined_call_operand.hbm [shape: f32[2,128], index: 13, kind: output, shape index: {}]  }
   0x1   :  { %19 = vsyncpa [#allocation6], 0 }
   0x2   :  { %20 = vsyncpa [#allocation9], 0 }
   0x3   :  { %21 = vsyncpa [#allocation12], 0 }
   0x4   :  { %22 = vsyncpa [#allocation15], 0 }
   0x5   :  { %23 = vsyncpa [#allocation18], 0 }
   0x6   :  { %24 = vsyncpa [#allocation21], 0 }
   0x7   :  { %25 = vsyncpa [#allocation4], 0  ;;  %s6061_s25 = smov [#allocation5]   ;;  %s5737_s29 = scalar_lea.hbm %s7728_s1, 64 }
   0x8   :  { %s43_s26 = sshll.u32 %s6061_s25, 4  ;;  %p5738_p0 = scmp.ne.s32.totalorder %s7728_s1, %s5737_s29  ;;  %s44_s26 = int_to_ptr.vmem [resolvable:$true] %s43_s26 }
   0x9   :  { %p5741_p1 = scmp.lt.u32.totalorder %s5737_s29, %s7728_s1 }
   0xb   :  { %p5743_p2 = pnand %p5741_p1, %p5738_p0 }
   0xd   :  { %5746 = shalt.err (!%p5743_p2)
}
   0xe   :  { %s5747_s17 = scalar_lea.vmem %s44_s26, 64  ;;  %p5752_p4 = scmp.lt.s32.totalorder %s44_s26, %s44_s26 }
   0xf   :  { %p5748_p3 = scmp.ne.s32.totalorder %s44_s26, %s5747_s17  ;;  %p5753_p5 = scmp.lt.s32.totalorder %s5747_s17, %s5747_s17 }
  0x11   :  { %p5754_p6 = por %p5753_p5, %p5752_p4 }
  0x13   :  { %p5755_p7 = pnand %p5754_p6, %p5748_p3 }
  0x15   :  { %5758 = shalt.err (!%p5755_p7)
}
  0x16   :  { %s6062_s18 = smov 32   ;;  %s6063_s19 = smov 2  }
  0x17   :  { %49 = dma.hbm_to_vmem [thread:$0]  %s7728_s1, 64, %s44_s26, [#allocation6], %s6062_s18, %s6062_s18, %s6063_s19  }
  0x18   :  { %s6064_s22 = smov [#allocation8]   ;;  %s6065_s24 = smov [#allocation11]  }
  0x19   :  { %s68_s23 = sshll.u32 %s6064_s22, 4  ;;  %s87_s25 = sshll.u32 %s6065_s24, 4  ;;  %s69_s23 = int_to_ptr.vmem [resolvable:$true] %s68_s23  ;;  %s88_s25 = int_to_ptr.vmem [resolvable:$true] %s87_s25 }
  0x1a   :  { %s5759_s29 = scalar_lea.hbm %s7730_s3, 384 }
  0x1b   :  { %p5760_p8 = scmp.ne.s32.totalorder %s7730_s3, %s5759_s29  ;;  %p5763_p9 = scmp.lt.u32.totalorder %s5759_s29, %s7730_s3 }
  0x1d   :  { %p5765_p10 = pnand %p5763_p9, %p5760_p8 }
  0x1f   :  { %5768 = shalt.err (!%p5765_p10)
}
  0x20   :  { %s5769_s1 = scalar_lea.vmem %s69_s23, 384  ;;  %p5774_p12 = scmp.lt.s32.totalorder %s69_s23, %s69_s23 }
  0x21   :  { %p5770_p11 = scmp.ne.s32.totalorder %s69_s23, %s5769_s1  ;;  %p5775_p13 = scmp.lt.s32.totalorder %s5769_s1, %s5769_s1 }
  0x23   :  { %p5776_p0 = por %p5775_p13, %p5774_p12 }
  0x25   :  { %p5777_p1 = pnand %p5776_p0, %p5770_p11 }
  0x27   :  { %5780 = shalt.err (!%p5777_p1)
}
  0x28   :  { %71 = dma.hbm_to_vmem [thread:$0]  %s7730_s3, 384, %s69_s23, [#allocation9]  }
  0x29   :  { %s5781_s20 = scalar_lea.hbm %s7732_s5, 36864 }
  0x2a   :  { %p5782_p2 = scmp.ne.s32.totalorder %s7732_s5, %s5781_s20  ;;  %p5785_p3 = scmp.lt.u32.totalorder %s5781_s20, %s7732_s5 }
  0x2c   :  { %p5787_p4 = pnand %p5785_p3, %p5782_p2 }
  0x2e   :  { %5790 = shalt.err (!%p5787_p4)
}
  0x2f   :  { %s5791_s28 = scalar_lea.vmem %s88_s25, 36864  ;;  %p5796_p6 = scmp.lt.s32.totalorder %s88_s25, %s88_s25 }
  0x30   :  { %p5792_p5 = scmp.ne.s32.totalorder %s88_s25, %s5791_s28  ;;  %p5797_p7 = scmp.lt.s32.totalorder %s5791_s28, %s5791_s28 }
  0x32   :  { %p5798_p8 = por %p5797_p7, %p5796_p6 }
  0x34   :  { %p5799_p9 = pnand %p5798_p8, %p5792_p5 }
  0x36   :  { %5802 = shalt.err (!%p5799_p9)
}
  0x37   :  { %s6066_s3 = smov 768   ;;  %s6067_s23 = smov 48  }
  0x38   :  { %93 = dma.hbm_to_vmem [thread:$0]  %s7732_s5, 36864, %s88_s25, [#allocation12], %s6066_s3, %s6066_s3, %s6067_s23  }
  0x39   :  { %s6068_s14 = smov [#allocation14]   ;;  %s5803_s26 = scalar_lea.hbm %s7734_s7, 24576 }
  0x3a   :  { %s109_s15 = sshll.u32 %s6068_s14, 4  ;;  %p5804_p10 = scmp.ne.s32.totalorder %s7734_s7, %s5803_s26  ;;  %s110_s15 = int_to_ptr.vmem [resolvable:$true] %s109_s15 }
  0x3b   :  { %p5807_p11 = scmp.lt.u32.totalorder %s5803_s26, %s7734_s7 }
  0x3d   :  { %p5809_p12 = pnand %p5807_p11, %p5804_p10 }
  0x3f   :  { %5812 = shalt.err (!%p5809_p12)
}
  0x40   :  { %s5813_s21 = scalar_lea.vmem %s110_s15, 24576  ;;  %p5818_p0 = scmp.lt.s32.totalorder %s110_s15, %s110_s15 }
  0x41   :  { %p5814_p13 = scmp.ne.s32.totalorder %s110_s15, %s5813_s21  ;;  %p5819_p1 = scmp.lt.s32.totalorder %s5813_s21, %s5813_s21 }
  0x43   :  { %p5820_p2 = por %p5819_p1, %p5818_p0 }
  0x45   :  { %p5821_p3 = pnand %p5820_p2, %p5814_p13 }
  0x47   :  { %5824 = shalt.err (!%p5821_p3)
}
  0x48   :  { %s6069_s5 = smov 128   ;;  %s6070_s25 = smov 8  }
  0x49   :  { %115 = dma.hbm_to_vmem [thread:$0]  %s7734_s7, 24576, %s110_s15, [#allocation15], %s6069_s5, %s6069_s5, %s6070_s25  }
  0x4a   :  { %s6071_s27 = smov [#allocation17]   ;;  %s6072_s3 = smov [#allocation20]  }
  0x4b   :  { %s131_s28 = sshll.u32 %s6071_s27, 4  ;;  %s153_s23 = sshll.u32 %s6072_s3, 4  ;;  %s132_s28 = int_to_ptr.vmem [resolvable:$true] %s131_s28  ;;  %s6210_s23 = int_to_ptr.vmem [resolvable:$true] %s153_s23 }
  0x4c   :  { %s5825_s14 = scalar_lea.hbm %s7736_s9, 2048 }
  0x4d   :  { %p5826_p4 = scmp.ne.s32.totalorder %s7736_s9, %s5825_s14  ;;  %p5829_p5 = scmp.lt.u32.totalorder %s5825_s14, %s7736_s9 }
  0x4f   :  { %p5831_p6 = pnand %p5829_p5, %p5826_p4 }
  0x51   :  { %5834 = shalt.err (!%p5831_p6)
}
  0x52   :  { %s5835_s7 = scalar_lea.vmem %s132_s28, 2048  ;;  %p5840_p8 = scmp.lt.s32.totalorder %s132_s28, %s132_s28 }
  0x53   :  { %p5836_p7 = scmp.ne.s32.totalorder %s132_s28, %s5835_s7  ;;  %p5841_p9 = scmp.lt.s32.totalorder %s5835_s7, %s5835_s7 }
  0x55   :  { %p5842_p10 = por %p5841_p9, %p5840_p8 }
  0x57   :  { %p5843_p11 = pnand %p5842_p10, %p5836_p7 }
  0x59   :  { %5846 = shalt.err (!%p5843_p11)
}
  0x5a   :  { %137 = dma.hbm_to_vmem [thread:$0]  %s7736_s9, 2048, %s132_s28, [#allocation18], %s6069_s5, %s6069_s5, %s6070_s25  }
  0x5b   :  { %s5847_s21 = scalar_lea.hbm %s7738_s11, 2048 }
  0x5c   :  { %p5848_p12 = scmp.ne.s32.totalorder %s7738_s11, %s5847_s21  ;;  %p5851_p13 = scmp.lt.u32.totalorder %s5847_s21, %s7738_s11 }
  0x5e   :  { %p5853_p0 = pnand %p5851_p13, %p5848_p12 }
  0x60   :  { %5856 = shalt.err (!%p5853_p0)
}
  0x61   :  { %s5857_s29 = scalar_lea.vmem %s6210_s23, 2048  ;;  %p5862_p2 = scmp.lt.s32.totalorder %s6210_s23, %s6210_s23 }
  0x62   :  { %p5858_p1 = scmp.ne.s32.totalorder %s6210_s23, %s5857_s29  ;;  %p5863_p3 = scmp.lt.s32.totalorder %s5857_s29, %s5857_s29 }
  0x64   :  { %p5864_p4 = por %p5863_p3, %p5862_p2 }
  0x66   :  { %p5865_p5 = pnand %p5864_p4, %p5858_p1 }
  0x68   :  { %5868 = shalt.err (!%p5865_p5)
}
  0x69   :  { %159 = dma.hbm_to_vmem [thread:$0]  %s7738_s11, 2048, %s6210_s23, [#allocation21], %s6069_s5, %s6069_s5, %s6070_s25  }
  0x6a   :  { %s6073_s30 = smov [#allocation2]   ;;  %s5869_s26 = scalar_lea.hbm %s7727_s0, 384 }
  0x6b   :  { %s31_s14 = sshll.u32 %s6073_s30, 4  ;;  %p5870_p6 = scmp.ne.s32.totalorder %s7727_s0, %s5869_s26  ;;  %s32_s14 = int_to_ptr.vmem [resolvable:$true] %s31_s14 }
  0x6c   :  { %p5873_p7 = scmp.lt.u32.totalorder %s5869_s26, %s7727_s0 }
  0x6e   :  { %p5875_p8 = pnand %p5873_p7, %p5870_p6 }
  0x70   :  { %5878 = shalt.err (!%p5875_p8)
}
  0x71   :  { %s5879_s19 = scalar_lea.vmem %s32_s14, 384  ;;  %p5884_p10 = scmp.lt.s32.totalorder %s32_s14, %s32_s14 }
  0x72   :  { %p5880_p9 = scmp.ne.s32.totalorder %s32_s14, %s5879_s19  ;;  %p5885_p11 = scmp.lt.s32.totalorder %s5879_s19, %s5879_s19 }
  0x74   :  { %p5886_p12 = por %p5885_p11, %p5884_p10 }
  0x76   :  { %p5887_p13 = pnand %p5886_p12, %p5880_p9 }
  0x78   :  { %5890 = shalt.err (!%p5887_p13)
}
  0x79   :  { %s6074_s11 = smov 192   ;;  %s6075_s5 = smov 12  }
  0x7a   :  { %37 = dma.hbm_to_vmem [thread:$0]  %s7727_s0, 384, %s32_s14, [#allocation3], %s6074_s11, %s6074_s11, %s6075_s5  }
  0x7b   :  { %s6076_s20 = smov [#allocation7]   ;;  %s5891_s27 = scalar_lea.hbm %s7729_s2, 33792 }
  0x7c   :  { %s55_s21 = sshll.u32 %s6076_s20, 4  ;;  %p5892_p0 = scmp.ne.s32.totalorder %s7729_s2, %s5891_s27  ;;  %s56_s21 = int_to_ptr.vmem [resolvable:$true] %s55_s21 }
  0x7d   :  { %p5895_p1 = scmp.lt.u32.totalorder %s5891_s27, %s7729_s2 }
  0x7f   :  { %p5897_p2 = pnand %p5895_p1, %p5892_p0 }
  0x81   :  { %5900 = shalt.err (!%p5897_p2)
}
  0x82   :  { %s5901_s30 = scalar_lea.vmem %s56_s21, 33792  ;;  %p5906_p4 = scmp.lt.s32.totalorder %s56_s21, %s56_s21 }
  0x83   :  { %p5902_p3 = scmp.ne.s32.totalorder %s56_s21, %s5901_s30  ;;  %p5907_p5 = scmp.lt.s32.totalorder %s5901_s30, %s5901_s30 }
  0x85   :  { %p5908_p6 = por %p5907_p5, %p5906_p4 }
  0x87   :  { %p5909_p7 = pnand %p5908_p6, %p5902_p3 }
  0x89   :  { %5912 = shalt.err (!%p5909_p7)
}
  0x8a   :  { %s6077_s0 = smov 384   ;;  %s6078_s14 = smov 24  }
  0x8b   :  { %61 = dma.hbm_to_vmem [thread:$0]  %s7729_s2, 33792, %s56_s21, [#allocation6], %s6077_s0, %s6077_s0, %s6078_s14  }
  0x8c   :  { %s6079_s26 = smov [#allocation10]   ;;  %s6080_s7 = smov [#allocation13]  }
  0x8d   :  { %s78_s17 = sshll.u32 %s6079_s26, 4  ;;  %s100_s15 = sshll.u32 %s6080_s7, 4  ;;  %s79_s17 = int_to_ptr.vmem [resolvable:$true] %s78_s17  ;;  %s101_s15 = int_to_ptr.vmem [resolvable:$true] %s100_s15 }
  0x8e   :  { %s5913_s11 = scalar_lea.hbm %s7731_s4, 48 }
  0x8f   :  { %p5914_p8 = scmp.ne.s32.totalorder %s7731_s4, %s5913_s11  ;;  %p5917_p9 = scmp.lt.u32.totalorder %s5913_s11, %s7731_s4 }
  0x91   :  { %p5919_p10 = pnand %p5917_p9, %p5914_p8 }
  0x93   :  { %5922 = shalt.err (!%p5919_p10)
}
  0x94   :  { %s5923_s2 = scalar_lea.vmem %s79_s17, 48  ;;  %s5927_s21 = scalar_lea.vmem %s79_s17, 64 }
  0x95   :  { %p5924_p11 = scmp.ne.s32.totalorder %s79_s17, %s5923_s2  ;;  %p5928_p12 = scmp.lt.s32.totalorder %s79_s17, %s79_s17 }
  0x96   :  { %p5929_p13 = scmp.lt.s32.totalorder %s5927_s21, %s5923_s2 }
  0x98   :  { %p5930_p0 = por %p5929_p13, %p5928_p12 }
  0x9a   :  { %p5931_p1 = pnand %p5930_p0, %p5924_p11 }
  0x9c   :  { %5934 = shalt.err (!%p5931_p1)
}
  0x9d   :  { %81 = dma.hbm_to_vmem [thread:$0]  %s7731_s4, 48, %s79_s17, [#allocation9]  }
  0x9e   :  { %s5935_s29 = scalar_lea.hbm %s7733_s6, 96 }
  0x9f   :  { %p5936_p2 = scmp.ne.s32.totalorder %s7733_s6, %s5935_s29  ;;  %p5939_p3 = scmp.lt.u32.totalorder %s5935_s29, %s7733_s6 }
  0xa1   :  { %p5941_p4 = pnand %p5939_p3, %p5936_p2 }
  0xa3   :  { %5944 = shalt.err (!%p5941_p4)
}
  0xa4   :  { %s5945_s14 = scalar_lea.vmem %s101_s15, 96  ;;  %p5950_p6 = scmp.lt.s32.totalorder %s101_s15, %s101_s15 }
  0xa5   :  { %p5946_p5 = scmp.ne.s32.totalorder %s101_s15, %s5945_s14  ;;  %p5951_p7 = scmp.lt.s32.totalorder %s5945_s14, %s5945_s14 }
  0xa7   :  { %p5952_p8 = por %p5951_p7, %p5950_p6 }
  0xa9   :  { %p5953_p9 = pnand %p5952_p8, %p5946_p5 }
  0xab   :  { %5956 = shalt.err (!%p5953_p9)
}
  0xac   :  { %103 = dma.hbm_to_vmem [thread:$0]  %s7733_s6, 96, %s101_s15, [#allocation12]  }
  0xad   :  { %s6081_s1 = smov [#allocation16]   ;;  %s6082_s17 = smov [#allocation19]  }
  0xae   :  { %s122_s26 = sshll.u32 %s6081_s1, 4  ;;  %s144_s7 = sshll.u32 %s6082_s17, 4  ;;  %s123_s26 = int_to_ptr.vmem [resolvable:$true] %s122_s26  ;;  %s145_s7 = int_to_ptr.vmem [resolvable:$true] %s144_s7 }
  0xaf   :  { %s5957_s11 = scalar_lea.hbm %s7735_s8, 16 }
  0xb0   :  { %p5958_p10 = scmp.ne.s32.totalorder %s7735_s8, %s5957_s11  ;;  %p5961_p11 = scmp.lt.u32.totalorder %s5957_s11, %s7735_s8 }
  0xb2   :  { %p5963_p12 = pnand %p5961_p11, %p5958_p10 }
  0xb4   :  { %5966 = shalt.err (!%p5963_p12)
}
  0xb5   :  { %s5967_s6 = scalar_lea.vmem %s123_s26, 16  ;;  %s5971_s15 = scalar_lea.vmem %s123_s26, 32 }
  0xb6   :  { %p5968_p13 = scmp.ne.s32.totalorder %s123_s26, %s5967_s6  ;;  %p5972_p0 = scmp.lt.s32.totalorder %s123_s26, %s123_s26 }
  0xb7   :  { %p5973_p1 = scmp.lt.s32.totalorder %s5971_s15, %s5967_s6 }
  0xb9   :  { %p5974_p2 = por %p5973_p1, %p5972_p0 }
  0xbb   :  { %p5975_p3 = pnand %p5974_p2, %p5968_p13 }
  0xbd   :  { %5978 = shalt.err (!%p5975_p3)
}
  0xbe   :  { %125 = dma.hbm_to_vmem [thread:$0]  %s7735_s8, 16, %s123_s26, [#allocation15]  }
  0xbf   :  { %s5979_s27 = scalar_lea.hbm %s7737_s10, 16 }
  0xc0   :  { %p5980_p4 = scmp.ne.s32.totalorder %s7737_s10, %s5979_s27  ;;  %p5983_p5 = scmp.lt.u32.totalorder %s5979_s27, %s7737_s10 }
  0xc2   :  { %p5985_p6 = pnand %p5983_p5, %p5980_p4 }
  0xc4   :  { %5988 = shalt.err (!%p5985_p6)
}
  0xc5   :  { %s5989_s30 = scalar_lea.vmem %s145_s7, 16  ;;  %s5993_s0 = scalar_lea.vmem %s145_s7, 32 }
  0xc6   :  { %p5990_p7 = scmp.ne.s32.totalorder %s145_s7, %s5989_s30  ;;  %p5994_p8 = scmp.lt.s32.totalorder %s145_s7, %s145_s7 }
  0xc7   :  { %p5995_p9 = scmp.lt.s32.totalorder %s5993_s0, %s5989_s30 }
  0xc9   :  { %p5996_p10 = por %p5995_p9, %p5994_p8 }
  0xcb   :  { %p5997_p11 = pnand %p5996_p10, %p5990_p7 }
  0xcd   :  { %6000 = shalt.err (!%p5997_p11)
}
  0xce   :  { %147 = dma.hbm_to_vmem [thread:$0]  %s7737_s10, 16, %s145_s7, [#allocation18]  }
  0xcf   :  { %s6083_s4 = smov [#allocation22]   ;;  %s6001_s17 = scalar_lea.hbm %s7739_s12, 16 }
  0xd0   :  { %s166_s16 = sshll.u32 %s6083_s4, 4  ;;  %p6002_p12 = scmp.ne.s32.totalorder %s7739_s12, %s6001_s17  ;;  %s167_s16 = int_to_ptr.vmem [resolvable:$true] %s166_s16 }
  0xd1   :  { %p6005_p13 = scmp.lt.u32.totalorder %s6001_s17, %s7739_s12 }
  0xd3   :  { %p6007_p0 = pnand %p6005_p13, %p6002_p12 }
  0xd5   :  { %6010 = shalt.err (!%p6007_p0)
}
  0xd6   :  { %s6011_s25 = scalar_lea.vmem %s167_s16, 16  ;;  %s6015_s10 = scalar_lea.vmem %s167_s16, 32 }
  0xd7   :  { %p6012_p1 = scmp.ne.s32.totalorder %s167_s16, %s6011_s25  ;;  %p6016_p2 = scmp.lt.s32.totalorder %s167_s16, %s167_s16 }
  0xd8   :  { %p6017_p3 = scmp.lt.s32.totalorder %s6015_s10, %s6011_s25 }
  0xda   :  { %p6018_p4 = por %p6017_p3, %p6016_p2 }
  0xdc   :  { %p6019_p5 = pnand %p6018_p4, %p6012_p1 }
  0xde   :  { %6022 = shalt.err (!%p6019_p5)
}
  0xdf   :  { %169 = dma.hbm_to_vmem [thread:$0]  %s7739_s12, 16, %s167_s16, [#allocation21]  }
  0xe0   :  { %6045 = dma.done.wait [#allocation3], 384  }
  0xe1   :  { %6046 = vsyncadd [#allocation3], 4294966912 }
  0xe2   :  { %6047 = dma.done.wait [#allocation6], 33856  }
  0xe3   :  { %6048 = vsyncadd [#allocation6], 4294933440 }
  0xe4   :  { %6049 = dma.done.wait [#allocation9], 432  }
  0xe5   :  { %6050 = vsyncadd [#allocation9], 4294966864 }
  0xe6   :  { %6051 = dma.done.wait [#allocation12], 36960  }
  0xe7   :  { %6052 = vsyncadd [#allocation12], 4294930336 }
  0xe8   :  { %6053 = dma.done.wait [#allocation15], 24592  }
  0xe9   :  { %6054 = vsyncadd [#allocation15], 4294942704 }
  0xea   :  { %6055 = dma.done.wait [#allocation18], 2064  }
  0xeb   :  { %6056 = vsyncadd [#allocation18], 4294965232 }
  0xec   :  { %6057 = dma.done.wait [#allocation21], 2064  }
  0xed   :  { %6058 = vsyncadd [#allocation21], 4294965232  ;;  %v7741_v0 = vmov 0.0   ;;  %vm6085_vm0 = vmmov 0   ;;  %vm779_vm1 = vcmask 1045504   ;;  %v210_v4 = vld [vmem:[#allocation7 + $0x8] sm:$0xff] }
  0xee   :  { %4221 = vmatprep.subr.mxu1 %v7741_v0  ;;  %853 = vmatprep.mubr.f32.mxu0 %v7741_v0  ;;  %v474_v1 = vld [vmem:[#allocation8 + $0x8] sm:$0x3f]  ;;  %v473_v2 = vld [vmem:[#allocation8] sm:$0x3f]  ;;  %v475_v3 = vld [vmem:[#allocation8 + $0x10] sm:$0x3f] }
  0xef   :  { %4223 = vmatprep.mubr.msk.f32.mxu1 %vm6085_vm0, %v7741_v0  ;;  %3816 = vmatprep.subr.msk.mxu0 %vm779_vm1, %v474_v1  ;;  %v213_v5 = vld [vmem:[#allocation7 + $0x20] sm:$0xff]  ;;  %v259_v6 = vld [vmem:[#allocation7 + $0x190] sm:$0xff]  ;;  %v262_v8 = vld [vmem:[#allocation7 + $0x1a8] sm:$0xff]  ;;  %vm774_vm2 = vcmask 1041409   ;;  %vm776_vm3 = vcmask 48128   ;;  %v937_v1 = vlaneseq  ;;  %vm985_vm4 = vcmask 523264  }
  0xf0   :  { %4222 = vmatpush3.msk.msra.mxu1 %vm779_vm1, %v475_v3  ;;  %3817 = vmatpush1.msk.msra.mxu0 %vm779_vm1, %v473_v2  ;;  %v6338_v7 = vpack.c.bf16 %v213_v5, %v210_v4  ;;  %v769_v9 = vld [vmem:[#allocation5] sm:$0x1]  ;;  %v770_v10 = vld [vmem:[#allocation5 + $0x2] sm:$0x1]  ;;  %v6340_v11 = vpack.c.bf16 %v262_v8, %v259_v6  ;;  %v209_v13 = vld [vmem:[#allocation7] sm:$0xff]  ;;  %s6088_s12 = smov [#allocation23]  }
  0xf1   :  { %v773_v12 = vrot.slane %v770_v10, 7  ;;  %v212_v14 = vld [vmem:[#allocation7 + $0x18] sm:$0xff]  ;;  %v211_v15 = vld [vmem:[#allocation7 + $0x10] sm:$0xff]  ;;  %v214_v17 = vld [vmem:[#allocation7 + $0x28] sm:$0xff]  ;;  %v6086_v62 = vmov 1966171168  }
  0xf2   :  { %7960 = vst [vmem:[#allocation32_spill] sm:$0xff] %v6340_v11  ;;  %4302 = vmatprep.subr.bf16.mxu0 %v6338_v7  ;;  %v6343_v16 = vpack.c.bf16 %v212_v14, %v209_v13  ;;  %v216_v18 = vld [vmem:[#allocation7 + $0x38] sm:$0xff]  ;;  %v219_v19 = vld [vmem:[#allocation7 + $0x50] sm:$0xff]  ;;  %4478 = vmatprep.subr.bf16.mxu1 %v6340_v11  ;;  %v6347_v21 = vpack.c.bf16 %v214_v17, %v211_v15  ;;  %v265_v23 = vld [vmem:[#allocation7 + $0x1c0] sm:$0xff]  ;;  %v935_v63 = vunpack.c.l.s4 %v6086_v62  ;;  %s3801_s20 = sshll.u32 %s6088_s12, 4  ;;  %s3802_s20 = int_to_ptr.vmem [resolvable:$true] %s3801_s20 }
  0xf3   :  { %v775_v20 = vsel %vm774_vm2, %v773_v12, %v769_v9  ;;  %v6349_v22 = vpack.c.bf16 %v219_v19, %v216_v18  ;;  %v268_v24 = vld [vmem:[#allocation7 + $0x1d8] sm:$0xff]  ;;  %v215_v25 = vld [vmem:[#allocation7 + $0x30] sm:$0xff]  ;;  %v218_v27 = vld [vmem:[#allocation7 + $0x48] sm:$0xff]  ;;  %v6397_v18 = vshrl.u32 %v937_v1, 7  ;;  %s6023_s6 = scalar_lea.vmem %s3802_s20, 32  ;;  %p6028_p7 = scmp.lt.s32.totalorder %s3802_s20, %s3802_s20 }
  0xf4   :  { %7961 = vst [vmem:[#allocation33_spill] sm:$0xff] %v6347_v21  ;;  %3818 = vmatmul.mubr.msk.f32.vlgmr.msra.gmra.mrb[0].mxu0 %vm776_vm3, %v775_v20  ;;  %4224 = vmatmul.mubr.msk.f32.vlgmr.msra.gmra.mrb[0].mxu1 %vm776_vm3, %v775_v20  ;;  %v6353_v26 = vpack.c.bf16 %v268_v24, %v265_v23  ;;  %v217_v28 = vld [vmem:[#allocation7 + $0x40] sm:$0xff]  ;;  %v220_v29 = vld [vmem:[#allocation7 + $0x58] sm:$0xff]  ;;  %v6357_v30 = vpack.c.bf16 %v218_v27, %v215_v25  ;;  %v222_v32 = vld [vmem:[#allocation7 + $0x68] sm:$0xff]  ;;  %v936_v17 = vunpack.c.0.s8 %v935_v63  ;;  %p6024_p6 = scmp.ne.s32.totalorder %s3802_s20, %s6023_s6  ;;  %p6029_p8 = scmp.lt.s32.totalorder %s6023_s6, %s6023_s6 }
  0xf5   :  { %4304 = vmatpush1.bf16.msra.mxu0 %v6343_v16  ;;  %4480 = vmatpush3.bf16.msra.mxu1 %v6347_v21  ;;  %v6359_v31 = vpack.c.bf16 %v220_v29, %v217_v28  ;;  %v225_v33 = vld [vmem:[#allocation7 + $0x80] sm:$0xff]  ;;  %v271_v34 = vld [vmem:[#allocation7 + $0x1f0] sm:$0xff]  ;;  %v274_v36 = vld [vmem:[#allocation7 + $0x208] sm:$0xff]  ;;  %7970 = vst [vmem:[#allocation42_spill] sm:$0xff] %v6397_v18 }
  0xf6   :  { %7962 = vst [vmem:[#allocation34_spill] sm:$0xff] %v6353_v26  ;;  %4306 = vmatprep.subr.bf16.mxu0 %v6349_v22  ;;  %4482 = vmatprep.subr.bf16.mxu1 %v6353_v26  ;;  %v6363_v35 = vpack.c.bf16 %v225_v33, %v222_v32  ;;  %v221_v37 = vld [vmem:[#allocation7 + $0x60] sm:$0xff]  ;;  %v224_v38 = vld [vmem:[#allocation7 + $0x78] sm:$0xff]  ;;  %v6365_v39 = vpack.c.bf16 %v274_v36, %v271_v34  ;;  %v223_v40 = vld [vmem:[#allocation7 + $0x70] sm:$0xff]  ;;  %p6030_p9 = por %p6029_p8, %p6028_p7 }
  0xf7   :  { %7963 = vst [vmem:[#allocation35_spill] sm:$0xff] %v6359_v31  ;;  %v226_v41 = vld [vmem:[#allocation7 + $0x88] sm:$0xff]  ;;  %v228_v42 = vld [vmem:[#allocation7 + $0x98] sm:$0xff]  ;;  %v231_v43 = vld [vmem:[#allocation7 + $0xb0] sm:$0xff]  ;;  %v6369_v46 = vpack.c.bf16 %v224_v38, %v221_v37 }
  0xf8   :  { %7964 = vst [vmem:[#allocation36_spill] sm:$0xff] %v6365_v39  ;;  %v277_v44 = vld [vmem:[#allocation7 + $0x220] sm:$0xff]  ;;  %v280_v45 = vld [vmem:[#allocation7 + $0x238] sm:$0xff]  ;;  %v6371_v47 = vpack.c.bf16 %v226_v41, %v223_v40  ;;  %v227_v48 = vld [vmem:[#allocation7 + $0x90] sm:$0xff]  ;;  %v6375_v50 = vpack.c.bf16 %v231_v43, %v228_v42  ;;  %v6414_v40 = vsub.s32 %v936_v17, %v6397_v18  ;;  %p6031_p10 = pnand %p6030_p9, %p6024_p6 }
  0xf9   :  { %4308 = vmatpush1.bf16.msra.mxu0 %v6357_v30  ;;  %4484 = vmatpush3.bf16.msra.mxu1 %v6359_v31  ;;  %v230_v49 = vld [vmem:[#allocation7 + $0xa8] sm:$0xff]  ;;  %v6377_v51 = vpack.c.bf16 %v280_v45, %v277_v44  ;;  %v229_v52 = vld [vmem:[#allocation7 + $0xa0] sm:$0xff]  ;;  %v232_v53 = vld [vmem:[#allocation7 + $0xb8] sm:$0xff] }
  0xfa   :  { %7965 = vst [vmem:[#allocation37_spill] sm:$0xff] %v6371_v47  ;;  %4310 = vmatprep.subr.bf16.mxu0 %v6363_v35  ;;  %4486 = vmatprep.subr.bf16.mxu1 %v6365_v39  ;;  %v234_v54 = vld [vmem:[#allocation7 + $0xc8] sm:$0xff]  ;;  %v237_v55 = vld [vmem:[#allocation7 + $0xe0] sm:$0xff]  ;;  %v283_v56 = vld [vmem:[#allocation7 + $0x250] sm:$0xff]  ;;  %v6381_v58 = vpack.c.bf16 %v230_v49, %v227_v48  ;;  %v6383_v59 = vpack.c.bf16 %v232_v53, %v229_v52 }
  0xfb   :  { %7966 = vst [vmem:[#allocation38_spill] sm:$0xff] %v6377_v51  ;;  %v286_v57 = vld [vmem:[#allocation7 + $0x268] sm:$0xff]  ;;  %v233_v60 = vld [vmem:[#allocation7 + $0xc0] sm:$0xff]  ;;  %v236_v61 = vld [vmem:[#allocation7 + $0xd8] sm:$0xff]  ;;  %v6387_v2 = vpack.c.bf16 %v237_v55, %v234_v54 }
  0xfc   :  { %7967 = vst [vmem:[#allocation39_spill] sm:$0xff] %v6383_v59  ;;  %v6389_v3 = vpack.c.bf16 %v286_v57, %v283_v56  ;;  %v235_v4 = vld [vmem:[#allocation7 + $0xd0] sm:$0xff]  ;;  %v238_v5 = vld [vmem:[#allocation7 + $0xe8] sm:$0xff]  ;;  %v240_v6 = vld [vmem:[#allocation7 + $0xf8] sm:$0xff]  ;;  %v6393_v12 = vpack.c.bf16 %v236_v61, %v233_v60 }
  0xfd   :  { %4312 = vmatpush1.bf16.msra.mxu0 %v6369_v46  ;;  %4488 = vmatpush3.bf16.msra.mxu1 %v6371_v47  ;;  %v243_v8 = vld [vmem:[#allocation7 + $0x110] sm:$0xff]  ;;  %v289_v9 = vld [vmem:[#allocation7 + $0x280] sm:$0xff]  ;;  %v292_v10 = vld [vmem:[#allocation7 + $0x298] sm:$0xff]  ;;  %v6395_v13 = vpack.c.bf16 %v238_v5, %v235_v4 }
  0xfe   :  { %4314 = vmatprep.subr.bf16.mxu0 %v6375_v50  ;;  %4490 = vmatprep.subr.bf16.mxu1 %v6377_v51  ;;  %7968 = vst [vmem:[#allocation40_spill] sm:$0xff] %v6389_v3  ;;  %v239_v14 = vld [vmem:[#allocation7 + $0xf0] sm:$0xff]  ;;  %v242_v15 = vld [vmem:[#allocation7 + $0x108] sm:$0xff]  ;;  %v6401_v19 = vpack.c.bf16 %v243_v8, %v240_v6  ;;  %v6403_v20 = vpack.c.bf16 %v292_v10, %v289_v9  ;;  %v241_v23 = vld [vmem:[#allocation7 + $0x100] sm:$0xff] }
  0xff   :  { %7969 = vst [vmem:[#allocation41_spill] sm:$0xff] %v6395_v13  ;;  %v244_v24 = vld [vmem:[#allocation7 + $0x118] sm:$0xff]  ;;  %v246_v25 = vld [vmem:[#allocation7 + $0x128] sm:$0xff]  ;;  %v249_v27 = vld [vmem:[#allocation7 + $0x140] sm:$0xff]  ;;  %v6407_v33 = vpack.c.bf16 %v242_v15, %v239_v14 }
 0x100   :  { %7971 = vst [vmem:[#allocation43_spill] sm:$0xff] %v6403_v20  ;;  %v295_v28 = vld [vmem:[#allocation7 + $0x2b0] sm:$0xff]  ;;  %v298_v29 = vld [vmem:[#allocation7 + $0x2c8] sm:$0xff]  ;;  %v245_v32 = vld [vmem:[#allocation7 + $0x120] sm:$0xff]  ;;  %v6409_v34 = vpack.c.bf16 %v244_v24, %v241_v23  ;;  %v6418_v41 = vpack.c.bf16 %v249_v27, %v246_v25 }
 0x101   :  { %4316 = vmatpush1.bf16.msra.mxu0 %v6381_v58  ;;  %4492 = vmatpush3.bf16.msra.mxu1 %v6383_v59  ;;  %v248_v36 = vld [vmem:[#allocation7 + $0x138] sm:$0xff]  ;;  %v247_v37 = vld [vmem:[#allocation7 + $0x130] sm:$0xff]  ;;  %v6411_v38 = vld [vmem:[#allocation2] ss:$2 sm:$0x3f]  ;;  %v6420_v42 = vpack.c.bf16 %v298_v29, %v295_v28 }
 0x102   :  { %4318 = vmatprep.subr.bf16.mxu0 %v6387_v2  ;;  %4494 = vmatprep.subr.bf16.mxu1 %v6389_v3  ;;  %7972 = vst [vmem:[#allocation44_spill] sm:$0xff] %v6409_v34  ;;  %v250_v43 = vld [vmem:[#allocation7 + $0x148] sm:$0xff]  ;;  %v252_v44 = vld [vmem:[#allocation7 + $0x158] sm:$0xff]  ;;  %v255_v48 = vld [vmem:[#allocation7 + $0x170] sm:$0xff]  ;;  %v6428_v54 = vpack.c.bf16 %v248_v36, %v245_v32 }
 0x103   :  { %7973 = vst [vmem:[#allocation45_spill] sm:$0xff] %v6420_v42  ;;  %v6422_v45 = vld [vmem:[#allocation2 + $0xc] ss:$2 sm:$0x3f]  ;;  %v301_v49 = vld [vmem:[#allocation7 + $0x2e0] sm:$0xff]  ;;  %v6430_v55 = vpack.c.bf16 %v250_v43, %v247_v37  ;;  %v254_v57 = vld [vmem:[#allocation7 + $0x168] sm:$0xff]  ;;  %v6435_v61 = vpack.c.bf16 %v255_v48, %v252_v44 }
 0x104   :  { %v304_v52 = vld [vmem:[#allocation7 + $0x2f8] sm:$0xff]  ;;  %v932_v53 = vcombine.low %v6411_v38, %v6422_v45  ;;  %v251_v56 = vld [vmem:[#allocation7 + $0x150] sm:$0xff]  ;;  %v253_v63 = vld [vmem:[#allocation7 + $0x160] sm:$0xff] }
 0x105   :  { %4320 = vmatpush1.bf16.msra.mxu0 %v6393_v12  ;;  %4496 = vmatpush3.bf16.msra.mxu1 %v6395_v13  ;;  %7974 = vst [vmem:[#allocation46_spill] sm:$0xff] %v6430_v55  ;;  %v6437_v62 = vpack.c.bf16 %v304_v52, %v301_v49  ;;  %v256_v1 = vld [vmem:[#allocation7 + $0x178] sm:$0xff]  ;;  %v258_v4 = vld [vmem:[#allocation7 + $0x188] sm:$0xff]  ;;  %v261_v5 = vld [vmem:[#allocation7 + $0x1a0] sm:$0xff]  ;;  %v6441_v10 = vpack.c.bf16 %v254_v57, %v251_v56 }
 0x106   :  { %4322 = vmatprep.subr.bf16.mxu0 %v6401_v19  ;;  %4498 = vmatprep.subr.bf16.mxu1 %v6403_v20  ;;  %v940_v60 = vrot.slane %v932_v53, %v6414_v40  ;;  %v355_v8 = vld [vmem:[#allocation7 + $0x490] sm:$0xff]  ;;  %v358_v9 = vld [vmem:[#allocation7 + $0x4a8] sm:$0xff]  ;;  %v6443_v14 = vpack.c.bf16 %v256_v1, %v253_v63  ;;  %v257_v17 = vld [vmem:[#allocation7 + $0x180] sm:$0xff]  ;;  %v6448_v24 = vpack.c.bf16 %v261_v5, %v258_v4 }
 0x107   :  { %7975 = vst [vmem:[#allocation47_spill] sm:$0xff] %v6437_v62  ;;  %v260_v23 = vld [vmem:[#allocation7 + $0x198] sm:$0xff]  ;;  %v6450_v25 = vpack.c.bf16 %v358_v9, %v355_v8  ;;  %v307_v27 = vld [vmem:[#allocation7 + $0x310] sm:$0xff]  ;;  %v310_v28 = vld [vmem:[#allocation7 + $0x328] sm:$0xff] }
 0x108   :  { %v948_v6 = vcombine.high %v940_v60, %v940_v60  ;;  %7976 = vst [vmem:[#allocation48_spill] sm:$0xff] %v6443_v14  ;;  %v264_v29 = vld [vmem:[#allocation7 + $0x1b8] sm:$0xff]  ;;  %v267_v32 = vld [vmem:[#allocation7 + $0x1d0] sm:$0xff]  ;;  %v361_v36 = vld [vmem:[#allocation7 + $0x4c0] sm:$0xff]  ;;  %v6453_v43 = vrot.slane %v940_v60, %v6414_v40  ;;  %v6457_v44 = vpack.c.bf16 %v260_v23, %v257_v17  ;;  %v6459_v48 = vpack.c.bf16 %v310_v28, %v307_v27 }
 0x109   :  { %4324 = vmatpush1.bf16.msra.mxu0 %v6407_v33  ;;  %4500 = vmatpush3.bf16.msra.mxu1 %v6409_v34  ;;  %7977 = vst [vmem:[#allocation49_spill] sm:$0xff] %v6450_v25  ;;  %v364_v37 = vld [vmem:[#allocation7 + $0x4d8] sm:$0xff]  ;;  %v263_v49 = vld [vmem:[#allocation7 + $0x1b0] sm:$0xff]  ;;  %v266_v52 = vld [vmem:[#allocation7 + $0x1c8] sm:$0xff]  ;;  %v6463_v53 = vpack.c.bf16 %v267_v32, %v264_v29 }
 0x10a   :  { %4326 = vmatprep.subr.bf16.mxu0 %v6418_v41  ;;  %4502 = vmatprep.subr.bf16.mxu1 %v6420_v42  ;;  %v970_v15 = vrot.slane %v948_v6, %v6414_v40  ;;  %7978 = vst [vmem:[#allocation50_spill] sm:$0xff] %v6459_v48  ;;  %v6465_v56 = vpack.c.bf16 %v364_v37, %v361_v36  ;;  %v313_v57 = vld [vmem:[#allocation7 + $0x340] sm:$0xff]  ;;  %v316_v60 = vld [vmem:[#allocation7 + $0x358] sm:$0xff]  ;;  %v270_v63 = vld [vmem:[#allocation7 + $0x1e8] sm:$0xff] }
 0x10b   :  { %v273_v1 = vld [vmem:[#allocation7 + $0x200] sm:$0xff]  ;;  %v367_v4 = vld [vmem:[#allocation7 + $0x4f0] sm:$0xff]  ;;  %v370_v5 = vld [vmem:[#allocation7 + $0x508] sm:$0xff]  ;;  %v6472_v8 = vpack.c.bf16 %v266_v52, %v263_v49  ;;  %v6474_v9 = vpack.c.bf16 %v316_v60, %v313_v57 }
 0x10c   :  { %1265 = vmatprep.mubr.f32.mxu1 %v970_v15  ;;  %1052 = vmatprep.mubr.f32.mxu0 %v970_v15  ;;  %7979 = vst [vmem:[#allocation51_spill] sm:$0xff] %v6465_v56  ;;  %v6467_v6 = vcombine.high %v970_v15, %v970_v15  ;;  %v269_v17 = vld [vmem:[#allocation7 + $0x1e0] sm:$0xff]  ;;  %v272_v23 = vld [vmem:[#allocation7 + $0x1f8] sm:$0xff]  ;;  %v6478_v27 = vpack.c.bf16 %v273_v1, %v270_v63  ;;  %v319_v28 = vld [vmem:[#allocation7 + $0x370] sm:$0xff] }
 0x10d   :  { %4328 = vmatpush1.bf16.msra.mxu0 %v6428_v54  ;;  %4504 = vmatpush3.bf16.msra.mxu1 %v6430_v55  ;;  %7980 = vst [vmem:[#allocation52_spill] sm:$0xff] %v6474_v9  ;;  %v6480_v15 = vpack.c.bf16 %v370_v5, %v367_v4  ;;  %v322_v29 = vld [vmem:[#allocation7 + $0x388] sm:$0xff]  ;;  %v276_v32 = vld [vmem:[#allocation7 + $0x218] sm:$0xff]  ;;  %v279_v36 = vld [vmem:[#allocation7 + $0x230] sm:$0xff]  ;;  %v6485_v49 = vpack.c.bf16 %v272_v23, %v269_v17 }
 0x10e   :  { %4330 = vmatprep.subr.bf16.mxu0 %v6435_v61  ;;  %4506 = vmatprep.subr.bf16.mxu1 %v6437_v62  ;;  %v373_v37 = vld [vmem:[#allocation7 + $0x520] sm:$0xff]  ;;  %v376_v0 = vld [vmem:[#allocation7 + $0x538] sm:$0xff]  ;;  %v6487_v52 = vpack.c.bf16 %v322_v29, %v319_v28  ;;  %v275_v57 = vld [vmem:[#allocation7 + $0x210] sm:$0xff]  ;;  %v6491_v63 = vpack.c.bf16 %v279_v36, %v276_v32 }
 0x10f   :  { %7981 = vst [vmem:[#allocation53_spill] sm:$0xff] %v6480_v15  ;;  %v278_v60 = vld [vmem:[#allocation7 + $0x228] sm:$0xff]  ;;  %v6493_v1 = vpack.c.bf16 %v376_v0, %v373_v37  ;;  %v325_v4 = vld [vmem:[#allocation7 + $0x3a0] sm:$0xff]  ;;  %v328_v5 = vld [vmem:[#allocation7 + $0x3b8] sm:$0xff] }
 0x110   :  { %7982 = vst [vmem:[#allocation54_spill] sm:$0xff] %v6487_v52  ;;  %v6497_v17 = vpack.c.bf16 %v278_v60, %v275_v57  ;;  %v6499_v23 = vpack.c.bf16 %v328_v5, %v325_v4  ;;  %v281_v28 = vld [vmem:[#allocation7 + $0x240] sm:$0xff]  ;;  %v284_v29 = vld [vmem:[#allocation7 + $0x258] sm:$0xff]  ;;  %v331_v36 = vld [vmem:[#allocation7 + $0x3d0] sm:$0xff] }
 0x111   :  { %4332 = vmatpush1.bf16.msra.mxu0 %v6441_v10  ;;  %4508 = vmatpush3.bf16.msra.mxu1 %v6443_v14  ;;  %7983 = vst [vmem:[#allocation55_spill] sm:$0xff] %v6493_v1  ;;  %v334_v37 = vld [vmem:[#allocation7 + $0x3e8] sm:$0xff]  ;;  %v291_v14 = vld [vmem:[#allocation7 + $0x290] sm:$0xff]  ;;  %v385_v62 = vld [vmem:[#allocation7 + $0x580] sm:$0xff]  ;;  %v6509_v57 = vpack.c.bf16 %v284_v29, %v281_v28 }
 0x112   :  { %4334 = vmatprep.subr.bf16.mxu0 %v6448_v24  ;;  %4510 = vmatprep.subr.bf16.mxu1 %v6450_v25  ;;  %v379_v25 = vld [vmem:[#allocation7 + $0x550] sm:$0xff]  ;;  %7984 = vst [vmem:[#allocation56_spill] sm:$0xff] %v6499_v23  ;;  %v6511_v60 = vpack.c.bf16 %v334_v37, %v331_v36  ;;  %v290_v5 = vld [vmem:[#allocation7 + $0x288] sm:$0xff]  ;;  %v297_v55 = vld [vmem:[#allocation7 + $0x2c0] sm:$0xff] }
 0x113   :  { %v287_v4 = vld [vmem:[#allocation7 + $0x270] sm:$0xff]  ;;  %v293_v36 = vld [vmem:[#allocation7 + $0x2a0] sm:$0xff]  ;;  %v296_v37 = vld [vmem:[#allocation7 + $0x2b8] sm:$0xff] }
 0x114   :  { %1266 = vmatmul.mubr.f32.vlgmr.msra.gmra.mrb[2].mxu1 %v6453_v43  ;;  %7986 = vst [vmem:[#allocation58_spill] sm:$0xff] %v6511_v60  ;;  %v391_v42 = vld [vmem:[#allocation7 + $0x5b0] sm:$0xff]  ;;  %v6521_v28 = vpack.c.bf16 %v290_v5, %v287_v4  ;;  %v397_v5 = vld [vmem:[#allocation7 + $0x5e0] sm:$0xff]  ;;  %v306_v34 = vld [vmem:[#allocation7 + $0x308] sm:$0xff] }
 0x115   :  { %4336 = vmatpush1.bf16.msra.mxu0 %v6457_v44  ;;  %4512 = vmatpush3.bf16.msra.mxu1 %v6459_v48  ;;  %v285_v48 = vld [vmem:[#allocation7 + $0x260] sm:$0xff]  ;;  %v303_v4 = vld [vmem:[#allocation7 + $0x2f0] sm:$0xff]  ;;  %v412_v13 = vld [vmem:[#allocation7 + $0x658] sm:$0xff] }
 0x116   :  { %4338 = vmatprep.subr.bf16.mxu0 %v6463_v53  ;;  %4514 = vmatprep.subr.bf16.mxu1 %v6465_v56  ;;  %v282_v56 = vld [vmem:[#allocation7 + $0x248] sm:$0xff]  ;;  %v309_v20 = vld [vmem:[#allocation7 + $0x320] sm:$0xff]  ;;  %v336_v39 = vld [vmem:[#allocation7 + $0x3f8] sm:$0xff] }
 0x117   :  { %1335 = vmatprep.mubr.f32.mxu1 %v6467_v6  ;;  %v6503_v0 = vpack.c.bf16 %v285_v48, %v282_v56  ;;  %v337_v56 = vld [vmem:[#allocation7 + $0x400] sm:$0xff]  ;;  %v318_v3 = vld [vmem:[#allocation7 + $0x368] sm:$0xff]  ;;  %v339_v31 = vld [vmem:[#allocation7 + $0x410] sm:$0xff] }
 0x118   :  { %v321_v59 = vld [vmem:[#allocation7 + $0x380] sm:$0xff]  ;;  %v330_v47 = vld [vmem:[#allocation7 + $0x3c8] sm:$0xff]  ;;  %v348_v11 = vld [vmem:[#allocation7 + $0x458] sm:$0xff] }
 0x119   :  { %4340 = vmatpush1.bf16.msra.mxu0 %v6472_v8  ;;  %4516 = vmatpush3.bf16.msra.mxu1 %v6474_v9  ;;  %v382_v9 = vld [vmem:[#allocation7 + $0x568] sm:$0xff]  ;;  %v345_v21 = vld [vmem:[#allocation7 + $0x440] sm:$0xff] }
 0x11a   :  { %4342 = vmatprep.subr.bf16.mxu0 %v6478_v27  ;;  %4518 = vmatprep.subr.bf16.mxu1 %v6480_v15  ;;  %v6505_v32 = vpack.c.bf16 %v382_v9, %v379_v25  ;;  %v288_v15 = vld [vmem:[#allocation7 + $0x278] sm:$0xff]  ;;  %v342_v26 = vld [vmem:[#allocation7 + $0x428] sm:$0xff] }
 0x11b   :  { %v6515_v25 = vpack.c.bf16 %v291_v14, %v288_v15  ;;  %v340_v9 = vld [vmem:[#allocation7 + $0x418] sm:$0xff]  ;;  %v343_v15 = vld [vmem:[#allocation7 + $0x430] sm:$0xff] }
 0x11c   :  { %7985 = vst [vmem:[#allocation57_spill] sm:$0xff] %v6505_v32  ;;  %v6523_v29 = vpack.c.bf16 %v340_v9, %v337_v56  ;;  %v400_v56 = vld [vmem:[#allocation7 + $0x5f8] sm:$0xff]  ;;  %v6535_v9 = vpack.c.bf16 %v296_v37, %v293_v36 }
 0x11d   :  { %4344 = vmatpush1.bf16.msra.mxu0 %v6485_v49  ;;  %4520 = vmatpush3.bf16.msra.mxu1 %v6487_v52  ;;  %v388_v52 = vld [vmem:[#allocation7 + $0x598] sm:$0xff] }
 0x11e   :  { %4346 = vmatprep.subr.bf16.mxu0 %v6491_v63  ;;  %4522 = vmatprep.subr.bf16.mxu1 %v6493_v1  ;;  %v6517_v48 = vpack.c.bf16 %v388_v52, %v385_v62  ;;  %v294_v1 = vld [vmem:[#allocation7 + $0x2a8] sm:$0xff]  ;;  %7988 = vst [vmem:[#allocation60_spill] sm:$0xff] %v6523_v29 }
 0x11f   :  { %v6527_v62 = vpack.c.bf16 %v297_v55, %v294_v1  ;;  %v346_v52 = vld [vmem:[#allocation7 + $0x448] sm:$0xff]  ;;  %v299_v55 = vld [vmem:[#allocation7 + $0x2d0] sm:$0xff]  ;;  %v6543_v1 = vpack.c.bf16 %v400_v56, %v397_v5 }
 0x120   :  { %7987 = vst [vmem:[#allocation59_spill] sm:$0xff] %v6517_v48  ;;  %v406_v5 = vld [vmem:[#allocation7 + $0x628] sm:$0xff]  ;;  %v315_v56 = vld [vmem:[#allocation7 + $0x350] sm:$0xff] }
 0x121   :  { %4348 = vmatpush1.bf16.msra.mxu0 %v6497_v17  ;;  %4524 = vmatpush3.bf16.msra.mxu1 %v6499_v23  ;;  %v394_v23 = vld [vmem:[#allocation7 + $0x5c8] sm:$0xff]  ;;  %7991 = vst [vmem:[#allocation63_spill] sm:$0xff] %v6543_v1 }
 0x122   :  { %4350 = vmatprep.subr.bf16.mxu0 %v6503_v0  ;;  %4526 = vmatprep.subr.bf16.mxu1 %v6505_v32  ;;  %v6529_v14 = vpack.c.bf16 %v394_v23, %v391_v42  ;;  %v300_v32 = vld [vmem:[#allocation7 + $0x2d8] sm:$0xff] }
 0x123   :  { %v6541_v42 = vpack.c.bf16 %v303_v4, %v300_v32  ;;  %v352_v23 = vld [vmem:[#allocation7 + $0x478] sm:$0xff]  ;;  %v305_v32 = vld [vmem:[#allocation7 + $0x300] sm:$0xff]  ;;  %v403_v4 = vld [vmem:[#allocation7 + $0x610] sm:$0xff] }
 0x124   :  { %7989 = vst [vmem:[#allocation61_spill] sm:$0xff] %v6529_v14 }
 0x125   :  { %4352 = vmatpush1.bf16.msra.mxu0 %v6509_v57  ;;  %4528 = vmatpush3.bf16.msra.mxu1 %v6511_v60  ;;  %v933_v60 = vcombine.high %v6411_v38, %v6422_v45  ;;  %v302_v38 = vld [vmem:[#allocation7 + $0x2e8] sm:$0xff]  ;;  %v349_v45 = vld [vmem:[#allocation7 + $0x460] sm:$0xff] }
 0x126   :  { %4354 = vmatprep.subr.bf16.mxu0 %v6515_v25  ;;  %4530 = vmatprep.subr.bf16.mxu1 %v6517_v48  ;;  %v6537_v48 = vpack.c.bf16 %v346_v52, %v343_v15  ;;  %v6550_v36 = vpack.c.bf16 %v302_v38, %v299_v55  ;;  %v6552_v37 = vpack.c.bf16 %v352_v23, %v349_v45  ;;  %v308_v52 = vld [vmem:[#allocation7 + $0x318] sm:$0xff]  ;;  %v7797_v45 = vmov 0.0|0.0  }
 0x127   :  { %v6556_v15 = vpack.c.bf16 %v309_v20, %v306_v34  ;;  %v6562_v55 = vcombine.high %v6453_v43, %v6453_v43  ;;  %v6566_v38 = vpack.c.bf16 %v308_v52, %v305_v32  ;;  %v6568_v20 = vpack.c.bf16 %v406_v5, %v403_v4  ;;  %v311_v34 = vld [vmem:[#allocation7 + $0x330] sm:$0xff]  ;;  %v317_v4 = vld [vmem:[#allocation7 + $0x360] sm:$0xff]  ;;  %v320_v5 = vld [vmem:[#allocation7 + $0x378] sm:$0xff] }
 0x128   :  { %7990 = vst [vmem:[#allocation62_spill] sm:$0xff] %v6537_v48  ;;  %7992 = vst [vmem:[#allocation64_spill] sm:$0xff] %v6552_v37 }
 0x129   :  { %4356 = vmatpush1.bf16.msra.mxu0 %v6521_v28  ;;  %4532 = vmatpush3.bf16.msra.mxu1 %v6523_v29  ;;  %v6546_v29 = vrot.slane %v933_v60, %v6414_v40  ;;  %v312_v60 = vld [vmem:[#allocation7 + $0x338] sm:$0xff]  ;;  %7993 = vst [vmem:[#allocation65_spill] sm:$0xff] %v6566_v38  ;;  %7994 = vst [vmem:[#allocation66_spill] sm:$0xff] %v6568_v20 }
 0x12a   :  { %4358 = vmatprep.subr.bf16.mxu0 %v6527_v62  ;;  %4534 = vmatprep.subr.bf16.mxu1 %v6529_v14  ;;  %v6572_v23 = vpack.c.bf16 %v315_v56, %v312_v60  ;;  %v418_v60 = vld [vmem:[#allocation7 + $0x688] sm:$0xff]  ;;  %v324_v56 = vld [vmem:[#allocation7 + $0x398] sm:$0xff] }
 0x12b   :  { %v949_v14 = vcombine.high %v6546_v29, %v6546_v29 }
 0x12c   :  { %7995 = vst [vmem:[#allocation67_spill] sm:$0xff] %v6572_v23 }
 0x12d   :  { %4360 = vmatpush1.bf16.msra.mxu0 %v6535_v9  ;;  %4536 = vmatpush3.bf16.msra.mxu1 %v6537_v48  ;;  %v409_v48 = vld [vmem:[#allocation7 + $0x640] sm:$0xff]  ;;  %v6575_v51 = vrot.slane %v949_v14, %v6414_v40  ;;  %v6587_v14 = vpack.c.bf16 %v321_v59, %v318_v3  ;;  %v323_v59 = vld [vmem:[#allocation7 + $0x390] sm:$0xff] }
 0x12e   :  { %4362 = vmatprep.subr.bf16.mxu0 %v6541_v42  ;;  %4538 = vmatprep.subr.bf16.mxu1 %v6543_v1  ;;  %v314_v1 = vld [vmem:[#allocation7 + $0x348] sm:$0xff]  ;;  %v6583_v52 = vpack.c.bf16 %v412_v13, %v409_v48  ;;  %v6594_v13 = vpack.c.bf16 %v320_v5, %v317_v4 }
 0x12f   :  { %v6581_v32 = vpack.c.bf16 %v314_v1, %v311_v34  ;;  %7998 = vst [vmem:[#allocation70_spill] sm:$0xff] %v6587_v14  ;;  %v326_v1 = vld [vmem:[#allocation7 + $0x3a8] sm:$0xff]  ;;  %v421_v34 = vld [vmem:[#allocation7 + $0x6a0] sm:$0xff] }
 0x130   :  { %7997 = vst [vmem:[#allocation69_spill] sm:$0xff] %v6583_v52  ;;  %7999 = vst [vmem:[#allocation71_spill] sm:$0xff] %v6594_v13  ;;  %v6604_v4 = vpack.c.bf16 %v326_v1, %v323_v59  ;;  %v335_v1 = vld [vmem:[#allocation7 + $0x3f0] sm:$0xff] }
 0x131   :  { %4364 = vmatpush1.bf16.msra.mxu0 %v6550_v36  ;;  %4540 = vmatpush3.bf16.msra.mxu1 %v6552_v37  ;;  %7996 = vst [vmem:[#allocation68_spill] sm:$0xff] %v6581_v32  ;;  %v327_v37 = vld [vmem:[#allocation7 + $0x3b0] sm:$0xff] }
 0x132   :  { %4366 = vmatprep.subr.bf16.mxu0 %v6556_v15  ;;  %4541 = vmatprep.subr.bf16.mxu1 %v7797_v45  ;;  %v6600_v3 = vpack.c.bf16 %v327_v37, %v324_v56  ;;  %8002 = vst [vmem:[#allocation74_spill] sm:$0xff] %v6604_v4  ;;  %v427_v56 = vld [vmem:[#allocation7 + $0x6d0] sm:$0xff] }
 0x134   :  { %1053 = vmatmul.mubr.f32.vlgmr.msra.gmra.mrb[0].mxu0 %v6453_v43  ;;  %1336 = vmatmul.mubr.f32.vlgmr.msra.gmra.mrb[4].mxu1 %v6562_v55  ;;  %v415_v43 = vld [vmem:[#allocation7 + $0x670] sm:$0xff]  ;;  %8001 = vst [vmem:[#allocation73_spill] sm:$0xff] %v6600_v3 }
 0x135   :  { %4368 = vmatpush1.bf16.msra.mxu0 %v6566_v38  ;;  %4543 = vmatpush1.bf16.msra.mxu1 %v6568_v20  ;;  %v6596_v48 = vpack.c.bf16 %v418_v60, %v415_v43  ;;  %v424_v20 = vld [vmem:[#allocation7 + $0x6b8] sm:$0xff]  ;;  %v329_v43 = vld [vmem:[#allocation7 + $0x3c0] sm:$0xff] }
 0x136   :  { %4370 = vmatprep.subr.bf16.mxu0 %v6572_v23  ;;  %4544 = vmatprep.subr.bf16.mxu1 %v7797_v45  ;;  %v6606_v5 = vpack.c.bf16 %v424_v20, %v421_v34  ;;  %v332_v60 = vld [vmem:[#allocation7 + $0x3d8] sm:$0xff]  ;;  %v338_v34 = vld [vmem:[#allocation7 + $0x408] sm:$0xff] }
 0x137   :  { %3822 = vmatprep.mubr.msk.f32.mxu1 %vm985_vm4, %v6575_v51  ;;  %1123 = vmatprep.mubr.f32.mxu0 %v6467_v6  ;;  %8000 = vst [vmem:[#allocation72_spill] sm:$0xff] %v6596_v48  ;;  %v333_v6 = vld [vmem:[#allocation7 + $0x3e0] sm:$0xff]  ;;  %v6614_v59 = vpack.c.bf16 %v332_v60, %v329_v43  ;;  %v6624_v43 = vpack.c.bf16 %v338_v34, %v335_v1  ;;  %v347_v34 = vld [vmem:[#allocation7 + $0x450] sm:$0xff] }
 0x138   :  { %8003 = vst [vmem:[#allocation75_spill] sm:$0xff] %v6606_v5  ;;  %v6610_v37 = vpack.c.bf16 %v333_v6, %v330_v47  ;;  %v6620_v47 = vpack.c.bf16 %v339_v31, %v336_v39  ;;  %v433_v6 = vld [vmem:[#allocation7 + $0x700] sm:$0xff]  ;;  %v6630_v31 = vpack.c.bf16 %v345_v21, %v342_v26  ;;  %v344_v39 = vld [vmem:[#allocation7 + $0x438] sm:$0xff]  ;;  %v350_v26 = vld [vmem:[#allocation7 + $0x468] sm:$0xff] }
 0x139   :  { %4372 = vmatpush1.bf16.msra.mxu0 %v6581_v32  ;;  %4546 = vmatpush1.bf16.msra.mxu1 %v6583_v52  ;;  %v430_v52 = vld [vmem:[#allocation7 + $0x6e8] sm:$0xff]  ;;  %8005 = vst [vmem:[#allocation77_spill] sm:$0xff] %v6614_v59  ;;  %8008 = vst [vmem:[#allocation80_spill] sm:$0xff] %v6624_v43  ;;  %v341_v60 = vld [vmem:[#allocation7 + $0x420] sm:$0xff] }
 0x13a   :  { %4374 = vmatprep.subr.bf16.mxu0 %v6587_v14  ;;  %4547 = vmatprep.subr.bf16.mxu1 %v7797_v45  ;;  %8004 = vst [vmem:[#allocation76_spill] sm:$0xff] %v6610_v37  ;;  %v6616_v20 = vpack.c.bf16 %v430_v52, %v427_v56  ;;  %8007 = vst [vmem:[#allocation79_spill] sm:$0xff] %v6620_v47  ;;  %v439_v56 = vld [vmem:[#allocation7 + $0x730] sm:$0xff]  ;;  %v6634_v1 = vpack.c.bf16 %v344_v39, %v341_v60  ;;  %v353_v39 = vld [vmem:[#allocation7 + $0x480] sm:$0xff] }
 0x13b   :  { %8010 = vst [vmem:[#allocation82_spill] sm:$0xff] %v6630_v31  ;;  %v6644_v60 = vpack.c.bf16 %v350_v26, %v347_v34  ;;  %v359_v26 = vld [vmem:[#allocation7 + $0x4b0] sm:$0xff]  ;;  %v689_v14 = vld [vmem:[#allocation11 + $0x6a0] sm:$0xff]  ;;  %v694_v32 = vld [vmem:[#allocation11 + $0x6c8] sm:$0xff] }
 0x13c   :  { %8006 = vst [vmem:[#allocation78_spill] sm:$0xff] %v6616_v20  ;;  %8011 = vst [vmem:[#allocation83_spill] sm:$0xff] %v6634_v1  ;;  %v708_v23 = vld [vmem:[#allocation11 + $0x738] sm:$0xff] }
 0x13d   :  { %4376 = vmatpush1.bf16.msra.mxu0 %v6594_v13  ;;  %4549 = vmatpush1.bf16.msra.mxu1 %v6596_v48  ;;  %v436_v48 = vld [vmem:[#allocation7 + $0x718] sm:$0xff]  ;;  %8014 = vst [vmem:[#allocation86_spill] sm:$0xff] %v6644_v60  ;;  %v683_v13 = vld [vmem:[#allocation11 + $0x670] sm:$0xff] }
 0x13e   :  { %4378 = vmatprep.subr.bf16.mxu0 %v6600_v3  ;;  %4550 = vmatprep.subr.bf16.mxu1 %v7797_v45  ;;  %v6626_v52 = vpack.c.bf16 %v436_v48, %v433_v6  ;;  %v445_v6 = vld [vmem:[#allocation7 + $0x760] sm:$0xff]  ;;  %v720_v38 = vld [vmem:[#allocation11 + $0x798] sm:$0xff] }
 0x13f   :  { %v629_v3 = vld [vmem:[#allocation11 + $0x4c0] sm:$0xff] }
 0x140   :  { %8009 = vst [vmem:[#allocation81_spill] sm:$0xff] %v6626_v52 }
 0x141   :  { %4380 = vmatpush1.bf16.msra.mxu0 %v6604_v4  ;;  %4552 = vmatpush1.bf16.msra.mxu1 %v6606_v5  ;;  %v442_v5 = vld [vmem:[#allocation7 + $0x748] sm:$0xff] }
 0x142   :  { %4382 = vmatprep.subr.bf16.mxu0 %v6610_v37  ;;  %4553 = vmatprep.subr.bf16.mxu1 %v7797_v45  ;;  %v351_v37 = vld [vmem:[#allocation7 + $0x470] sm:$0xff]  ;;  %v6636_v48 = vpack.c.bf16 %v442_v5, %v439_v56  ;;  %v630_v4 = vld [vmem:[#allocation11 + $0x4c8] sm:$0xff] }
 0x143   :  { %v6640_v21 = vpack.c.bf16 %v351_v37, %v348_v11  ;;  %v356_v37 = vld [vmem:[#allocation7 + $0x498] sm:$0xff]  ;;  %v451_v56 = vld [vmem:[#allocation7 + $0x790] sm:$0xff] }
 0x144   :  { %8012 = vst [vmem:[#allocation84_spill] sm:$0xff] %v6636_v48  ;;  %v6654_v34 = vpack.c.bf16 %v356_v37, %v353_v39  ;;  %v365_v37 = vld [vmem:[#allocation7 + $0x4e0] sm:$0xff] }
 0x145   :  { %4384 = vmatpush1.bf16.msra.mxu0 %v6614_v59  ;;  %4555 = vmatpush1.bf16.msra.mxu1 %v6616_v20  ;;  %8013 = vst [vmem:[#allocation85_spill] sm:$0xff] %v6640_v21  ;;  %v448_v20 = vld [vmem:[#allocation7 + $0x778] sm:$0xff]  ;;  %v357_v59 = vld [vmem:[#allocation7 + $0x4a0] sm:$0xff] }
 0x146   :  { %4386 = vmatprep.subr.bf16.mxu0 %v6620_v47  ;;  %4556 = vmatprep.subr.bf16.mxu1 %v7797_v45  ;;  %v354_v47 = vld [vmem:[#allocation7 + $0x488] sm:$0xff]  ;;  %v6646_v5 = vpack.c.bf16 %v448_v20, %v445_v6  ;;  %8017 = vst [vmem:[#allocation89_spill] sm:$0xff] %v6654_v34  ;;  %v457_v6 = vld [vmem:[#allocation7 + $0x7c0] sm:$0xff] }
 0x147   :  { %v6650_v11 = vpack.c.bf16 %v357_v59, %v354_v47  ;;  %v362_v47 = vld [vmem:[#allocation7 + $0x4c8] sm:$0xff] }
 0x148   :  { %8015 = vst [vmem:[#allocation87_spill] sm:$0xff] %v6646_v5  ;;  %v6664_v39 = vpack.c.bf16 %v362_v47, %v359_v26  ;;  %v371_v47 = vld [vmem:[#allocation7 + $0x510] sm:$0xff] }
 0x149   :  { %4388 = vmatpush1.bf16.msra.mxu0 %v6624_v43  ;;  %4558 = vmatpush1.bf16.msra.mxu1 %v6626_v52  ;;  %8016 = vst [vmem:[#allocation88_spill] sm:$0xff] %v6650_v11  ;;  %v454_v52 = vld [vmem:[#allocation7 + $0x7a8] sm:$0xff]  ;;  %v363_v43 = vld [vmem:[#allocation7 + $0x4d0] sm:$0xff] }
 0x14a   :  { %4390 = vmatprep.subr.bf16.mxu0 %v6630_v31  ;;  %4559 = vmatprep.subr.bf16.mxu1 %v7797_v45  ;;  %v360_v31 = vld [vmem:[#allocation7 + $0x4b8] sm:$0xff]  ;;  %v6656_v20 = vpack.c.bf16 %v454_v52, %v451_v56  ;;  %8020 = vst [vmem:[#allocation92_spill] sm:$0xff] %v6664_v39  ;;  %v463_v56 = vld [vmem:[#allocation7 + $0x7f0] sm:$0xff] }
 0x14b   :  { %v6660_v59 = vpack.c.bf16 %v363_v43, %v360_v31  ;;  %v368_v31 = vld [vmem:[#allocation7 + $0x4f8] sm:$0xff] }
 0x14c   :  { %8018 = vst [vmem:[#allocation90_spill] sm:$0xff] %v6656_v20  ;;  %v6674_v26 = vpack.c.bf16 %v368_v31, %v365_v37 }
 0x14d   :  { %4392 = vmatpush1.bf16.msra.mxu0 %v6634_v1  ;;  %4561 = vmatpush1.bf16.msra.mxu1 %v6636_v48  ;;  %8019 = vst [vmem:[#allocation91_spill] sm:$0xff] %v6660_v59  ;;  %v460_v48 = vld [vmem:[#allocation7 + $0x7d8] sm:$0xff]  ;;  %v369_v1 = vld [vmem:[#allocation7 + $0x500] sm:$0xff] }
 0x14e   :  { %4394 = vmatprep.subr.bf16.mxu0 %v6640_v21  ;;  %4562 = vmatprep.subr.bf16.mxu1 %v7797_v45  ;;  %v366_v21 = vld [vmem:[#allocation7 + $0x4e8] sm:$0xff]  ;;  %v6666_v52 = vpack.c.bf16 %v460_v48, %v457_v6  ;;  %8023 = vst [vmem:[#allocation95_spill] sm:$0xff] %v6674_v26  ;;  %v469_v6 = vld [vmem:[#allocation7 + $0x820] sm:$0xff] }
 0x14f   :  { %v6670_v43 = vpack.c.bf16 %v369_v1, %v366_v21  ;;  %v374_v21 = vld [vmem:[#allocation7 + $0x528] sm:$0xff] }
 0x150   :  { %8021 = vst [vmem:[#allocation93_spill] sm:$0xff] %v6666_v52  ;;  %v6684_v37 = vpack.c.bf16 %v374_v21, %v371_v47  ;;  %v390_v21 = vld [vmem:[#allocation7 + $0x5a8] sm:$0xff] }
 0x151   :  { %4396 = vmatpush1.bf16.msra.mxu0 %v6644_v60  ;;  %4564 = vmatpush1.bf16.msra.mxu1 %v6646_v5  ;;  %8022 = vst [vmem:[#allocation94_spill] sm:$0xff] %v6670_v43  ;;  %v466_v5 = vld [vmem:[#allocation7 + $0x808] sm:$0xff]  ;;  %v375_v60 = vld [vmem:[#allocation7 + $0x530] sm:$0xff] }
 0x152   :  { %4398 = vmatprep.subr.bf16.mxu0 %v6650_v11  ;;  %4565 = vmatprep.subr.bf16.mxu1 %v7797_v45  ;;  %v372_v11 = vld [vmem:[#allocation7 + $0x518] sm:$0xff]  ;;  %v6676_v48 = vpack.c.bf16 %v466_v5, %v463_v56  ;;  %8026 = vst [vmem:[#allocation98_spill] sm:$0xff] %v6684_v37 }
 0x153   :  { %v6680_v1 = vpack.c.bf16 %v375_v60, %v372_v11  ;;  %v377_v60 = vld [vmem:[#allocation7 + $0x540] sm:$0xff]  ;;  %v380_v11 = vld [vmem:[#allocation7 + $0x558] sm:$0xff] }
 0x154   :  { %8024 = vst [vmem:[#allocation96_spill] sm:$0xff] %v6676_v48  ;;  %v384_v56 = vld [vmem:[#allocation7 + $0x578] sm:$0xff] }
 0x155   :  { %4400 = vmatpush1.bf16.msra.mxu0 %v6654_v34  ;;  %4567 = vmatpush1.bf16.msra.mxu1 %v6656_v20  ;;  %8025 = vst [vmem:[#allocation97_spill] sm:$0xff] %v6680_v1  ;;  %v472_v20 = vld [vmem:[#allocation7 + $0x838] sm:$0xff]  ;;  %v381_v34 = vld [vmem:[#allocation7 + $0x560] sm:$0xff] }
 0x156   :  { %4402 = vmatprep.subr.bf16.mxu0 %v6660_v59  ;;  %4568 = vmatprep.subr.bf16.mxu1 %v7797_v45  ;;  %v378_v59 = vld [vmem:[#allocation7 + $0x548] sm:$0xff]  ;;  %v6686_v5 = vpack.c.bf16 %v472_v20, %v469_v6  ;;  %v6698_v20 = vpack.c.bf16 %v380_v11, %v377_v60  ;;  %v393_v6 = vld [vmem:[#allocation7 + $0x5c0] sm:$0xff]  ;;  %v392_v11 = vld [vmem:[#allocation7 + $0x5b8] sm:$0xff] }
 0x157   :  { %v6690_v31 = vpack.c.bf16 %v381_v34, %v378_v59  ;;  %v383_v34 = vld [vmem:[#allocation7 + $0x570] sm:$0xff]  ;;  %v386_v59 = vld [vmem:[#allocation7 + $0x588] sm:$0xff]  ;;  %v389_v60 = vld [vmem:[#allocation7 + $0x5a0] sm:$0xff] }
 0x158   :  { %8027 = vst [vmem:[#allocation99_spill] sm:$0xff] %v6686_v5  ;;  %8029 = vst [vmem:[#allocation101_spill] sm:$0xff] %v6698_v20 }
 0x159   :  { %4404 = vmatpush1.bf16.msra.mxu0 %v6664_v39  ;;  %4570 = vmatpush1.bf16.msra.mxu1 %v6666_v52  ;;  %8028 = vst [vmem:[#allocation100_spill] sm:$0xff] %v6690_v31  ;;  %v387_v52 = vld [vmem:[#allocation7 + $0x590] sm:$0xff]  ;;  %v538_v39 = vld [vmem:[#allocation11 + $0x1e8] sm:$0xff] }
 0x15a   :  { %4406 = vmatprep.subr.bf16.mxu0 %v6670_v43  ;;  %4571 = vmatprep.subr.bf16.mxu1 %v7797_v45  ;;  %v6694_v43 = vrot.slane %v6546_v29, %v6414_v40  ;;  %v6701_v47 = vpack.c.bf16 %v387_v52, %v384_v56  ;;  %v6705_v29 = vpack.c.bf16 %v386_v59, %v383_v34  ;;  %v402_v34 = vld [vmem:[#allocation7 + $0x608] sm:$0xff]  ;;  %v405_v59 = vld [vmem:[#allocation7 + $0x620] sm:$0xff] }
 0x15b   :  { %v6711_v52 = vpack.c.bf16 %v392_v11, %v389_v60  ;;  %v408_v60 = vld [vmem:[#allocation7 + $0x638] sm:$0xff]  ;;  %v411_v11 = vld [vmem:[#allocation7 + $0x650] sm:$0xff] }
 0x15c   :  { %8030 = vst [vmem:[#allocation102_spill] sm:$0xff] %v6701_v47  ;;  %8031 = vst [vmem:[#allocation103_spill] sm:$0xff] %v6705_v29 }
 0x15d   :  { %4408 = vmatpush1.bf16.msra.mxu0 %v6674_v26  ;;  %4573 = vmatpush1.bf16.msra.mxu1 %v6676_v48  ;;  %v399_v48 = vld [vmem:[#allocation7 + $0x5f0] sm:$0xff]  ;;  %8033 = vst [vmem:[#allocation105_spill] sm:$0xff] %v6711_v52  ;;  %v534_v26 = vld [vmem:[#allocation11 + $0x1c8] sm:$0xff] }
 0x15e   :  { %4410 = vmatprep.subr.bf16.mxu0 %v6680_v1  ;;  %4574 = vmatprep.subr.bf16.mxu1 %v7797_v45  ;;  %v6708_v45 = vpack.c.bf16 %v393_v6, %v390_v21  ;;  %v6720_v6 = vpack.c.bf16 %v405_v59, %v402_v34  ;;  %v416_v59 = vld [vmem:[#allocation7 + $0x678] sm:$0xff] }
 0x15f   :  { %v532_v1 = vld [vmem:[#allocation11 + $0x1b8] sm:$0xff] }
 0x160   :  { %8032 = vst [vmem:[#allocation104_spill] sm:$0xff] %v6708_v45  ;;  %8036 = vst [vmem:[#allocation108_spill] sm:$0xff] %v6720_v6 }
 0x161   :  { %4412 = vmatpush1.bf16.msra.mxu0 %v6684_v37  ;;  %4576 = vmatpush1.bf16.msra.mxu1 %v6686_v5  ;;  %v396_v5 = vld [vmem:[#allocation7 + $0x5d8] sm:$0xff] }
 0x162   :  { %4414 = vmatprep.subr.bf16.mxu0 %v6690_v31  ;;  %v6714_v56 = vpack.c.bf16 %v399_v48, %v396_v5  ;;  %v395_v31 = vld [vmem:[#allocation7 + $0x5d0] sm:$0xff]  ;;  %v6726_v5 = vpack.c.bf16 %v411_v11, %v408_v60  ;;  %v420_v60 = vld [vmem:[#allocation7 + $0x698] sm:$0xff] }
 0x163   :  { %v423_v11 = vld [vmem:[#allocation7 + $0x6b0] sm:$0xff] }
 0x164   :  { %1406 = vmatmul.mubr.f32.vlgmr.msra.gmra.mrb[6].mxu1 %v6694_v43  ;;  %8034 = vst [vmem:[#allocation106_spill] sm:$0xff] %v6714_v56  ;;  %8038 = vst [vmem:[#allocation110_spill] sm:$0xff] %v6726_v5  ;;  %v516_v37 = vld [vmem:[#allocation11 + $0x138] sm:$0xff] }
 0x165   :  { %4416 = vmatpush1.bf16.msra.mxu0 %v6698_v20  ;;  %v398_v20 = vld [vmem:[#allocation7 + $0x5e8] sm:$0xff] }
 0x166   :  { %4418 = vmatprep.subr.bf16.mxu0 %v6701_v47  ;;  %v6717_v21 = vpack.c.bf16 %v398_v20, %v395_v31  ;;  %v401_v47 = vld [vmem:[#allocation7 + $0x600] sm:$0xff]  ;;  %v414_v31 = vld [vmem:[#allocation7 + $0x668] sm:$0xff] }
 0x167   :  { %v417_v20 = vld [vmem:[#allocation7 + $0x680] sm:$0xff] }
 0x168   :  { %8035 = vst [vmem:[#allocation107_spill] sm:$0xff] %v6717_v21 }
 0x169   :  { %4420 = vmatpush1.bf16.msra.mxu0 %v6705_v29  ;;  %v404_v29 = vld [vmem:[#allocation7 + $0x618] sm:$0xff] }
 0x16a   :  { %4422 = vmatprep.subr.bf16.mxu0 %v6708_v45  ;;  %v6723_v48 = vpack.c.bf16 %v404_v29, %v401_v47  ;;  %v407_v45 = vld [vmem:[#allocation7 + $0x630] sm:$0xff]  ;;  %v6735_v47 = vpack.c.bf16 %v417_v20, %v414_v31  ;;  %v413_v29 = vld [vmem:[#allocation7 + $0x660] sm:$0xff] }
 0x16c   :  { %8037 = vst [vmem:[#allocation109_spill] sm:$0xff] %v6723_v48  ;;  %8040 = vst [vmem:[#allocation112_spill] sm:$0xff] %v6735_v47 }
 0x16d   :  { %4424 = vmatpush1.bf16.msra.mxu0 %v6711_v52  ;;  %v410_v52 = vld [vmem:[#allocation7 + $0x648] sm:$0xff] }
 0x16e   :  { %4426 = vmatprep.subr.bf16.mxu0 %v6714_v56  ;;  %v6730_v34 = vpack.c.bf16 %v410_v52, %v407_v45  ;;  %v419_v45 = vld [vmem:[#allocation7 + $0x690] sm:$0xff]  ;;  %v422_v52 = vld [vmem:[#allocation7 + $0x6a8] sm:$0xff] }
 0x16f   :  { %v6744_v31 = vpack.c.bf16 %v422_v52, %v419_v45  ;;  %v438_v45 = vld [vmem:[#allocation7 + $0x728] sm:$0xff]  ;;  %v441_v52 = vld [vmem:[#allocation7 + $0x740] sm:$0xff] }
 0x170   :  { %8039 = vst [vmem:[#allocation111_spill] sm:$0xff] %v6730_v34  ;;  %v514_v56 = vld [vmem:[#allocation11 + $0x128] sm:$0xff] }
 0x171   :  { %4428 = vmatpush1.bf16.msra.mxu0 %v6717_v21  ;;  %8043 = vst [vmem:[#allocation115_spill] sm:$0xff] %v6744_v31  ;;  %v507_v21 = vld [vmem:[#allocation11 + $0xf0] sm:$0xff] }
 0x172   :  { %4430 = vmatprep.subr.bf16.mxu0 %v6720_v6  ;;  %v6738_v6 = vpack.c.bf16 %v416_v59, %v413_v29  ;;  %v432_v29 = vld [vmem:[#allocation7 + $0x6f8] sm:$0xff]  ;;  %v435_v59 = vld [vmem:[#allocation7 + $0x710] sm:$0xff] }
 0x174   :  { %1124 = vmatmul.mubr.f32.vlgmr.msra.gmra.mrb[0].mxu0 %v6562_v55  ;;  %8041 = vst [vmem:[#allocation113_spill] sm:$0xff] %v6738_v6  ;;  %v6741_v55 = vpack.c.bf16 %v423_v11, %v420_v60  ;;  %v6753_v11 = vpack.c.bf16 %v435_v59, %v432_v29 }
 0x175   :  { %4432 = vmatpush1.bf16.msra.mxu0 %v6723_v48  ;;  %3821 = vmatprep.mubr.msk.f32.mxu0 %vm985_vm4, %v6575_v51  ;;  %v426_v48 = vld [vmem:[#allocation7 + $0x6c8] sm:$0xff]  ;;  %v429_v51 = vld [vmem:[#allocation7 + $0x6e0] sm:$0xff] }
 0x176   :  { %4434 = vmatprep.subr.bf16.mxu0 %v6726_v5  ;;  %8042 = vst [vmem:[#allocation114_spill] sm:$0xff] %v6741_v55  ;;  %v6747_v20 = vpack.c.bf16 %v429_v51, %v426_v48  ;;  %v425_v5 = vld [vmem:[#allocation7 + $0x6c0] sm:$0xff]  ;;  %8046 = vst [vmem:[#allocation118_spill] sm:$0xff] %v6753_v11  ;;  %v6759_v51 = vpack.c.bf16 %v441_v52, %v438_v45 }
 0x178   :  { %8044 = vst [vmem:[#allocation116_spill] sm:$0xff] %v6747_v20  ;;  %8048 = vst [vmem:[#allocation120_spill] sm:$0xff] %v6759_v51 }
 0x179   :  { %4436 = vmatpush1.bf16.msra.mxu0 %v6730_v34  ;;  %v428_v34 = vld [vmem:[#allocation7 + $0x6d8] sm:$0xff] }
 0x17a   :  { %4438 = vmatprep.subr.bf16.mxu0 %v6735_v47  ;;  %v6750_v60 = vpack.c.bf16 %v428_v34, %v425_v5  ;;  %v431_v47 = vld [vmem:[#allocation7 + $0x6f0] sm:$0xff]  ;;  %v444_v5 = vld [vmem:[#allocation7 + $0x758] sm:$0xff] }
 0x17b   :  { %v447_v34 = vld [vmem:[#allocation7 + $0x770] sm:$0xff] }
 0x17c   :  { %8045 = vst [vmem:[#allocation117_spill] sm:$0xff] %v6750_v60  ;;  %v6765_v59 = vpack.c.bf16 %v447_v34, %v444_v5 }
 0x17d   :  { %4440 = vmatpush1.bf16.msra.mxu0 %v6738_v6  ;;  %v434_v6 = vld [vmem:[#allocation7 + $0x708] sm:$0xff] }
 0x17e   :  { %4442 = vmatprep.subr.bf16.mxu0 %v6741_v55  ;;  %v6756_v48 = vpack.c.bf16 %v434_v6, %v431_v47  ;;  %v437_v55 = vld [vmem:[#allocation7 + $0x720] sm:$0xff]  ;;  %8050 = vst [vmem:[#allocation122_spill] sm:$0xff] %v6765_v59  ;;  %v450_v6 = vld [vmem:[#allocation7 + $0x788] sm:$0xff] }
 0x17f   :  { %v453_v47 = vld [vmem:[#allocation7 + $0x7a0] sm:$0xff] }
 0x180   :  { %8047 = vst [vmem:[#allocation119_spill] sm:$0xff] %v6756_v48  ;;  %v6771_v52 = vpack.c.bf16 %v453_v47, %v450_v6 }
 0x181   :  { %4444 = vmatpush1.bf16.msra.mxu0 %v6744_v31  ;;  %v440_v31 = vld [vmem:[#allocation7 + $0x738] sm:$0xff] }
 0x182   :  { %4446 = vmatprep.subr.bf16.mxu0 %v6747_v20  ;;  %v6762_v29 = vpack.c.bf16 %v440_v31, %v437_v55  ;;  %v443_v20 = vld [vmem:[#allocation7 + $0x750] sm:$0xff]  ;;  %8052 = vst [vmem:[#allocation124_spill] sm:$0xff] %v6771_v52  ;;  %v456_v55 = vld [vmem:[#allocation7 + $0x7b8] sm:$0xff] }
 0x183   :  { %v459_v31 = vld [vmem:[#allocation7 + $0x7d0] sm:$0xff] }
 0x184   :  { %8049 = vst [vmem:[#allocation121_spill] sm:$0xff] %v6762_v29  ;;  %v6777_v34 = vpack.c.bf16 %v459_v31, %v456_v55 }
 0x185   :  { %4448 = vmatpush1.bf16.msra.mxu0 %v6750_v60  ;;  %v446_v60 = vld [vmem:[#allocation7 + $0x768] sm:$0xff] }
 0x186   :  { %4450 = vmatprep.subr.bf16.mxu0 %v6753_v11  ;;  %v6768_v45 = vpack.c.bf16 %v446_v60, %v443_v20  ;;  %v449_v11 = vld [vmem:[#allocation7 + $0x780] sm:$0xff]  ;;  %8054 = vst [vmem:[#allocation126_spill] sm:$0xff] %v6777_v34  ;;  %v462_v20 = vld [vmem:[#allocation7 + $0x7e8] sm:$0xff] }
 0x187   :  { %v465_v60 = vld [vmem:[#allocation7 + $0x800] sm:$0xff] }
 0x188   :  { %8051 = vst [vmem:[#allocation123_spill] sm:$0xff] %v6768_v45  ;;  %v6783_v47 = vpack.c.bf16 %v465_v60, %v462_v20  ;;  %v484_v20 = vld [vmem:[#allocation11 + $0x38] sm:$0xff]  ;;  %v486_v60 = vld [vmem:[#allocation11 + $0x48] sm:$0xff] }
 0x189   :  { %4452 = vmatpush1.bf16.msra.mxu0 %v6756_v48  ;;  %v452_v48 = vld [vmem:[#allocation7 + $0x798] sm:$0xff] }
 0x18a   :  { %4454 = vmatprep.subr.bf16.mxu0 %v6759_v51  ;;  %v6774_v5 = vpack.c.bf16 %v452_v48, %v449_v11  ;;  %v455_v51 = vld [vmem:[#allocation7 + $0x7b0] sm:$0xff]  ;;  %8056 = vst [vmem:[#allocation128_spill] sm:$0xff] %v6783_v47  ;;  %v468_v11 = vld [vmem:[#allocation7 + $0x818] sm:$0xff] }
 0x18b   :  { %v471_v48 = vld [vmem:[#allocation7 + $0x830] sm:$0xff] }
 0x18c   :  { %8053 = vst [vmem:[#allocation125_spill] sm:$0xff] %v6774_v5  ;;  %v6789_v31 = vpack.c.bf16 %v471_v48, %v468_v11  ;;  %v477_v11 = vld [vmem:[#allocation11] sm:$0xff]  ;;  %v483_v48 = vld [vmem:[#allocation11 + $0x30] sm:$0xff] }
 0x18d   :  { %4456 = vmatpush1.bf16.msra.mxu0 %v6762_v29  ;;  %v458_v29 = vld [vmem:[#allocation7 + $0x7c8] sm:$0xff] }
 0x18e   :  { %4458 = vmatprep.subr.bf16.mxu0 %v6765_v59  ;;  %v6780_v6 = vpack.c.bf16 %v458_v29, %v455_v51  ;;  %v461_v59 = vld [vmem:[#allocation7 + $0x7e0] sm:$0xff]  ;;  %8058 = vst [vmem:[#allocation130_spill] sm:$0xff] %v6789_v31 }
 0x18f   :  { %v478_v29 = vld [vmem:[#allocation11 + $0x8] sm:$0xff] }
 0x190   :  { %8055 = vst [vmem:[#allocation127_spill] sm:$0xff] %v6780_v6 }
 0x191   :  { %4460 = vmatpush1.bf16.msra.mxu0 %v6768_v45  ;;  %v464_v45 = vld [vmem:[#allocation7 + $0x7f8] sm:$0xff] }
 0x192   :  { %4462 = vmatprep.subr.bf16.mxu0 %v6771_v52  ;;  %v6786_v55 = vpack.c.bf16 %v464_v45, %v461_v59  ;;  %v467_v52 = vld [vmem:[#allocation7 + $0x810] sm:$0xff]  ;;  %v6797_v45 = vpack.c.bf16 %v484_v20, %v478_v29 }
 0x193   :  { %v480_v59 = vld [vmem:[#allocation11 + $0x18] sm:$0xff] }
 0x194   :  { %8057 = vst [vmem:[#allocation129_spill] sm:$0xff] %v6786_v55  ;;  %8060 = vst [vmem:[#allocation132_spill] sm:$0xff] %v6797_v45  ;;  %4578 = vmatprep.subr.bf16.mxu1 %v6797_v45  ;;  %v508_v45 = vld [vmem:[#allocation11 + $0xf8] sm:$0xff] }
 0x195   :  { %4464 = vmatpush1.bf16.msra.mxu0 %v6774_v5  ;;  %v470_v5 = vld [vmem:[#allocation7 + $0x828] sm:$0xff] }
 0x196   :  { %4466 = vmatprep.subr.bf16.mxu0 %v6777_v34  ;;  %v6792_v51 = vpack.c.bf16 %v470_v5, %v467_v52  ;;  %v479_v52 = vld [vmem:[#allocation11 + $0x10] sm:$0xff]  ;;  %v485_v5 = vld [vmem:[#allocation11 + $0x40] sm:$0xff]  ;;  %v498_v34 = vld [vmem:[#allocation11 + $0xa8] sm:$0xff] }
 0x198   :  { %8059 = vst [vmem:[#allocation131_spill] sm:$0xff] %v6792_v51 }
 0x199   :  { %4468 = vmatpush1.bf16.msra.mxu0 %v6780_v6  ;;  %v6801_v6 = vpack.c.bf16 %v483_v48, %v477_v11  ;;  %v491_v11 = vld [vmem:[#allocation11 + $0x70] sm:$0xff] }
 0x19a   :  { %4470 = vmatprep.subr.bf16.mxu0 %v6783_v47  ;;  %v6799_v47 = vpack.c.bf16 %v486_v60, %v480_v59  ;;  %v489_v59 = vld [vmem:[#allocation11 + $0x60] sm:$0xff]  ;;  %v495_v60 = vld [vmem:[#allocation11 + $0x90] sm:$0xff] }
 0x19b   :  { %8062 = vst [vmem:[#allocation134_spill] sm:$0xff] %v6801_v6  ;;  %4580 = vmatpush1.bf16.msra.mxu1 %v6801_v6  ;;  %v6813_v48 = vpack.c.bf16 %v495_v60, %v489_v59  ;;  %v509_v59 = vld [vmem:[#allocation11 + $0x100] sm:$0xff] }
 0x19c   :  { %8061 = vst [vmem:[#allocation133_spill] sm:$0xff] %v6799_v47 }
 0x19d   :  { %4472 = vmatpush1.bf16.msra.mxu0 %v6786_v55  ;;  %v490_v55 = vld [vmem:[#allocation11 + $0x68] sm:$0xff]  ;;  %8066 = vst [vmem:[#allocation138_spill] sm:$0xff] %v6813_v48 }
 0x19e   :  { %4474 = vmatprep.subr.bf16.mxu0 %v6789_v31  ;;  %v492_v31 = vld [vmem:[#allocation11 + $0x78] sm:$0xff] }
 0x19f   :  { %v6810_v20 = vpack.c.bf16 %v498_v34, %v492_v31  ;;  %v504_v34 = vld [vmem:[#allocation11 + $0xd8] sm:$0xff]  ;;  %v510_v31 = vld [vmem:[#allocation11 + $0x108] sm:$0xff] }
 0x1a0   :  { %v6821_v6 = vpack.c.bf16 %v510_v31, %v504_v34  ;;  %v519_v34 = vld [vmem:[#allocation11 + $0x150] sm:$0xff] }
 0x1a1   :  { %4476 = vmatpush1.bf16.msra.mxu0 %v6792_v51  ;;  %v6804_v51 = vpack.c.bf16 %v485_v5, %v479_v52  ;;  %8065 = vst [vmem:[#allocation137_spill] sm:$0xff] %v6810_v20  ;;  %v497_v52 = vld [vmem:[#allocation11 + $0xa0] sm:$0xff]  ;;  %v502_v5 = vld [vmem:[#allocation11 + $0xc8] sm:$0xff] }
 0x1a2   :  { %4674 = vmatprep.subr.bf16.mxu0 %v6799_v47  ;;  %v6817_v47 = vpack.c.bf16 %v497_v52, %v491_v11  ;;  %8069 = vst [vmem:[#allocation141_spill] sm:$0xff] %v6821_v6  ;;  %v522_v52 = vld [vmem:[#allocation11 + $0x168] sm:$0xff] }
 0x1a3   :  { %8063 = vst [vmem:[#allocation135_spill] sm:$0xff] %v6804_v51  ;;  %v6833_v31 = vpack.c.bf16 %v522_v52, %v516_v37  ;;  %v527_v52 = vld [vmem:[#allocation11 + $0x190] sm:$0xff] }
 0x1a4   :  { %1195 = vmatmul.mubr.f32.vlgmr.msra.gmra.mrb[0].mxu0 %v6694_v43  ;;  %v496_v43 = vld [vmem:[#allocation11 + $0x98] sm:$0xff]  ;;  %8067 = vst [vmem:[#allocation139_spill] sm:$0xff] %v6817_v47 }
 0x1a5   :  { %v6808_v29 = vpack.c.bf16 %v496_v43, %v490_v55  ;;  %4676 = vmatpush1.bf16.msra.mxu0 %v6804_v51  ;;  %v6819_v55 = vpack.c.bf16 %v508_v45, %v502_v5  ;;  %v501_v43 = vld [vmem:[#allocation11 + $0xc0] sm:$0xff]  ;;  %v503_v51 = vld [vmem:[#allocation11 + $0xd0] sm:$0xff]  ;;  %8073 = vst [vmem:[#allocation145_spill] sm:$0xff] %v6833_v31 }
 0x1a6   :  { %4678 = vmatprep.subr.bf16.mxu0 %v6810_v20  ;;  %v6824_v60 = vpack.c.bf16 %v507_v21, %v501_v43  ;;  %v6828_v45 = vpack.c.bf16 %v509_v59, %v503_v51  ;;  %v513_v5 = vld [vmem:[#allocation11 + $0x120] sm:$0xff]  ;;  %v515_v21 = vld [vmem:[#allocation11 + $0x130] sm:$0xff] }
 0x1a7   :  { %8064 = vst [vmem:[#allocation136_spill] sm:$0xff] %v6808_v29  ;;  %4582 = vmatprep.subr.bf16.mxu1 %v6808_v29  ;;  %8068 = vst [vmem:[#allocation140_spill] sm:$0xff] %v6819_v55  ;;  %v520_v29 = vld [vmem:[#allocation11 + $0x158] sm:$0xff]  ;;  %v521_v43 = vld [vmem:[#allocation11 + $0x160] sm:$0xff] }
 0x1a8   :  { %4584 = vmatpush1.bf16.msra.mxu1 %v6813_v48  ;;  %8070 = vst [vmem:[#allocation142_spill] sm:$0xff] %v6824_v60  ;;  %8071 = vst [vmem:[#allocation143_spill] sm:$0xff] %v6828_v45  ;;  %v6830_v11 = vpack.c.bf16 %v520_v29, %v514_v56  ;;  %v526_v48 = vld [vmem:[#allocation11 + $0x188] sm:$0xff]  ;;  %v6838_v56 = vpack.c.bf16 %v519_v34, %v513_v5  ;;  %v6842_v51 = vpack.c.bf16 %v521_v43, %v515_v21  ;;  %v525_v29 = vld [vmem:[#allocation11 + $0x180] sm:$0xff] }
 0x1a9   :  { %4680 = vmatpush1.bf16.msra.mxu0 %v6817_v47  ;;  %4586 = vmatprep.subr.bf16.mxu1 %v6819_v55  ;;  %v528_v47 = vld [vmem:[#allocation11 + $0x198] sm:$0xff]  ;;  %v6844_v37 = vpack.c.bf16 %v532_v1, %v526_v48  ;;  %v531_v59 = vld [vmem:[#allocation11 + $0x1b0] sm:$0xff]  ;;  %v546_v34 = vld [vmem:[#allocation11 + $0x228] sm:$0xff] }
 0x1aa   :  { %8072 = vst [vmem:[#allocation144_spill] sm:$0xff] %v6830_v11  ;;  %4682 = vmatprep.subr.bf16.mxu0 %v6821_v6  ;;  %8074 = vst [vmem:[#allocation146_spill] sm:$0xff] %v6838_v56  ;;  %v6847_v6 = vpack.c.bf16 %v534_v26, %v528_v47  ;;  %v540_v5 = vld [vmem:[#allocation11 + $0x1f8] sm:$0xff]  ;;  %v537_v21 = vld [vmem:[#allocation11 + $0x1e0] sm:$0xff] }
 0x1ab   :  { %8075 = vst [vmem:[#allocation147_spill] sm:$0xff] %v6842_v51  ;;  %8076 = vst [vmem:[#allocation148_spill] sm:$0xff] %v6844_v37  ;;  %v543_v26 = vld [vmem:[#allocation11 + $0x210] sm:$0xff]  ;;  %v6859_v43 = vpack.c.bf16 %v546_v34, %v540_v5 }
 0x1ac   :  { %4588 = vmatpush1.bf16.msra.mxu1 %v6824_v60  ;;  %8077 = vst [vmem:[#allocation149_spill] sm:$0xff] %v6847_v6  ;;  %v544_v60 = vld [vmem:[#allocation11 + $0x218] sm:$0xff]  ;;  %v539_v47 = vld [vmem:[#allocation11 + $0x1f0] sm:$0xff] }
 0x1ad   :  { %4684 = vmatpush1.bf16.msra.mxu0 %v6828_v45  ;;  %4590 = vmatprep.subr.bf16.mxu1 %v6830_v11  ;;  %v6850_v45 = vpack.c.bf16 %v531_v59, %v525_v29  ;;  %v6856_v48 = vpack.c.bf16 %v544_v60, %v538_v39  ;;  %8081 = vst [vmem:[#allocation153_spill] sm:$0xff] %v6859_v43  ;;  %v545_v11 = vld [vmem:[#allocation11 + $0x220] sm:$0xff]  ;;  %v552_v29 = vld [vmem:[#allocation11 + $0x258] sm:$0xff]  ;;  %v558_v59 = vld [vmem:[#allocation11 + $0x288] sm:$0xff] }
 0x1ae   :  { %4686 = vmatprep.subr.bf16.mxu0 %v6833_v31  ;;  %v550_v31 = vld [vmem:[#allocation11 + $0x248] sm:$0xff]  ;;  %v6866_v39 = vpack.c.bf16 %v545_v11, %v539_v47  ;;  %v551_v5 = vld [vmem:[#allocation11 + $0x250] sm:$0xff]  ;;  %v6871_v34 = vpack.c.bf16 %v558_v59, %v552_v29 }
 0x1af   :  { %8078 = vst [vmem:[#allocation150_spill] sm:$0xff] %v6850_v45  ;;  %8080 = vst [vmem:[#allocation152_spill] sm:$0xff] %v6856_v48  ;;  %v567_v47 = vld [vmem:[#allocation11 + $0x2d0] sm:$0xff] }
 0x1b0   :  { %4592 = vmatpush1.bf16.msra.mxu1 %v6838_v56  ;;  %v556_v56 = vld [vmem:[#allocation11 + $0x278] sm:$0xff]  ;;  %8083 = vst [vmem:[#allocation155_spill] sm:$0xff] %v6866_v39  ;;  %8085 = vst [vmem:[#allocation157_spill] sm:$0xff] %v6871_v34  ;;  %v563_v29 = vld [vmem:[#allocation11 + $0x2b0] sm:$0xff] }
 0x1b1   :  { %4688 = vmatpush1.bf16.msra.mxu0 %v6842_v51  ;;  %4594 = vmatprep.subr.bf16.mxu1 %v6844_v37  ;;  %v6862_v51 = vpack.c.bf16 %v543_v26, %v537_v21  ;;  %v6868_v60 = vpack.c.bf16 %v556_v56, %v550_v31  ;;  %v557_v37 = vld [vmem:[#allocation11 + $0x280] sm:$0xff]  ;;  %v564_v21 = vld [vmem:[#allocation11 + $0x2b8] sm:$0xff]  ;;  %v570_v26 = vld [vmem:[#allocation11 + $0x2e8] sm:$0xff] }
 0x1b2   :  { %4690 = vmatprep.subr.bf16.mxu0 %v6847_v6  ;;  %v562_v6 = vld [vmem:[#allocation11 + $0x2a8] sm:$0xff]  ;;  %v6878_v11 = vpack.c.bf16 %v557_v37, %v551_v5  ;;  %v561_v56 = vld [vmem:[#allocation11 + $0x2a0] sm:$0xff]  ;;  %v6883_v59 = vpack.c.bf16 %v570_v26, %v564_v21  ;;  %v579_v5 = vld [vmem:[#allocation11 + $0x330] sm:$0xff] }
 0x1b3   :  { %8082 = vst [vmem:[#allocation154_spill] sm:$0xff] %v6862_v51  ;;  %8084 = vst [vmem:[#allocation156_spill] sm:$0xff] %v6868_v60  ;;  %v573_v37 = vld [vmem:[#allocation11 + $0x300] sm:$0xff]  ;;  %v575_v21 = vld [vmem:[#allocation11 + $0x310] sm:$0xff] }
 0x1b4   :  { %4596 = vmatpush1.bf16.msra.mxu1 %v6850_v45  ;;  %v568_v45 = vld [vmem:[#allocation11 + $0x2d8] sm:$0xff]  ;;  %8087 = vst [vmem:[#allocation159_spill] sm:$0xff] %v6878_v11  ;;  %8089 = vst [vmem:[#allocation161_spill] sm:$0xff] %v6883_v59 }
 0x1b5   :  { %4598 = vmatprep.subr.bf16.mxu1 %v6856_v48  ;;  %v6880_v31 = vpack.c.bf16 %v568_v45, %v562_v6  ;;  %v569_v48 = vld [vmem:[#allocation11 + $0x2e0] sm:$0xff] }
 0x1b6   :  { %v6890_v6 = vpack.c.bf16 %v569_v48, %v563_v29  ;;  %v591_v29 = vld [vmem:[#allocation11 + $0x390] sm:$0xff] }
 0x1b7   :  { %8088 = vst [vmem:[#allocation160_spill] sm:$0xff] %v6880_v31 }
 0x1b8   :  { %4600 = vmatpush1.bf16.msra.mxu1 %v6862_v51  ;;  %v580_v51 = vld [vmem:[#allocation11 + $0x338] sm:$0xff]  ;;  %8091 = vst [vmem:[#allocation163_spill] sm:$0xff] %v6890_v6 }
 0x1b9   :  { %4602 = vmatprep.subr.bf16.mxu1 %v6868_v60  ;;  %v581_v60 = vld [vmem:[#allocation11 + $0x340] sm:$0xff] }
 0x1c7   :  { %v6835_v20 = vpop.f32.mrb[0].mxu1 }
 0x1c8   :  { %v4225_v55 = vpop.f32.mrb[1].mxu1 }
 0x1c9   :  { %v533_v55 = vld [vmem:[#allocation11 + $0x1c0] sm:$0xff] }
 0x1ca   :  { %v6854_v1 = vpack.c.bf16 %v533_v55, %v527_v52  ;;  %v549_v52 = vld [vmem:[#allocation11 + $0x240] sm:$0xff]  ;;  %v555_v55 = vld [vmem:[#allocation11 + $0x270] sm:$0xff] }
 0x1cc   :  { %8079 = vst [vmem:[#allocation151_spill] sm:$0xff] %v6854_v1  ;;  %4692 = vmatpush1.bf16.msra.mxu0 %v6854_v1  ;;  %v6874_v1 = vpack.c.bf16 %v555_v55, %v549_v52  ;;  %v576_v52 = vld [vmem:[#allocation11 + $0x318] sm:$0xff]  ;;  %v582_v55 = vld [vmem:[#allocation11 + $0x348] sm:$0xff] }
 0x1cd   :  { %4694 = vmatprep.subr.bf16.mxu0 %v6859_v43  ;;  %v574_v43 = vld [vmem:[#allocation11 + $0x308] sm:$0xff]  ;;  %v6895_v26 = vpack.c.bf16 %v582_v55, %v576_v52  ;;  %v587_v52 = vld [vmem:[#allocation11 + $0x370] sm:$0xff] }
 0x1ce   :  { %8086 = vst [vmem:[#allocation158_spill] sm:$0xff] %v6874_v1  ;;  %4604 = vmatpush1.bf16.msra.mxu1 %v6874_v1  ;;  %v6892_v45 = vpack.c.bf16 %v580_v51, %v574_v43  ;;  %v592_v1 = vld [vmem:[#allocation11 + $0x398] sm:$0xff]  ;;  %v6902_v51 = vpack.c.bf16 %v581_v60, %v575_v21  ;;  %v585_v43 = vld [vmem:[#allocation11 + $0x360] sm:$0xff]  ;;  %v603_v21 = vld [vmem:[#allocation11 + $0x3f0] sm:$0xff] }
 0x1cf   :  { %4606 = vmatprep.subr.bf16.mxu1 %v6880_v31  ;;  %8093 = vst [vmem:[#allocation165_spill] sm:$0xff] %v6895_v26  ;;  %v593_v31 = vld [vmem:[#allocation11 + $0x3a0] sm:$0xff] }
 0x1d0   :  { %4696 = vmatpush1.bf16.msra.mxu0 %v6866_v39  ;;  %v6886_v39 = vpack.c.bf16 %v567_v47, %v561_v56  ;;  %8092 = vst [vmem:[#allocation164_spill] sm:$0xff] %v6892_v45  ;;  %v588_v56 = vld [vmem:[#allocation11 + $0x378] sm:$0xff]  ;;  %v594_v47 = vld [vmem:[#allocation11 + $0x3a8] sm:$0xff]  ;;  %8095 = vst [vmem:[#allocation167_spill] sm:$0xff] %v6902_v51 }
 0x1d1   :  { %4698 = vmatprep.subr.bf16.mxu0 %v6871_v34  ;;  %v586_v34 = vld [vmem:[#allocation11 + $0x368] sm:$0xff]  ;;  %v6907_v55 = vpack.c.bf16 %v594_v47, %v588_v56  ;;  %v599_v56 = vld [vmem:[#allocation11 + $0x3d0] sm:$0xff] }
 0x1d2   :  { %8090 = vst [vmem:[#allocation162_spill] sm:$0xff] %v6886_v39  ;;  %4608 = vmatpush1.bf16.msra.mxu1 %v6886_v39  ;;  %v6904_v48 = vpack.c.bf16 %v592_v1, %v586_v34  ;;  %v604_v39 = vld [vmem:[#allocation11 + $0x3f8] sm:$0xff]  ;;  %v6914_v1 = vpack.c.bf16 %v593_v31, %v587_v52  ;;  %v597_v34 = vld [vmem:[#allocation11 + $0x3c0] sm:$0xff]  ;;  %v615_v52 = vld [vmem:[#allocation11 + $0x450] sm:$0xff] }
 0x1d3   :  { %4610 = vmatprep.subr.bf16.mxu1 %v6892_v45  ;;  %8097 = vst [vmem:[#allocation169_spill] sm:$0xff] %v6907_v55  ;;  %v605_v45 = vld [vmem:[#allocation11 + $0x400] sm:$0xff] }
 0x1d4   :  { %4700 = vmatpush1.bf16.msra.mxu0 %v6878_v11  ;;  %v6898_v11 = vpack.c.bf16 %v579_v5, %v573_v37  ;;  %8096 = vst [vmem:[#allocation168_spill] sm:$0xff] %v6904_v48  ;;  %v600_v37 = vld [vmem:[#allocation11 + $0x3d8] sm:$0xff]  ;;  %v606_v5 = vld [vmem:[#allocation11 + $0x408] sm:$0xff]  ;;  %8099 = vst [vmem:[#allocation171_spill] sm:$0xff] %v6914_v1 }
 0x1d5   :  { %4702 = vmatprep.subr.bf16.mxu0 %v6883_v59  ;;  %v598_v59 = vld [vmem:[#allocation11 + $0x3c8] sm:$0xff]  ;;  %v6919_v47 = vpack.c.bf16 %v606_v5, %v600_v37  ;;  %v611_v37 = vld [vmem:[#allocation11 + $0x430] sm:$0xff] }
 0x1d6   :  { %8094 = vst [vmem:[#allocation166_spill] sm:$0xff] %v6898_v11  ;;  %4612 = vmatpush1.bf16.msra.mxu1 %v6898_v11  ;;  %v6916_v60 = vpack.c.bf16 %v604_v39, %v598_v59  ;;  %v616_v11 = vld [vmem:[#allocation11 + $0x458] sm:$0xff]  ;;  %v6926_v39 = vpack.c.bf16 %v605_v45, %v599_v56  ;;  %v609_v59 = vld [vmem:[#allocation11 + $0x420] sm:$0xff] }
 0x1d7   :  { %4614 = vmatprep.subr.bf16.mxu1 %v6904_v48  ;;  %8101 = vst [vmem:[#allocation173_spill] sm:$0xff] %v6919_v47  ;;  %v617_v48 = vld [vmem:[#allocation11 + $0x460] sm:$0xff]  ;;  %v6934_v45 = vpack.c.bf16 %v615_v52, %v609_v59  ;;  %v640_v59 = vld [vmem:[#allocation11 + $0x518] sm:$0xff] }
 0x1d8   :  { %4704 = vmatpush1.bf16.msra.mxu0 %v6890_v6  ;;  %v6910_v6 = vpack.c.bf16 %v591_v29, %v585_v43  ;;  %8100 = vst [vmem:[#allocation172_spill] sm:$0xff] %v6916_v60  ;;  %v612_v43 = vld [vmem:[#allocation11 + $0x438] sm:$0xff]  ;;  %v618_v29 = vld [vmem:[#allocation11 + $0x468] sm:$0xff]  ;;  %8103 = vst [vmem:[#allocation175_spill] sm:$0xff] %v6926_v39 }
 0x1d9   :  { %4706 = vmatprep.subr.bf16.mxu0 %v6895_v26  ;;  %v610_v26 = vld [vmem:[#allocation11 + $0x428] sm:$0xff]  ;;  %v6931_v5 = vpack.c.bf16 %v618_v29, %v612_v43  ;;  %8106 = vst [vmem:[#allocation178_spill] sm:$0xff] %v6934_v45  ;;  %v621_v43 = vld [vmem:[#allocation11 + $0x480] sm:$0xff]  ;;  %v627_v29 = vld [vmem:[#allocation11 + $0x4b0] sm:$0xff] }
 0x1da   :  { %8098 = vst [vmem:[#allocation170_spill] sm:$0xff] %v6910_v6  ;;  %4616 = vmatpush1.bf16.msra.mxu1 %v6910_v6  ;;  %v6928_v31 = vpack.c.bf16 %v616_v11, %v610_v26  ;;  %v628_v6 = vld [vmem:[#allocation11 + $0x4b8] sm:$0xff]  ;;  %v6938_v26 = vpack.c.bf16 %v617_v48, %v611_v37  ;;  %v6949_v48 = vpack.c.bf16 %v627_v29, %v621_v43  ;;  %v639_v37 = vld [vmem:[#allocation11 + $0x510] sm:$0xff] }
 0x1db   :  { %4618 = vmatprep.subr.bf16.mxu1 %v6916_v60  ;;  %8105 = vst [vmem:[#allocation177_spill] sm:$0xff] %v6931_v5  ;;  %v623_v60 = vld [vmem:[#allocation11 + $0x490] sm:$0xff]  ;;  %v636_v52 = vld [vmem:[#allocation11 + $0x4f8] sm:$0xff] }
 0x1dc   :  { %4708 = vmatpush1.bf16.msra.mxu0 %v6902_v51  ;;  %v6922_v51 = vpack.c.bf16 %v603_v21, %v597_v34  ;;  %8104 = vst [vmem:[#allocation176_spill] sm:$0xff] %v6928_v31  ;;  %v624_v21 = vld [vmem:[#allocation11 + $0x498] sm:$0xff]  ;;  %8107 = vst [vmem:[#allocation179_spill] sm:$0xff] %v6938_v26 }
 0x1dd   :  { %4710 = vmatprep.subr.bf16.mxu0 %v6907_v55  ;;  %v622_v55 = vld [vmem:[#allocation11 + $0x488] sm:$0xff]  ;;  %8110 = vst [vmem:[#allocation182_spill] sm:$0xff] %v6949_v48  ;;  %v648_v29 = vld [vmem:[#allocation11 + $0x558] sm:$0xff] }
 0x1de   :  { %8102 = vst [vmem:[#allocation174_spill] sm:$0xff] %v6922_v51  ;;  %4620 = vmatpush1.bf16.msra.mxu1 %v6922_v51  ;;  %v6940_v56 = vpack.c.bf16 %v628_v6, %v622_v55  ;;  %v634_v51 = vld [vmem:[#allocation11 + $0x4e8] sm:$0xff]  ;;  %v6953_v6 = vpack.c.bf16 %v629_v3, %v623_v60  ;;  %v633_v55 = vld [vmem:[#allocation11 + $0x4e0] sm:$0xff]  ;;  %v652_v60 = vld [vmem:[#allocation11 + $0x578] sm:$0xff] }
 0x1df   :  { %4622 = vmatprep.subr.bf16.mxu1 %v6928_v31  ;;  %v6961_v43 = vpack.c.bf16 %v639_v37, %v633_v55  ;;  %v651_v55 = vld [vmem:[#allocation11 + $0x570] sm:$0xff] }
 0x1e0   :  { %4712 = vmatpush1.bf16.msra.mxu0 %v6914_v1  ;;  %8108 = vst [vmem:[#allocation180_spill] sm:$0xff] %v6940_v56  ;;  %8111 = vst [vmem:[#allocation183_spill] sm:$0xff] %v6953_v6 }
 0x1e1   :  { %4714 = vmatprep.subr.bf16.mxu0 %v6919_v47  ;;  %v6943_v47 = vpack.c.bf16 %v630_v4, %v624_v21  ;;  %v6955_v4 = vpack.c.bf16 %v640_v59, %v634_v51  ;;  %v635_v21 = vld [vmem:[#allocation11 + $0x4f0] sm:$0xff]  ;;  %8114 = vst [vmem:[#allocation186_spill] sm:$0xff] %v6961_v43  ;;  %v646_v51 = vld [vmem:[#allocation11 + $0x548] sm:$0xff] }
 0x1e2   :  { %4624 = vmatpush1.bf16.msra.mxu1 %v6934_v45  ;;  %v6970_v59 = vpack.c.bf16 %v652_v60, %v646_v51  ;;  %v664_v51 = vld [vmem:[#allocation11 + $0x5d8] sm:$0xff] }
 0x1e3   :  { %8109 = vst [vmem:[#allocation181_spill] sm:$0xff] %v6943_v47  ;;  %4626 = vmatprep.subr.bf16.mxu1 %v6940_v56  ;;  %8112 = vst [vmem:[#allocation184_spill] sm:$0xff] %v6955_v4  ;;  %v660_v60 = vld [vmem:[#allocation11 + $0x5b8] sm:$0xff] }
 0x1e4   :  { %4716 = vmatpush1.bf16.msra.mxu0 %v6926_v39  ;;  %8116 = vst [vmem:[#allocation188_spill] sm:$0xff] %v6970_v59 }
 0x1e5   :  { %4718 = vmatprep.subr.bf16.mxu0 %v6931_v5 }
 0x1e6   :  { %4628 = vmatpush1.bf16.msra.mxu1 %v6949_v48 }
 0x1e7   :  { %v3867_v34 = vpop.f32.mrb[2].mxu1  ;;  %4630 = vmatprep.subr.bf16.mxu1 %v6955_v4 }
 0x1e8   :  { %v3868_v1 = vpop.f32.mrb[3].mxu1  ;;  %4720 = vmatpush1.bf16.msra.mxu0 %v6938_v26 }
 0x1e9   :  { %v3869_v11 = vadd.f32 %v3868_v1, %v3867_v34  ;;  %v642_v34 = vld [vmem:[#allocation11 + $0x528] sm:$0xff]  ;;  %4722 = vmatprep.subr.bf16.mxu0 %v6943_v47 }
 0x1ea   :  { %4632 = vmatpush1.bf16.msra.mxu1 %v6961_v43  ;;  %v658_v43 = vld [vmem:[#allocation11 + $0x5a8] sm:$0xff] }
 0x1eb   :  { %v6946_v1 = vadd.f32 %v3869_v11, %v6835_v20  ;;  %v6958_v20 = vpack.c.bf16 %v642_v34, %v636_v52  ;;  %v641_v11 = vld [vmem:[#allocation11 + $0x520] sm:$0xff]  ;;  %v654_v52 = vld [vmem:[#allocation11 + $0x588] sm:$0xff]  ;;  %4634 = vmatprep.subr.bf16.mxu1 %v6970_v59  ;;  %v6982_v56 = vpack.c.bf16 %v664_v51, %v658_v43  ;;  %v676_v43 = vld [vmem:[#allocation11 + $0x638] sm:$0xff] }
 0x1ec   :  { %4724 = vmatpush1.bf16.msra.mxu0 %v6953_v6  ;;  %v6965_v3 = vpack.c.bf16 %v641_v11, %v635_v21  ;;  %v645_v34 = vld [vmem:[#allocation11 + $0x540] sm:$0xff]  ;;  %v6972_v37 = vpack.c.bf16 %v654_v52, %v648_v29  ;;  %v647_v21 = vld [vmem:[#allocation11 + $0x550] sm:$0xff]  ;;  %v666_v29 = vld [vmem:[#allocation11 + $0x5e8] sm:$0xff] }
 0x1ed   :  { %8113 = vst [vmem:[#allocation185_spill] sm:$0xff] %v6958_v20  ;;  %4726 = vmatprep.subr.bf16.mxu0 %v6958_v20  ;;  %v6974_v48 = vpack.c.bf16 %v651_v55, %v645_v34  ;;  %v653_v11 = vld [vmem:[#allocation11 + $0x580] sm:$0xff]  ;;  %8120 = vst [vmem:[#allocation192_spill] sm:$0xff] %v6982_v56  ;;  %v663_v34 = vld [vmem:[#allocation11 + $0x5d0] sm:$0xff]  ;;  %v6984_v55 = vpack.c.bf16 %v666_v29, %v660_v60 }
 0x1ee   :  { %8115 = vst [vmem:[#allocation187_spill] sm:$0xff] %v6965_v3  ;;  %8117 = vst [vmem:[#allocation189_spill] sm:$0xff] %v6972_v37  ;;  %v6977_v4 = vpack.c.bf16 %v653_v11, %v647_v21  ;;  %v657_v52 = vld [vmem:[#allocation11 + $0x5a0] sm:$0xff]  ;;  %v659_v21 = vld [vmem:[#allocation11 + $0x5b0] sm:$0xff] }
 0x1ef   :  { %8118 = vst [vmem:[#allocation190_spill] sm:$0xff] %v6974_v48  ;;  %4636 = vmatpush1.bf16.msra.mxu1 %v6974_v48  ;;  %8121 = vst [vmem:[#allocation193_spill] sm:$0xff] %v6984_v55  ;;  %v6986_v45 = vpack.c.bf16 %v663_v34, %v657_v52  ;;  %v665_v11 = vld [vmem:[#allocation11 + $0x5e0] sm:$0xff]  ;;  %v670_v48 = vld [vmem:[#allocation11 + $0x608] sm:$0xff] }
 0x1f0   :  { %4728 = vmatpush1.bf16.msra.mxu0 %v6965_v3  ;;  %8119 = vst [vmem:[#allocation191_spill] sm:$0xff] %v6977_v4  ;;  %4638 = vmatprep.subr.bf16.mxu1 %v6982_v56  ;;  %v6989_v59 = vpack.c.bf16 %v665_v11, %v659_v21  ;;  %v672_v51 = vld [vmem:[#allocation11 + $0x618] sm:$0xff]  ;;  %v6994_v31 = vpack.c.bf16 %v676_v43, %v670_v48  ;;  %v678_v60 = vld [vmem:[#allocation11 + $0x648] sm:$0xff]  ;;  %v675_v43 = vld [vmem:[#allocation11 + $0x630] sm:$0xff] }
 0x1f1   :  { %4730 = vmatprep.subr.bf16.mxu0 %v6972_v37  ;;  %8122 = vst [vmem:[#allocation194_spill] sm:$0xff] %v6986_v45  ;;  %v6996_v29 = vpack.c.bf16 %v678_v60, %v672_v51  ;;  %v7005_v48 = vld [vmem:[#allocation2 + $0xd] ss:$2 sm:$0x3f]  ;;  %v7900_v51 = vsub.s32 0, %v6397_v18  ;;  %v7904_v60 = vsub.s32 1, %v6397_v18 }
 0x1f2   :  { %8123 = vst [vmem:[#allocation195_spill] sm:$0xff] %v6989_v59  ;;  %8124 = vst [vmem:[#allocation196_spill] sm:$0xff] %v6994_v31  ;;  %v677_v37 = vld [vmem:[#allocation11 + $0x640] sm:$0xff]  ;;  %v682_v3 = vld [vmem:[#allocation11 + $0x668] sm:$0xff] }
 0x1f3   :  { %4640 = vmatpush1.bf16.msra.mxu1 %v6986_v45  ;;  %8125 = vst [vmem:[#allocation197_spill] sm:$0xff] %v6996_v29  ;;  %v684_v6 = vld [vmem:[#allocation11 + $0x678] sm:$0xff]  ;;  %v690_v47 = vld [vmem:[#allocation11 + $0x6a8] sm:$0xff] }
 0x1f4   :  { %4732 = vmatpush1.bf16.msra.mxu0 %v6977_v4  ;;  %4642 = vmatprep.subr.bf16.mxu1 %v6994_v31  ;;  %v7003_v4 = vld [vmem:[#allocation2 + $0x1] ss:$2 sm:$0x3f]  ;;  %v7011_v31 = vld [vmem:[#allocation10] sm:$0x7] }
 0x1f5   :  { %4734 = vmatprep.subr.bf16.mxu0 %v6984_v55 }
 0x1f8   :  { %4736 = vmatpush1.bf16.msra.mxu0 %v6989_v59  ;;  %v671_v59 = vld [vmem:[#allocation11 + $0x610] sm:$0xff] }
 0x1f9   :  { %4738 = vmatprep.subr.bf16.mxu0 %v6996_v29  ;;  %v7029_v5 = vpack.c.bf16 %v677_v37, %v671_v59  ;;  %v699_v59 = vld [vmem:[#allocation11 + $0x6f0] sm:$0xff] }
 0x1fb   :  { %8129 = vst [vmem:[#allocation201_spill] sm:$0xff] %v7029_v5 }
 0x207   :  { %v3902_v52 = vpop.f32.mrb[4].mxu1 }
 0x208   :  { %v3903_v34 = vpop.f32.mrb[5].mxu1 }
 0x209   :  { %v3904_v21 = vadd.f32 %v3903_v34, %v3902_v52 }
 0x20b   :  { %v1338_v11 = vadd.f32 %v3904_v21, %v6946_v1  ;;  %v7016_v1 = vrot.slane %v7011_v31, %v7900_v51  ;;  %v688_v51 = vld [vmem:[#allocation11 + $0x698] sm:$0xff] }
 0x20d   :  { %8126 = vst [vmem:[#allocation198_spill] sm:$0xff] %v7016_v1 }
 0x237   :  { %v1407_v45 = vpop.f32.mrb[6].mxu1 }
 0x238   :  { %v7001_v56 = vadd.f32 %v1407_v45, %v1338_v11  ;;  %v1409_v55 = vpop.f32.mrb[7].mxu1  ;;  %v7021_v45 = vrot.slane %v7011_v31, %v7904_v60  ;;  %v669_v11 = vld [vmem:[#allocation11 + $0x600] sm:$0xff] }
 0x239   :  { %v7027_v60 = vpack.c.bf16 %v675_v43, %v669_v11  ;;  %v696_v43 = vld [vmem:[#allocation11 + $0x6d8] sm:$0xff]  ;;  %v706_v11 = vld [vmem:[#allocation11 + $0x728] sm:$0xff] }
 0x23a   :  { %8127 = vst [vmem:[#allocation199_spill] sm:$0xff] %v7021_v45 }
 0x23b   :  { %8128 = vst [vmem:[#allocation200_spill] sm:$0xff] %v7027_v60 }
 0x277   :  { %v1196_v55 = vpop.f32.mrb[0].mxu0 }
 0x278   :  { %v1427_v52 = vadd.f32 %v7016_v1, %v1196_v55  ;;  %v1198_v34 = vpop.f32.mrb[1].mxu0  ;;  %v681_v55 = vld [vmem:[#allocation11 + $0x660] sm:$0xff]  ;;  %v687_v1 = vld [vmem:[#allocation11 + $0x690] sm:$0xff] }
 0x279   :  { %v1428_v21 = vadd.f32 %v7021_v45, %v1198_v34  ;;  %v7033_v34 = vpack.c.bf16 %v688_v51, %v682_v3  ;;  %v7035_v45 = vpack.c.bf16 %v690_v47, %v684_v6  ;;  %v7043_v47 = vpack.c.bf16 %v687_v1, %v681_v55  ;;  %v693_v3 = vld [vmem:[#allocation11 + $0x6c0] sm:$0xff]  ;;  %v695_v51 = vld [vmem:[#allocation11 + $0x6d0] sm:$0xff] }
 0x27a   :  { %v1430_v29 = vmul.f32 0.01, %v1427_v52  ;;  %v7045_v6 = vpack.c.bf16 %v689_v14, %v683_v13  ;;  %v8136_v1 = vmov 0.0   ;;  %v7057_v14 = vpack.c.bf16 %v699_v59, %v693_v3  ;;  %v705_v13 = vld [vmem:[#allocation11 + $0x720] sm:$0xff]  ;;  %v711_v55 = vld [vmem:[#allocation11 + $0x750] sm:$0xff] }
 0x27b   :  { %v1431_v20 = vmul.f32 0.01, %v1428_v21  ;;  %8130 = vst [vmem:[#allocation202_spill] sm:$0xff] %v7033_v34  ;;  %8131 = vst [vmem:[#allocation203_spill] sm:$0xff] %v7035_v45  ;;  %v7069_v3 = vpack.c.bf16 %v711_v55, %v705_v13  ;;  %v729_v55 = vld [vmem:[#allocation11 + $0x7e0] sm:$0xff] }
 0x27c   :  { %v7031_v39 = vmax.f32 %v1427_v52, %v1430_v29  ;;  %8132 = vst [vmem:[#allocation204_spill] sm:$0xff] %v7043_v47  ;;  %8133 = vst [vmem:[#allocation205_spill] sm:$0xff] %v7045_v6  ;;  %v701_v52 = vld [vmem:[#allocation11 + $0x700] sm:$0xff] }
 0x27d   :  { %v7025_v26 = vmax.f32 %v1428_v21, %v1431_v20  ;;  %v700_v20 = vld [vmem:[#allocation11 + $0x6f8] sm:$0xff]  ;;  %v702_v21 = vld [vmem:[#allocation11 + $0x708] sm:$0xff]  ;;  %8137 = vst [vmem:[#allocation208_spill] sm:$0xff] %v7057_v14  ;;  %8140 = vst [vmem:[#allocation211_spill] sm:$0xff] %v7069_v3 }
 0x27e   :  { %v7049_v37 = vpack.c.bf16 %v700_v20, %v694_v32  ;;  %v7051_v29 = vpack.c.bf16 %v702_v21, %v696_v43  ;;  %v7059_v32 = vpack.c.bf16 %v701_v52, %v695_v51  ;;  %v707_v21 = vld [vmem:[#allocation11 + $0x730] sm:$0xff]  ;;  %v717_v51 = vld [vmem:[#allocation11 + $0x780] sm:$0xff] }
 0x27f   :  { %1531 = vmatprep.mubr.f32.mxu1 %v7025_v26  ;;  %1673 = vmatprep.mubr.f32.mxu0 %v7025_v26  ;;  %v723_v52 = vld [vmem:[#allocation11 + $0x7b0] sm:$0xff] }
 0x280   :  { %1532 = vmatmul.mubr.f32.vlgmr.msra.gmra.mrb[8].mxu1 %v7031_v39  ;;  %1674 = vmatmul.mubr.f32.vlgmr.msra.gmra.mrb[2].mxu0 %v7031_v39  ;;  %8134 = vst [vmem:[#allocation206_spill] sm:$0xff] %v7049_v37  ;;  %8135 = vst [vmem:[#allocation207_spill] sm:$0xff] %v7051_v29 }
 0x281   :  { %4644 = vmatpush1.bf16.msra.mxu1 %v7027_v60  ;;  %4740 = vmatpush1.bf16.msra.mxu0 %v7029_v5  ;;  %v712_v60 = vld [vmem:[#allocation11 + $0x758] sm:$0xff]  ;;  %v714_v5 = vld [vmem:[#allocation11 + $0x768] sm:$0xff]  ;;  %8138 = vst [vmem:[#allocation209_spill] sm:$0xff] %v7059_v32 }
 0x282   :  { %4646 = vmatprep.subr.bf16.mxu1 %v7033_v34  ;;  %4742 = vmatprep.subr.bf16.mxu0 %v7035_v45  ;;  %v7063_v20 = vpack.c.bf16 %v712_v60, %v706_v11  ;;  %v7065_v43 = vpack.c.bf16 %v714_v5, %v708_v23  ;;  %v713_v45 = vld [vmem:[#allocation11 + $0x760] sm:$0xff]  ;;  %v718_v34 = vld [vmem:[#allocation11 + $0x788] sm:$0xff]  ;;  %v719_v60 = vld [vmem:[#allocation11 + $0x790] sm:$0xff] }
 0x283   :  { %1602 = vmatprep.mubr.f32.mxu1 %v8136_v1  ;;  %1744 = vmatprep.mubr.f32.mxu0 %v8136_v1  ;;  %v7071_v59 = vpack.c.bf16 %v713_v45, %v707_v21  ;;  %v725_v11 = vld [vmem:[#allocation11 + $0x7c0] sm:$0xff]  ;;  %v7081_v45 = vpack.c.bf16 %v723_v52, %v717_v51  ;;  %v735_v21 = vld [vmem:[#allocation11 + $0x810] sm:$0xff]  ;;  %v744_v51 = vld [vmem:[#allocation11 + $0x858] sm:$0xff] }
 0x284   :  { %8139 = vst [vmem:[#allocation210_spill] sm:$0xff] %v7065_v43  ;;  %v7083_v13 = vpack.c.bf16 %v725_v11, %v719_v60  ;;  %v750_v52 = vld [vmem:[#allocation11 + $0x888] sm:$0xff]  ;;  %v7094_v60 = vpack.c.bf16 %v735_v21, %v729_v55  ;;  %v749_v55 = vld [vmem:[#allocation11 + $0x880] sm:$0xff] }
 0x285   :  { %4648 = vmatpush1.bf16.msra.mxu1 %v7043_v47  ;;  %4744 = vmatpush1.bf16.msra.mxu0 %v7045_v6  ;;  %v724_v47 = vld [vmem:[#allocation11 + $0x7b8] sm:$0xff]  ;;  %v726_v6 = vld [vmem:[#allocation11 + $0x7c8] sm:$0xff]  ;;  %8141 = vst [vmem:[#allocation212_spill] sm:$0xff] %v7071_v59  ;;  %8143 = vst [vmem:[#allocation214_spill] sm:$0xff] %v7081_v45 }
 0x286   :  { %4650 = vmatprep.subr.bf16.mxu1 %v7049_v37  ;;  %4746 = vmatprep.subr.bf16.mxu0 %v7051_v29  ;;  %v7075_v23 = vpack.c.bf16 %v724_v47, %v718_v34  ;;  %v7077_v5 = vpack.c.bf16 %v726_v6, %v720_v38  ;;  %v730_v29 = vld [vmem:[#allocation11 + $0x7e8] sm:$0xff]  ;;  %v732_v37 = vld [vmem:[#allocation11 + $0x7f8] sm:$0xff]  ;;  %8144 = vst [vmem:[#allocation215_spill] sm:$0xff] %v7083_v13  ;;  %v731_v6 = vld [vmem:[#allocation11 + $0x7f0] sm:$0xff] }
 0x287   :  { %8147 = vst [vmem:[#allocation218_spill] sm:$0xff] %v7094_v60  ;;  %v741_v34 = vld [vmem:[#allocation11 + $0x840] sm:$0xff]  ;;  %v754_v21 = vld [vmem:[#allocation11 + $0x8a8] sm:$0xff] }
 0x288   :  { %8142 = vst [vmem:[#allocation213_spill] sm:$0xff] %v7077_v5 }
 0x289   :  { %4652 = vmatpush1.bf16.msra.mxu1 %v7057_v14  ;;  %4748 = vmatpush1.bf16.msra.mxu0 %v7059_v32  ;;  %v736_v14 = vld [vmem:[#allocation11 + $0x818] sm:$0xff]  ;;  %v738_v32 = vld [vmem:[#allocation11 + $0x828] sm:$0xff] }
 0x28a   :  { %4654 = vmatprep.subr.bf16.mxu1 %v7063_v20  ;;  %4750 = vmatprep.subr.bf16.mxu0 %v7065_v43  ;;  %v7088_v38 = vpack.c.bf16 %v736_v14, %v730_v29  ;;  %v7090_v47 = vpack.c.bf16 %v738_v32, %v732_v37  ;;  %v742_v43 = vld [vmem:[#allocation11 + $0x848] sm:$0xff]  ;;  %v8149_v29 = vsub.s32 2, %v6397_v18  ;;  %v7107_v32 = vpack.c.bf16 %v750_v52, %v744_v51  ;;  %v759_v52 = vld [vmem:[#allocation11 + $0x8d0] sm:$0xff] }
 0x28c   :  { %8145 = vst [vmem:[#allocation216_spill] sm:$0xff] %v7088_v38  ;;  %8146 = vst [vmem:[#allocation217_spill] sm:$0xff] %v7090_v47  ;;  %v7101_v37 = vrot.slane %v7011_v31, %v8149_v29 }
 0x28d   :  { %4656 = vmatpush1.bf16.msra.mxu1 %v7069_v3  ;;  %4752 = vmatpush1.bf16.msra.mxu0 %v7071_v59  ;;  %v737_v3 = vld [vmem:[#allocation11 + $0x820] sm:$0xff]  ;;  %v748_v59 = vld [vmem:[#allocation11 + $0x878] sm:$0xff]  ;;  %8151 = vst [vmem:[#allocation221_spill] sm:$0xff] %v7107_v32 }
 0x28e   :  { %4658 = vmatprep.subr.bf16.mxu1 %v7075_v23  ;;  %4754 = vmatprep.subr.bf16.mxu0 %v7077_v5  ;;  %v7096_v11 = vpack.c.bf16 %v737_v3, %v731_v6  ;;  %v747_v5 = vld [vmem:[#allocation11 + $0x870] sm:$0xff]  ;;  %8150 = vst [vmem:[#allocation220_spill] sm:$0xff] %v7101_v37  ;;  %v7105_v14 = vpack.c.bf16 %v748_v59, %v742_v43  ;;  %v760_v3 = vld [vmem:[#allocation11 + $0x8d8] sm:$0xff] }
 0x28f   :  { %v756_v6 = vld [vmem:[#allocation11 + $0x8b8] sm:$0xff]  ;;  %v7111_v31 = vpack.c.bf16 %v747_v5, %v741_v34  ;;  %v1429_v43 = vadd.f32 %v7101_v37, %v7001_v56  ;;  %v7119_v59 = vpack.c.bf16 %v760_v3, %v754_v21  ;;  %v481_v21 = vld [vmem:[#allocation11 + $0x20] sm:$0xff]  ;;  %v487_v3 = vld [vmem:[#allocation11 + $0x50] sm:$0xff] }
 0x290   :  { %8148 = vst [vmem:[#allocation219_spill] sm:$0xff] %v7096_v11  ;;  %v488_v5 = vld [vmem:[#allocation11 + $0x58] sm:$0xff] }
 0x291   :  { %4660 = vmatpush1.bf16.msra.mxu1 %v7081_v45  ;;  %4756 = vmatpush1.bf16.msra.mxu0 %v7083_v13  ;;  %v743_v13 = vld [vmem:[#allocation11 + $0x850] sm:$0xff]  ;;  %v762_v45 = vld [vmem:[#allocation11 + $0x8e8] sm:$0xff]  ;;  %8152 = vst [vmem:[#allocation222_spill] sm:$0xff] %v7111_v31  ;;  %8153 = vst [vmem:[#allocation223_spill] sm:$0xff] %v7119_v59 }
 0x292   :  { %4662 = vmatprep.subr.bf16.mxu1 %v7088_v38  ;;  %4758 = vmatprep.subr.bf16.mxu0 %v7090_v47  ;;  %v7113_v29 = vpack.c.bf16 %v749_v55, %v743_v13  ;;  %v753_v38 = vld [vmem:[#allocation11 + $0x8a0] sm:$0xff]  ;;  %v7121_v51 = vpack.c.bf16 %v762_v45, %v756_v6  ;;  %v2156_v13 = vcombine.low %v7003_v4, %v7005_v48  ;;  %v1432_v55 = vmul.f32 0.01, %v1429_v43 }
 0x293   :  { %v761_v47 = vld [vmem:[#allocation11 + $0x8e0] sm:$0xff]  ;;  %v7127_v56 = vpack.c.bf16 %v759_v52, %v753_v38  ;;  %v7140_v38 = vpack.c.bf16 %v487_v3, %v481_v21  ;;  %v511_v3 = vld [vmem:[#allocation11 + $0x110] sm:$0xff] }
 0x294   :  { %8154 = vst [vmem:[#allocation224_spill] sm:$0xff] %v7121_v51  ;;  %v2006_v6 = vld [vmem:[#allocation5 + $0x3] sm:$0x1]  ;;  %v7136_v37 = vrot.slane %v2156_v13, %v6414_v40 }
 0x295   :  { %4664 = vmatpush1.bf16.msra.mxu1 %v7094_v60  ;;  %4760 = vmatpush1.bf16.msra.mxu0 %v7096_v11  ;;  %v755_v60 = vld [vmem:[#allocation11 + $0x8b0] sm:$0xff]  ;;  %v482_v11 = vld [vmem:[#allocation11 + $0x28] sm:$0xff]  ;;  %8155 = vst [vmem:[#allocation225_spill] sm:$0xff] %v7127_v56  ;;  %v493_v52 = vld [vmem:[#allocation11 + $0x80] sm:$0xff] }
 0x296   :  { %4666 = vmatprep.subr.bf16.mxu1 %v7105_v14  ;;  %4762 = vmatprep.subr.bf16.mxu0 %v7107_v32  ;;  %v7129_v34 = vpack.c.bf16 %v761_v47, %v755_v60  ;;  %v7133_v45 = vpack.c.bf16 %v488_v5, %v482_v11  ;;  %v500_v32 = vld [vmem:[#allocation11 + $0xb8] sm:$0xff]  ;;  %v2009_v47 = vrot.slane %v2006_v6, 7  ;;  %v7142_v60 = vmax.f32 %v1429_v43, %v1432_v55  ;;  %v2005_v11 = vld [vmem:[#allocation5 + $0x1] sm:$0x1]  ;;  %v499_v5 = vld [vmem:[#allocation11 + $0xb0] sm:$0xff] }
 0x297   :  { %v7157_v55 = vpack.c.bf16 %v499_v5, %v493_v52  ;;  %v505_v21 = vld [vmem:[#allocation11 + $0xe0] sm:$0xff]  ;;  %v524_v6 = vld [vmem:[#allocation11 + $0x178] sm:$0xff]  ;;  %v530_v52 = vld [vmem:[#allocation11 + $0x1a8] sm:$0xff] }
 0x298   :  { %v7155_v43 = vsel %vm774_vm2, %v2009_v47, %v2005_v11  ;;  %v523_v11 = vld [vmem:[#allocation11 + $0x170] sm:$0xff]  ;;  %v529_v5 = vld [vmem:[#allocation11 + $0x1a0] sm:$0xff] }
 0x299   :  { %4668 = vmatpush1.bf16.msra.mxu1 %v7111_v31  ;;  %4764 = vmatpush1.bf16.msra.mxu0 %v7113_v29  ;;  %v494_v31 = vld [vmem:[#allocation11 + $0x88] sm:$0xff] }
 0x29a   :  { %4670 = vmatprep.subr.bf16.mxu1 %v7119_v59  ;;  %4766 = vmatprep.subr.bf16.mxu0 %v7121_v51  ;;  %v7146_v13 = vpack.c.bf16 %v500_v32, %v494_v31  ;;  %v506_v51 = vld [vmem:[#allocation11 + $0xe8] sm:$0xff]  ;;  %v512_v59 = vld [vmem:[#allocation11 + $0x118] sm:$0xff] }
 0x29b   :  { %v5733_v32 = vld [vmem:[#allocation8 + $0x10] sm:$0x3f]  ;;  %v7162_v31 = vpack.c.bf16 %v512_v59, %v506_v51  ;;  %v7173_v59 = vpack.c.bf16 %v511_v3, %v505_v21  ;;  %v517_v51 = vld [vmem:[#allocation11 + $0x140] sm:$0xff]  ;;  %v542_v21 = vld [vmem:[#allocation11 + $0x208] sm:$0xff] }
 0x29c   :  { %v548_v3 = vld [vmem:[#allocation11 + $0x238] sm:$0xff] }
 0x29d   :  { %4672 = vmatpush1.bf16.msra.mxu1 %v7127_v56  ;;  %4768 = vmatpush1.bf16.msra.mxu0 %v7129_v34  ;;  %v2172_v56 = vcombine.high %v7136_v37, %v7136_v37 }
 0x29e   :  { %4770 = vmatprep.subr.bf16.mxu1 %v7133_v45  ;;  %4226 = vmatprep.subr.mxu0 %v8136_v1 }
 0x29f   :  { %v7167_v47 = vrot.slane %v2172_v56, %v6414_v40  ;;  %v536_v56 = vld [vmem:[#allocation11 + $0x1d8] sm:$0xff] }
 0x2a0   :  { %1603 = vmatmul.mubr.f32.vlgmr.msra.gmra.mrb[8].mxu1 %v7142_v60  ;;  %1745 = vmatmul.mubr.f32.vlgmr.msra.gmra.mrb[2].mxu0 %v7142_v60 }
 0x2a1   :  { %4772 = vmatpush1.bf16.msra.mxu1 %v7140_v38  ;;  %1815 = vmatprep.mubr.f32.mxu1 %v7025_v26  ;;  %v518_v26 = vld [vmem:[#allocation11 + $0x148] sm:$0xff] }
 0x2a2   :  { %4227 = vmatpush3.msk.msra.mxu0 %vm779_vm1, %v5733_v32  ;;  %4228 = vmatprep.mubr.msk.f32.mxu0 %vm6085_vm0, %v8136_v1  ;;  %v535_v32 = vld [vmem:[#allocation11 + $0x1d0] sm:$0xff] }
 0x2a3   :  { %4866 = vmatprep.subr.bf16.mxu0 %v6338_v7  ;;  %4774 = vmatprep.subr.bf16.mxu1 %v7146_v13  ;;  %v7177_v7 = vpack.c.bf16 %v524_v6, %v518_v26  ;;  %v7190_v26 = vpack.c.bf16 %v535_v32, %v529_v5  ;;  %v547_v6 = vld [vmem:[#allocation11 + $0x230] sm:$0xff]  ;;  %v566_v5 = vld [vmem:[#allocation11 + $0x2c8] sm:$0xff]  ;;  %v572_v32 = vld [vmem:[#allocation11 + $0x2f8] sm:$0xff] }
 0x2a4   :  { %4229 = vmatmul.mubr.msk.f32.vlgmr.msra.gmra.mrb[4].mxu0 %vm776_vm3, %v7155_v43 }
 0x2a5   :  { %4868 = vmatpush1.bf16.msra.mxu0 %v6343_v16  ;;  %4776 = vmatpush1.bf16.msra.mxu1 %v7157_v55  ;;  %v7182_v16 = vpack.c.bf16 %v523_v11, %v517_v51  ;;  %v554_v51 = vld [vmem:[#allocation11 + $0x268] sm:$0xff]  ;;  %v560_v11 = vld [vmem:[#allocation11 + $0x298] sm:$0xff] }
 0x2a6   :  { %4870 = vmatprep.subr.bf16.mxu0 %v6349_v22  ;;  %4778 = vmatprep.subr.bf16.mxu1 %v7162_v31  ;;  %v7186_v22 = vpack.c.bf16 %v536_v56, %v530_v52  ;;  %v559_v56 = vld [vmem:[#allocation11 + $0x290] sm:$0xff] }
 0x2a7   :  { %2275 = vmatprep.mubr.f32.mxu0 %v7167_v47 }
 0x2a9   :  { %4872 = vmatpush1.bf16.msra.mxu0 %v6357_v30  ;;  %4780 = vmatpush1.bf16.msra.mxu1 %v7173_v59  ;;  %v7194_v30 = vpack.c.bf16 %v548_v3, %v542_v21  ;;  %v571_v3 = vld [vmem:[#allocation11 + $0x2f0] sm:$0xff] }
 0x2aa   :  { %4874 = vmatprep.subr.bf16.mxu0 %v6363_v35  ;;  %4782 = vmatprep.subr.bf16.mxu1 %v7177_v7  ;;  %v541_v35 = vld [vmem:[#allocation11 + $0x200] sm:$0xff] }
 0x2ab   :  { %v7198_v52 = vpack.c.bf16 %v547_v6, %v541_v35  ;;  %v578_v35 = vld [vmem:[#allocation11 + $0x328] sm:$0xff]  ;;  %v584_v6 = vld [vmem:[#allocation11 + $0x358] sm:$0xff] }
 0x2ad   :  { %4876 = vmatpush1.bf16.msra.mxu0 %v6369_v46  ;;  %4784 = vmatpush1.bf16.msra.mxu1 %v7182_v16  ;;  %v7202_v46 = vpack.c.bf16 %v560_v11, %v554_v51  ;;  %v583_v11 = vld [vmem:[#allocation11 + $0x350] sm:$0xff] }
 0x2ae   :  { %4878 = vmatprep.subr.bf16.mxu0 %v6375_v50  ;;  %4786 = vmatprep.subr.bf16.mxu1 %v7186_v22  ;;  %v553_v50 = vld [vmem:[#allocation11 + $0x260] sm:$0xff] }
 0x2af   :  { %v7206_v21 = vpack.c.bf16 %v559_v56, %v553_v50  ;;  %v590_v50 = vld [vmem:[#allocation11 + $0x388] sm:$0xff]  ;;  %v596_v56 = vld [vmem:[#allocation11 + $0x3b8] sm:$0xff] }
 0x2b1   :  { %4880 = vmatpush1.bf16.msra.mxu0 %v6381_v58  ;;  %4788 = vmatpush1.bf16.msra.mxu1 %v7190_v26  ;;  %v7210_v58 = vpack.c.bf16 %v572_v32, %v566_v5  ;;  %v595_v32 = vld [vmem:[#allocation11 + $0x3b0] sm:$0xff] }
 0x2b2   :  { %4882 = vmatprep.subr.bf16.mxu0 %v6387_v2  ;;  %4790 = vmatprep.subr.bf16.mxu1 %v7194_v30  ;;  %v565_v2 = vld [vmem:[#allocation11 + $0x2c0] sm:$0xff] }
 0x2b3   :  { %v7214_v51 = vpack.c.bf16 %v571_v3, %v565_v2  ;;  %v602_v2 = vld [vmem:[#allocation11 + $0x3e8] sm:$0xff]  ;;  %v608_v3 = vld [vmem:[#allocation11 + $0x418] sm:$0xff] }
 0x2b5   :  { %4884 = vmatpush1.bf16.msra.mxu0 %v6393_v12  ;;  %4792 = vmatpush1.bf16.msra.mxu1 %v7198_v52  ;;  %v7218_v12 = vpack.c.bf16 %v584_v6, %v578_v35  ;;  %v607_v6 = vld [vmem:[#allocation11 + $0x410] sm:$0xff] }
 0x2b6   :  { %4886 = vmatprep.subr.bf16.mxu0 %v6401_v19  ;;  %4794 = vmatprep.subr.bf16.mxu1 %v7202_v46  ;;  %v577_v19 = vld [vmem:[#allocation11 + $0x320] sm:$0xff] }
 0x2b7   :  { %v7222_v5 = vpack.c.bf16 %v583_v11, %v577_v19  ;;  %v614_v19 = vld [vmem:[#allocation11 + $0x448] sm:$0xff]  ;;  %v620_v11 = vld [vmem:[#allocation11 + $0x478] sm:$0xff] }
 0x2b9   :  { %4888 = vmatpush1.bf16.msra.mxu0 %v6407_v33  ;;  %4796 = vmatpush1.bf16.msra.mxu1 %v7206_v21  ;;  %v7226_v33 = vpack.c.bf16 %v596_v56, %v590_v50  ;;  %v619_v56 = vld [vmem:[#allocation11 + $0x470] sm:$0xff] }
 0x2ba   :  { %4890 = vmatprep.subr.bf16.mxu0 %v6418_v41  ;;  %4798 = vmatprep.subr.bf16.mxu1 %v7210_v58  ;;  %v589_v41 = vld [vmem:[#allocation11 + $0x380] sm:$0xff] }
 0x2bb   :  { %v7230_v35 = vpack.c.bf16 %v595_v32, %v589_v41  ;;  %v626_v41 = vld [vmem:[#allocation11 + $0x4a8] sm:$0xff]  ;;  %v632_v32 = vld [vmem:[#allocation11 + $0x4d8] sm:$0xff] }
 0x2bd   :  { %4892 = vmatpush1.bf16.msra.mxu0 %v6428_v54  ;;  %4800 = vmatpush1.bf16.msra.mxu1 %v7214_v51  ;;  %v7234_v54 = vpack.c.bf16 %v608_v3, %v602_v2  ;;  %v631_v3 = vld [vmem:[#allocation11 + $0x4d0] sm:$0xff] }
 0x2be   :  { %4894 = vmatprep.subr.bf16.mxu0 %v6435_v61  ;;  %4802 = vmatprep.subr.bf16.mxu1 %v7218_v12  ;;  %v601_v61 = vld [vmem:[#allocation11 + $0x3e0] sm:$0xff] }
 0x2bf   :  { %v7238_v50 = vpack.c.bf16 %v607_v6, %v601_v61  ;;  %v638_v61 = vld [vmem:[#allocation11 + $0x508] sm:$0xff]  ;;  %v644_v6 = vld [vmem:[#allocation11 + $0x538] sm:$0xff] }
 0x2c1   :  { %4896 = vmatpush1.bf16.msra.mxu0 %v6441_v10  ;;  %4804 = vmatpush1.bf16.msra.mxu1 %v7222_v5  ;;  %v7242_v10 = vpack.c.bf16 %v620_v11, %v614_v19  ;;  %v643_v11 = vld [vmem:[#allocation11 + $0x530] sm:$0xff] }
 0x2c2   :  { %4898 = vmatprep.subr.bf16.mxu0 %v6448_v24  ;;  %4806 = vmatprep.subr.bf16.mxu1 %v7226_v33  ;;  %v613_v24 = vld [vmem:[#allocation11 + $0x440] sm:$0xff] }
 0x2c3   :  { %v7246_v2 = vpack.c.bf16 %v619_v56, %v613_v24  ;;  %v650_v24 = vld [vmem:[#allocation11 + $0x568] sm:$0xff]  ;;  %v656_v56 = vld [vmem:[#allocation11 + $0x598] sm:$0xff] }
 0x2c5   :  { %4900 = vmatpush1.bf16.msra.mxu0 %v6457_v44  ;;  %4808 = vmatpush1.bf16.msra.mxu1 %v7230_v35  ;;  %v7250_v44 = vpack.c.bf16 %v632_v32, %v626_v41  ;;  %v655_v32 = vld [vmem:[#allocation11 + $0x590] sm:$0xff] }
 0x2c6   :  { %4902 = vmatprep.subr.bf16.mxu0 %v6463_v53  ;;  %4810 = vmatprep.subr.bf16.mxu1 %v7234_v54  ;;  %v625_v53 = vld [vmem:[#allocation11 + $0x4a0] sm:$0xff] }
 0x2c7   :  { %v7254_v19 = vpack.c.bf16 %v631_v3, %v625_v53  ;;  %v662_v53 = vld [vmem:[#allocation11 + $0x5c8] sm:$0xff]  ;;  %v668_v3 = vld [vmem:[#allocation11 + $0x5f8] sm:$0xff] }
 0x2c9   :  { %4904 = vmatpush1.bf16.msra.mxu0 %v6472_v8  ;;  %4812 = vmatpush1.bf16.msra.mxu1 %v7238_v50  ;;  %v7258_v8 = vpack.c.bf16 %v644_v6, %v638_v61  ;;  %v667_v6 = vld [vmem:[#allocation11 + $0x5f0] sm:$0xff] }
 0x2ca   :  { %4906 = vmatprep.subr.bf16.mxu0 %v6478_v27  ;;  %4814 = vmatprep.subr.bf16.mxu1 %v7242_v10  ;;  %v637_v27 = vld [vmem:[#allocation11 + $0x500] sm:$0xff] }
 0x2cb   :  { %v7262_v41 = vpack.c.bf16 %v643_v11, %v637_v27  ;;  %v674_v27 = vld [vmem:[#allocation11 + $0x628] sm:$0xff]  ;;  %v680_v11 = vld [vmem:[#allocation11 + $0x658] sm:$0xff] }
 0x2cd   :  { %4908 = vmatpush1.bf16.msra.mxu0 %v6485_v49  ;;  %4816 = vmatpush1.bf16.msra.mxu1 %v7246_v2  ;;  %v7266_v49 = vpack.c.bf16 %v656_v56, %v650_v24  ;;  %v679_v56 = vld [vmem:[#allocation11 + $0x650] sm:$0xff] }
 0x2ce   :  { %4910 = vmatprep.subr.bf16.mxu0 %v6491_v63  ;;  %4818 = vmatprep.subr.bf16.mxu1 %v7250_v44  ;;  %v649_v63 = vld [vmem:[#allocation11 + $0x560] sm:$0xff] }
 0x2cf   :  { %v7270_v61 = vpack.c.bf16 %v655_v32, %v649_v63  ;;  %v686_v63 = vld [vmem:[#allocation11 + $0x688] sm:$0xff]  ;;  %v692_v32 = vld [vmem:[#allocation11 + $0x6b8] sm:$0xff] }
 0x2d1   :  { %4912 = vmatpush1.bf16.msra.mxu0 %v6497_v17  ;;  %4820 = vmatpush1.bf16.msra.mxu1 %v7254_v19  ;;  %v7274_v17 = vpack.c.bf16 %v668_v3, %v662_v53  ;;  %v691_v3 = vld [vmem:[#allocation11 + $0x6b0] sm:$0xff] }
 0x2d2   :  { %4914 = vmatprep.subr.bf16.mxu0 %v6503_v0  ;;  %4822 = vmatprep.subr.bf16.mxu1 %v7258_v8  ;;  %v661_v0 = vld [vmem:[#allocation11 + $0x5c0] sm:$0xff] }
 0x2d3   :  { %v7278_v24 = vpack.c.bf16 %v667_v6, %v661_v0  ;;  %v698_v0 = vld [vmem:[#allocation11 + $0x6e8] sm:$0xff]  ;;  %v704_v6 = vld [vmem:[#allocation11 + $0x718] sm:$0xff] }
 0x2d5   :  { %4916 = vmatpush1.bf16.msra.mxu0 %v6509_v57  ;;  %4824 = vmatpush1.bf16.msra.mxu1 %v7262_v41  ;;  %v7282_v57 = vpack.c.bf16 %v680_v11, %v674_v27  ;;  %v7295_v27 = vrot.slane %v7136_v37, %v6414_v40  ;;  %v697_v11 = vld [vmem:[#allocation11 + $0x6e0] sm:$0xff]  ;;  %v7308_v37 = vcombine.high %v7167_v47, %v7167_v47 }
 0x2d6   :  { %4918 = vmatprep.subr.bf16.mxu0 %v6515_v25  ;;  %4826 = vmatprep.subr.bf16.mxu1 %v7266_v49  ;;  %v673_v25 = vld [vmem:[#allocation11 + $0x620] sm:$0xff] }
 0x2d7   :  { %v7286_v53 = vpack.c.bf16 %v679_v56, %v673_v25  ;;  %v703_v25 = vld [vmem:[#allocation11 + $0x710] sm:$0xff]  ;;  %v710_v56 = vld [vmem:[#allocation11 + $0x748] sm:$0xff] }
 0x2d9   :  { %4920 = vmatpush1.bf16.msra.mxu0 %v6521_v28  ;;  %4828 = vmatpush1.bf16.msra.mxu1 %v7270_v61  ;;  %8156 = vst [vmem:[#allocation226_spill] sm:$0xff] %v7286_v53  ;;  %v7290_v28 = vpack.c.bf16 %v692_v32, %v686_v63  ;;  %v8162_v63 = vld [vmem:[#allocation67_spill] sm:$0xff] }
 0x2da   :  { %4922 = vmatprep.subr.bf16.mxu0 %v6527_v62  ;;  %4830 = vmatprep.subr.bf16.mxu1 %v7274_v17  ;;  %v685_v62 = vld [vmem:[#allocation11 + $0x680] sm:$0xff] }
 0x2db   :  { %8157 = vst [vmem:[#allocation227_spill] sm:$0xff] %v7290_v28 }
 0x2dd   :  { %4924 = vmatpush1.bf16.msra.mxu0 %v6535_v9  ;;  %4832 = vmatpush1.bf16.msra.mxu1 %v7278_v24  ;;  %v7299_v9 = vpack.c.bf16 %v691_v3, %v685_v62  ;;  %v709_v62 = vld [vmem:[#allocation11 + $0x740] sm:$0xff]  ;;  %v715_v3 = vld [vmem:[#allocation11 + $0x770] sm:$0xff] }
 0x2de   :  { %4926 = vmatprep.subr.bf16.mxu0 %v6541_v42  ;;  %4834 = vmatprep.subr.bf16.mxu1 %v7282_v57  ;;  %v7303_v42 = vpack.c.bf16 %v704_v6, %v698_v0  ;;  %v722_v0 = vld [vmem:[#allocation11 + $0x7a8] sm:$0xff]  ;;  %v728_v6 = vld [vmem:[#allocation11 + $0x7d8] sm:$0xff] }
 0x2df   :  { %8158 = vst [vmem:[#allocation228_spill] sm:$0xff] %v7299_v9 }
 0x2e0   :  { %1816 = vmatmul.mubr.f32.vlgmr.msra.gmra.mrb[10].mxu1 %v7031_v39  ;;  %8159 = vst [vmem:[#allocation229_spill] sm:$0xff] %v7303_v42  ;;  %v716_v39 = vld [vmem:[#allocation11 + $0x778] sm:$0xff] }
 0x2e1   :  { %4928 = vmatpush1.bf16.msra.mxu0 %v6550_v36  ;;  %4836 = vmatpush1.bf16.msra.mxu1 %v7286_v53  ;;  %v8160_v36 = vld [vmem:[#allocation65_spill] sm:$0xff]  ;;  %v7317_v32 = vpack.c.bf16 %v716_v39, %v710_v56  ;;  %v721_v56 = vld [vmem:[#allocation11 + $0x7a0] sm:$0xff] }
 0x2e2   :  { %4930 = vmatprep.subr.bf16.mxu0 %v6556_v15  ;;  %4838 = vmatprep.subr.bf16.mxu1 %v7290_v28  ;;  %v7313_v15 = vpack.c.bf16 %v703_v25, %v697_v11  ;;  %v8164_v28 = vld [vmem:[#allocation68_spill] sm:$0xff]  ;;  %v8166_v11 = vld [vmem:[#allocation70_spill] sm:$0xff]  ;;  %v7326_v25 = vpack.c.bf16 %v728_v6, %v722_v0 }
 0x2e3   :  { %1886 = vmatprep.mubr.f32.mxu1 %v8136_v1  ;;  %8163 = vst [vmem:[#allocation67_spill] sm:$0xff] %v7317_v32  ;;  %v727_v39 = vld [vmem:[#allocation11 + $0x7d0] sm:$0xff]  ;;  %v746_v0 = vld [vmem:[#allocation11 + $0x868] sm:$0xff]  ;;  %v752_v6 = vld [vmem:[#allocation11 + $0x898] sm:$0xff] }
 0x2e4   :  { %2276 = vmatmul.mubr.f32.vlgmr.msra.gmra.mrb[6].mxu0 %v7295_v27  ;;  %8161 = vst [vmem:[#allocation65_spill] sm:$0xff] %v7313_v15  ;;  %8167 = vst [vmem:[#allocation70_spill] sm:$0xff] %v7326_v25  ;;  %v7330_v53 = vpack.c.bf16 %v727_v39, %v721_v56  ;;  %v7342_v56 = vpack.c.bf16 %v752_v6, %v746_v0  ;;  %v745_v39 = vld [vmem:[#allocation11 + $0x860] sm:$0xff]  ;;  %v8178_v0 = vld [vmem:[#allocation80_spill] sm:$0xff] }
 0x2e5   :  { %4932 = vmatpush1.bf16.msra.mxu0 %v8160_v36  ;;  %4840 = vmatpush1.bf16.msra.mxu1 %v7299_v9  ;;  %v7322_v36 = vpack.c.bf16 %v715_v3, %v709_v62  ;;  %v8168_v9 = vld [vmem:[#allocation71_spill] sm:$0xff] }
 0x2e6   :  { %4934 = vmatprep.subr.bf16.mxu0 %v8162_v63  ;;  %4842 = vmatprep.subr.bf16.mxu1 %v7303_v42  ;;  %v734_v63 = vld [vmem:[#allocation11 + $0x808] sm:$0xff]  ;;  %v740_v42 = vld [vmem:[#allocation11 + $0x838] sm:$0xff]  ;;  %v733_v3 = vld [vmem:[#allocation11 + $0x800] sm:$0xff] }
 0x2e7   :  { %2346 = vmatprep.mubr.f32.mxu0 %v7308_v37  ;;  %8165 = vst [vmem:[#allocation68_spill] sm:$0xff] %v7322_v36  ;;  %v7334_v62 = vpack.c.bf16 %v740_v42, %v734_v63  ;;  %v758_v42 = vld [vmem:[#allocation11 + $0x8c8] sm:$0xff]  ;;  %v764_v63 = vld [vmem:[#allocation11 + $0x8f8] sm:$0xff] }
 0x2e9   :  { %4936 = vmatpush1.bf16.msra.mxu0 %v8164_v28  ;;  %4844 = vmatpush1.bf16.msra.mxu1 %v7313_v15  ;;  %v8169_v28 = vld [vmem:[#allocation73_spill] sm:$0xff]  ;;  %8170 = vst [vmem:[#allocation71_spill] sm:$0xff] %v7334_v62 }
 0x2ea   :  { %4938 = vmatprep.subr.bf16.mxu0 %v8166_v11  ;;  %4846 = vmatprep.subr.bf16.mxu1 %v7317_v32  ;;  %v739_v11 = vld [vmem:[#allocation11 + $0x830] sm:$0xff]  ;;  %v8171_v32 = vld [vmem:[#allocation74_spill] sm:$0xff]  ;;  %8173 = vst [vmem:[#allocation73_spill] sm:$0xff] %v7342_v56 }
 0x2eb   :  { %v7338_v15 = vpack.c.bf16 %v739_v11, %v733_v3  ;;  %v7350_v3 = vpack.c.bf16 %v764_v63, %v758_v42  ;;  %v757_v11 = vld [vmem:[#allocation11 + $0x8c0] sm:$0xff] }
 0x2ec   :  { %v8183_v42 = vld [vmem:[#allocation86_spill] sm:$0xff] }
 0x2ed   :  { %4940 = vmatpush1.bf16.msra.mxu0 %v8168_v9  ;;  %4848 = vmatpush1.bf16.msra.mxu1 %v7322_v36  ;;  %v8172_v9 = vld [vmem:[#allocation76_spill] sm:$0xff]  ;;  %v5735_v63 = vld [vmem:[#allocation8] sm:$0x3f] }
 0x2ee   :  { %4942 = vmatprep.subr.bf16.mxu0 %v8169_v28  ;;  %4850 = vmatprep.subr.bf16.mxu1 %v7326_v25  ;;  %v751_v28 = vld [vmem:[#allocation11 + $0x890] sm:$0xff]  ;;  %8177 = vst [vmem:[#allocation76_spill] sm:$0xff] %v7350_v3 }
 0x2ef   :  { %v8174_v25 = vld [vmem:[#allocation77_spill] sm:$0xff]  ;;  %v7346_v36 = vpack.c.bf16 %v751_v28, %v745_v39  ;;  %v5734_v28 = vld [vmem:[#allocation8 + $0x8] sm:$0x3f] }
 0x2f0   :  { %v8182_v39 = vld [vmem:[#allocation85_spill] sm:$0xff] }
 0x2f1   :  { %4944 = vmatpush1.bf16.msra.mxu0 %v8171_v32  ;;  %4852 = vmatpush1.bf16.msra.mxu1 %v7330_v53  ;;  %8175 = vst [vmem:[#allocation74_spill] sm:$0xff] %v7346_v36  ;;  %v8176_v32 = vld [vmem:[#allocation79_spill] sm:$0xff] }
 0x2f2   :  { %4946 = vmatprep.subr.bf16.mxu0 %v8172_v9  ;;  %4854 = vmatprep.subr.bf16.mxu1 %v7334_v62  ;;  %v763_v9 = vld [vmem:[#allocation11 + $0x8f0] sm:$0xff]  ;;  %v8180_v62 = vld [vmem:[#allocation82_spill] sm:$0xff] }
 0x2f3   :  { %v7354_v6 = vpack.c.bf16 %v763_v9, %v757_v11  ;;  %v8186_v11 = vld [vmem:[#allocation89_spill] sm:$0xff] }
 0x2f4   :  { %v8187_v9 = vld [vmem:[#allocation33_spill] sm:$0xff] }
 0x2f5   :  { %4948 = vmatpush1.bf16.msra.mxu0 %v8174_v25  ;;  %4856 = vmatpush1.bf16.msra.mxu1 %v7338_v15  ;;  %8179 = vst [vmem:[#allocation77_spill] sm:$0xff] %v7354_v6  ;;  %v8181_v25 = vld [vmem:[#allocation83_spill] sm:$0xff] }
 0x2f6   :  { %4950 = vmatprep.subr.bf16.mxu0 %v8176_v32  ;;  %4858 = vmatprep.subr.bf16.mxu1 %v7342_v56  ;;  %v8185_v32 = vld [vmem:[#allocation32_spill] sm:$0xff] }
 0x2f9   :  { %4952 = vmatpush1.bf16.msra.mxu0 %v8178_v0  ;;  %4860 = vmatpush1.bf16.msra.mxu1 %v7346_v36  ;;  %v8188_v0 = vld [vmem:[#allocation91_spill] sm:$0xff] }
 0x2fa   :  { %4954 = vmatprep.subr.bf16.mxu0 %v8180_v62  ;;  %4862 = vmatprep.subr.bf16.mxu1 %v7350_v3  ;;  %v8184_v62 = vld [vmem:[#allocation88_spill] sm:$0xff] }
 0x2fd   :  { %4956 = vmatpush1.bf16.msra.mxu0 %v8181_v25  ;;  %4864 = vmatpush1.bf16.msra.mxu1 %v7354_v6  ;;  %v8190_v25 = vld [vmem:[#allocation92_spill] sm:$0xff]  ;;  %v8346_v6 = vld [vmem:[#allocation199_spill] sm:$0xff] }
 0x2fe   :  { %4958 = vmatprep.subr.bf16.mxu0 %v8182_v39  ;;  %3823 = vmatprep.subr.msk.mxu1 %vm779_vm1, %v5734_v28  ;;  %v8191_v39 = vld [vmem:[#allocation35_spill] sm:$0xff]  ;;  %v8192_v28 = vld [vmem:[#allocation94_spill] sm:$0xff] }
 0x300   :  { %1887 = vmatmul.mubr.f32.vlgmr.msra.gmra.mrb[10].mxu1 %v7142_v60  ;;  %v8189_v60 = vld [vmem:[#allocation34_spill] sm:$0xff] }
 0x301   :  { %4960 = vmatpush1.bf16.msra.mxu0 %v8183_v42  ;;  %3824 = vmatpush1.msk.msra.mxu1 %vm779_vm1, %v5735_v63  ;;  %v8193_v42 = vld [vmem:[#allocation36_spill] sm:$0xff]  ;;  %v8194_v63 = vld [vmem:[#allocation95_spill] sm:$0xff] }
 0x302   :  { %2077 = vmatprep.mubr.f32.mxu1 %v8136_v1  ;;  %4962 = vmatprep.subr.bf16.mxu0 %v8184_v62  ;;  %v8196_v62 = vld [vmem:[#allocation97_spill] sm:$0xff] }
 0x303   :  { %5042 = vmatprep.subr.bf16.mxu1 %v8185_v32  ;;  %v8197_v32 = vld [vmem:[#allocation38_spill] sm:$0xff] }
 0x304   :  { %3825 = vmatmul.mubr.msk.f32.vlgmr.msra.gmra.mrb[12].mxu1 %vm776_vm3, %v7155_v43  ;;  %v8195_v43 = vld [vmem:[#allocation37_spill] sm:$0xff] }
 0x305   :  { %4964 = vmatpush1.bf16.msra.mxu0 %v8186_v11  ;;  %5044 = vmatpush3.bf16.msra.mxu1 %v8187_v9  ;;  %v8198_v11 = vld [vmem:[#allocation98_spill] sm:$0xff]  ;;  %v8199_v9 = vld [vmem:[#allocation39_spill] sm:$0xff] }
 0x306   :  { %4966 = vmatprep.subr.bf16.mxu0 %v8188_v0  ;;  %5046 = vmatprep.subr.bf16.mxu1 %v8189_v60  ;;  %v8201_v0 = vld [vmem:[#allocation40_spill] sm:$0xff]  ;;  %v8202_v60 = vld [vmem:[#allocation101_spill] sm:$0xff] }
 0x307   :  { %2488 = vmatprep.mubr.f32.mxu1 %v7167_v47  ;;  %v8200_v47 = vld [vmem:[#allocation100_spill] sm:$0xff] }
 0x309   :  { %4968 = vmatpush1.bf16.msra.mxu0 %v8190_v25  ;;  %5048 = vmatpush3.bf16.msra.mxu1 %v8191_v39  ;;  %v8203_v25 = vld [vmem:[#allocation41_spill] sm:$0xff]  ;;  %v8204_v39 = vld [vmem:[#allocation102_spill] sm:$0xff] }
 0x30a   :  { %4970 = vmatprep.subr.bf16.mxu0 %v8192_v28  ;;  %5050 = vmatprep.subr.bf16.mxu1 %v8193_v42  ;;  %v8205_v28 = vld [vmem:[#allocation43_spill] sm:$0xff] }
 0x30b   :  { %v8206_v42 = vld [vmem:[#allocation103_spill] sm:$0xff] }
 0x30d   :  { %4972 = vmatpush1.bf16.msra.mxu0 %v8194_v63  ;;  %5052 = vmatpush3.bf16.msra.mxu1 %v8195_v43  ;;  %v8207_v63 = vld [vmem:[#allocation44_spill] sm:$0xff] }
 0x30e   :  { %4974 = vmatprep.subr.bf16.mxu0 %v8196_v62  ;;  %5054 = vmatprep.subr.bf16.mxu1 %v8197_v32  ;;  %v8208_v43 = vld [vmem:[#allocation104_spill] sm:$0xff]  ;;  %v8209_v62 = vld [vmem:[#allocation45_spill] sm:$0xff]  ;;  %v8210_v32 = vcombine.high %v7003_v4, %v7005_v48 }
 0x30f   :  { %v8218_v4 = vld [vmem:[#allocation49_spill] sm:$0xff] }
 0x311   :  { %4976 = vmatpush1.bf16.msra.mxu0 %v8198_v11  ;;  %5056 = vmatpush3.bf16.msra.mxu1 %v8199_v9  ;;  %v2171_v11 = vrot.slane %v8210_v32, %v6414_v40  ;;  %v8211_v9 = vld [vmem:[#allocation105_spill] sm:$0xff]  ;;  %v8221_v32 = vld [vmem:[#allocation110_spill] sm:$0xff] }
 0x312   :  { %4978 = vmatprep.subr.bf16.mxu0 %v8200_v47  ;;  %5058 = vmatprep.subr.bf16.mxu1 %v8201_v0  ;;  %v8212_v47 = vld [vmem:[#allocation46_spill] sm:$0xff] }
 0x313   :  { %v8213_v0 = vld [vmem:[#allocation106_spill] sm:$0xff] }
 0x315   :  { %4980 = vmatpush1.bf16.msra.mxu0 %v8202_v60  ;;  %5060 = vmatpush3.bf16.msra.mxu1 %v8203_v25  ;;  %v8214_v60 = vld [vmem:[#allocation47_spill] sm:$0xff]  ;;  %v2173_v25 = vcombine.high %v2171_v11, %v2171_v11 }
 0x316   :  { %4982 = vmatprep.subr.bf16.mxu0 %v8204_v39  ;;  %5062 = vmatprep.subr.bf16.mxu1 %v8205_v28  ;;  %v2202_v39 = vcombine.high %v7295_v27, %v7295_v27  ;;  %v8215_v28 = vld [vmem:[#allocation107_spill] sm:$0xff] }
 0x317   :  { %v2201_v48 = vrot.slane %v2173_v25, %v6414_v40  ;;  %v8227_v25 = vld [vmem:[#allocation113_spill] sm:$0xff] }
 0x319   :  { %4984 = vmatpush1.bf16.msra.mxu0 %v8206_v42  ;;  %5064 = vmatpush3.bf16.msra.mxu1 %v8207_v63  ;;  %v8216_v42 = vld [vmem:[#allocation48_spill] sm:$0xff] }
 0x31a   :  { %4986 = vmatprep.subr.bf16.mxu0 %v8208_v43  ;;  %5066 = vmatprep.subr.bf16.mxu1 %v8209_v62  ;;  %v8217_v63 = vld [vmem:[#allocation108_spill] sm:$0xff]  ;;  %v8219_v43 = vld [vmem:[#allocation109_spill] sm:$0xff]  ;;  %v8220_v62 = vld [vmem:[#allocation50_spill] sm:$0xff] }
 0x31d   :  { %4988 = vmatpush1.bf16.msra.mxu0 %v8211_v9  ;;  %5068 = vmatpush3.bf16.msra.mxu1 %v8212_v47  ;;  %v8222_v9 = vld [vmem:[#allocation51_spill] sm:$0xff] }
 0x31e   :  { %4990 = vmatprep.subr.bf16.mxu0 %v8213_v0  ;;  %5070 = vmatprep.subr.bf16.mxu1 %v8214_v60  ;;  %v8223_v47 = vld [vmem:[#allocation111_spill] sm:$0xff]  ;;  %v8224_v0 = vld [vmem:[#allocation52_spill] sm:$0xff] }
 0x31f   :  { %v8225_v60 = vld [vmem:[#allocation112_spill] sm:$0xff] }
 0x321   :  { %4992 = vmatpush1.bf16.msra.mxu0 %v8215_v28  ;;  %5072 = vmatpush3.bf16.msra.mxu1 %v8216_v42  ;;  %v8228_v28 = vld [vmem:[#allocation54_spill] sm:$0xff] }
 0x322   :  { %4994 = vmatprep.subr.bf16.mxu0 %v8217_v63  ;;  %5074 = vmatprep.subr.bf16.mxu1 %v8218_v4  ;;  %v8229_v42 = vld [vmem:[#allocation114_spill] sm:$0xff]  ;;  %v8230_v63 = vld [vmem:[#allocation55_spill] sm:$0xff] }
 0x323   :  { %v8231_v4 = vld [vmem:[#allocation115_spill] sm:$0xff] }
 0x324   :  { %2489 = vmatmul.mubr.f32.vlgmr.msra.gmra.mrb[14].mxu1 %v7295_v27  ;;  %2347 = vmatmul.mubr.f32.vlgmr.msra.gmra.mrb[6].mxu0 %v2202_v39  ;;  %v8226_v27 = vld [vmem:[#allocation53_spill] sm:$0xff] }
 0x325   :  { %4996 = vmatpush1.bf16.msra.mxu0 %v8219_v43  ;;  %5076 = vmatpush3.bf16.msra.mxu1 %v8220_v62  ;;  %v8233_v43 = vld [vmem:[#allocation116_spill] sm:$0xff]  ;;  %v8234_v62 = vld [vmem:[#allocation57_spill] sm:$0xff] }
 0x326   :  { %4998 = vmatprep.subr.bf16.mxu0 %v8221_v32  ;;  %5078 = vmatprep.subr.bf16.mxu1 %v8222_v9  ;;  %v8235_v32 = vld [vmem:[#allocation117_spill] sm:$0xff]  ;;  %v8236_v9 = vld [vmem:[#allocation58_spill] sm:$0xff] }
 0x327   :  { %2558 = vmatprep.mubr.f32.mxu1 %v7308_v37  ;;  %3828 = vmatprep.mubr.msk.f32.mxu0 %vm985_vm4, %v2201_v48  ;;  %v8232_v37 = vld [vmem:[#allocation56_spill] sm:$0xff] }
 0x329   :  { %5000 = vmatpush1.bf16.msra.mxu0 %v8223_v47  ;;  %5080 = vmatpush3.bf16.msra.mxu1 %v8224_v0  ;;  %v8237_v47 = vld [vmem:[#allocation118_spill] sm:$0xff]  ;;  %v8238_v0 = vld [vmem:[#allocation59_spill] sm:$0xff] }
 0x32a   :  { %5002 = vmatprep.subr.bf16.mxu0 %v8225_v60  ;;  %5082 = vmatprep.subr.bf16.mxu1 %v8226_v27  ;;  %v8239_v60 = vld [vmem:[#allocation119_spill] sm:$0xff]  ;;  %v8240_v27 = vld [vmem:[#allocation60_spill] sm:$0xff] }
 0x32d   :  { %5004 = vmatpush1.bf16.msra.mxu0 %v8227_v25  ;;  %5084 = vmatpush3.bf16.msra.mxu1 %v8228_v28  ;;  %v8241_v25 = vld [vmem:[#allocation120_spill] sm:$0xff]  ;;  %v8242_v28 = vld [vmem:[#allocation61_spill] sm:$0xff] }
 0x32e   :  { %5006 = vmatprep.subr.bf16.mxu0 %v8229_v42  ;;  %5086 = vmatprep.subr.bf16.mxu1 %v8230_v63  ;;  %v8243_v42 = vld [vmem:[#allocation121_spill] sm:$0xff]  ;;  %v8244_v63 = vld [vmem:[#allocation62_spill] sm:$0xff] }
 0x331   :  { %5008 = vmatpush1.bf16.msra.mxu0 %v8231_v4  ;;  %5088 = vmatpush3.bf16.msra.mxu1 %v8232_v37  ;;  %v8245_v4 = vld [vmem:[#allocation122_spill] sm:$0xff]  ;;  %v8246_v37 = vld [vmem:[#allocation63_spill] sm:$0xff] }
 0x332   :  { %5010 = vmatprep.subr.bf16.mxu0 %v8233_v43  ;;  %5090 = vmatprep.subr.bf16.mxu1 %v8234_v62  ;;  %v8247_v43 = vld [vmem:[#allocation123_spill] sm:$0xff]  ;;  %v8248_v62 = vld [vmem:[#allocation64_spill] sm:$0xff] }
 0x335   :  { %5012 = vmatpush1.bf16.msra.mxu0 %v8235_v32  ;;  %5092 = vmatpush3.bf16.msra.mxu1 %v8236_v9  ;;  %v8249_v32 = vld [vmem:[#allocation124_spill] sm:$0xff]  ;;  %v8250_v9 = vmov 0.0|0.0  }
 0x336   :  { %5014 = vmatprep.subr.bf16.mxu0 %v8237_v47  ;;  %5094 = vmatprep.subr.bf16.mxu1 %v8238_v0  ;;  %v8251_v47 = vld [vmem:[#allocation125_spill] sm:$0xff]  ;;  %v8252_v0 = vld [vmem:[#allocation66_spill] sm:$0xff] }
 0x339   :  { %5016 = vmatpush1.bf16.msra.mxu0 %v8239_v60  ;;  %5096 = vmatpush3.bf16.msra.mxu1 %v8240_v27  ;;  %v8253_v60 = vld [vmem:[#allocation126_spill] sm:$0xff]  ;;  %v8254_v27 = vld [vmem:[#allocation127_spill] sm:$0xff] }
 0x33a   :  { %5018 = vmatprep.subr.bf16.mxu0 %v8241_v25  ;;  %5098 = vmatprep.subr.bf16.mxu1 %v8242_v28  ;;  %v8255_v25 = vld [vmem:[#allocation69_spill] sm:$0xff]  ;;  %v8256_v28 = vld [vmem:[#allocation128_spill] sm:$0xff] }
 0x33d   :  { %5020 = vmatpush1.bf16.msra.mxu0 %v8243_v42  ;;  %5100 = vmatpush3.bf16.msra.mxu1 %v8244_v63  ;;  %v8257_v42 = vld [vmem:[#allocation129_spill] sm:$0xff]  ;;  %v8259_v63 = vld [vmem:[#allocation130_spill] sm:$0xff] }
 0x33e   :  { %5022 = vmatprep.subr.bf16.mxu0 %v8245_v4  ;;  %5102 = vmatprep.subr.bf16.mxu1 %v8246_v37  ;;  %v2187_v4 = vrot.slane %v2171_v11, %v6414_v40  ;;  %v8260_v37 = vld [vmem:[#allocation131_spill] sm:$0xff]  ;;  %v8268_v11 = vld [vmem:[#allocation141_spill] sm:$0xff] }
 0x33f   :  { %v8267_v40 = vld [vmem:[#allocation139_spill] sm:$0xff] }
 0x341   :  { %5024 = vmatpush1.bf16.msra.mxu0 %v8247_v43  ;;  %5104 = vmatpush3.bf16.msra.mxu1 %v8248_v62  ;;  %v8262_v43 = vld [vmem:[#allocation133_spill] sm:$0xff]  ;;  %v8263_v62 = vld [vmem:[#allocation78_spill] sm:$0xff] }
 0x342   :  { %5026 = vmatprep.subr.bf16.mxu0 %v8249_v32  ;;  %5105 = vmatprep.subr.bf16.mxu1 %v8250_v9  ;;  %v8264_v32 = vld [vmem:[#allocation135_spill] sm:$0xff] }
 0x344   :  { %2559 = vmatmul.mubr.f32.vlgmr.msra.gmra.mrb[16].mxu1 %v2202_v39  ;;  %v8258_v39 = vld [vmem:[#allocation72_spill] sm:$0xff] }
 0x345   :  { %5028 = vmatpush1.bf16.msra.mxu0 %v8251_v47  ;;  %5107 = vmatpush1.bf16.msra.mxu1 %v8252_v0  ;;  %v8265_v47 = vld [vmem:[#allocation137_spill] sm:$0xff] }
 0x346   :  { %5030 = vmatprep.subr.bf16.mxu0 %v8253_v60  ;;  %5108 = vmatprep.subr.bf16.mxu1 %v8250_v9  ;;  %v8266_v0 = vld [vmem:[#allocation81_spill] sm:$0xff]  ;;  %v8269_v60 = vld [vmem:[#allocation84_spill] sm:$0xff] }
 0x347   :  { %3829 = vmatprep.mubr.msk.f32.mxu1 %vm985_vm4, %v2201_v48  ;;  %v8261_v48 = vld [vmem:[#allocation75_spill] sm:$0xff] }
 0x349   :  { %5032 = vmatpush1.bf16.msra.mxu0 %v8254_v27  ;;  %5110 = vmatpush1.bf16.msra.mxu1 %v8255_v25  ;;  %v8270_v27 = vld [vmem:[#allocation143_spill] sm:$0xff]  ;;  %v8271_v25 = vld [vmem:[#allocation145_spill] sm:$0xff] }
 0x34a   :  { %5034 = vmatprep.subr.bf16.mxu0 %v8256_v28  ;;  %5111 = vmatprep.subr.bf16.mxu1 %v8250_v9  ;;  %v8272_v28 = vld [vmem:[#allocation87_spill] sm:$0xff] }
 0x34d   :  { %5036 = vmatpush1.bf16.msra.mxu0 %v8257_v42  ;;  %5113 = vmatpush1.bf16.msra.mxu1 %v8258_v39  ;;  %v8273_v42 = vld [vmem:[#allocation147_spill] sm:$0xff]  ;;  %v8274_v39 = vld [vmem:[#allocation149_spill] sm:$0xff] }
 0x34e   :  { %5038 = vmatprep.subr.bf16.mxu0 %v8259_v63  ;;  %5114 = vmatprep.subr.bf16.mxu1 %v8250_v9  ;;  %v8275_v63 = vld [vmem:[#allocation90_spill] sm:$0xff] }
 0x351   :  { %5040 = vmatpush1.bf16.msra.mxu0 %v8260_v37  ;;  %5116 = vmatpush1.bf16.msra.mxu1 %v8261_v48  ;;  %v8276_v37 = vld [vmem:[#allocation151_spill] sm:$0xff]  ;;  %v8277_v48 = vld [vmem:[#allocation153_spill] sm:$0xff] }
 0x352   :  { %5117 = vmatprep.subr.bf16.mxu1 %v8250_v9  ;;  %5238 = vmatprep.subr.bf16.mxu0 %v8262_v43  ;;  %v8278_v43 = vld [vmem:[#allocation93_spill] sm:$0xff] }
 0x354   :  { %2418 = vmatmul.mubr.f32.vlgmr.msra.gmra.mrb[6].mxu0 %v2187_v4 }
 0x355   :  { %5119 = vmatpush1.bf16.msra.mxu1 %v8263_v62  ;;  %5240 = vmatpush1.bf16.msra.mxu0 %v8264_v32  ;;  %v8279_v62 = vld [vmem:[#allocation155_spill] sm:$0xff]  ;;  %v8280_v32 = vld [vmem:[#allocation157_spill] sm:$0xff] }
 0x356   :  { %5120 = vmatprep.subr.bf16.mxu1 %v8250_v9  ;;  %5242 = vmatprep.subr.bf16.mxu0 %v8265_v47  ;;  %v8281_v47 = vld [vmem:[#allocation96_spill] sm:$0xff] }
 0x359   :  { %5122 = vmatpush1.bf16.msra.mxu1 %v8266_v0  ;;  %5244 = vmatpush1.bf16.msra.mxu0 %v8267_v40  ;;  %v7488_v0 = vld [vmem:[#allocation13] sm:$0x3f]  ;;  %v8283_v40 = vld [vmem:[#allocation159_spill] sm:$0xff] }
 0x35a   :  { %5123 = vmatprep.subr.bf16.mxu1 %v8250_v9  ;;  %5246 = vmatprep.subr.bf16.mxu0 %v8268_v11  ;;  %8282 = vst [vmem:[#allocation79_spill] sm:$0xff] %v7488_v0  ;;  %v8284_v11 = vld [vmem:[#allocation161_spill] sm:$0xff] }
 0x35d   :  { %5125 = vmatpush1.bf16.msra.mxu1 %v8269_v60  ;;  %5248 = vmatpush1.bf16.msra.mxu0 %v8270_v27  ;;  %v8285_v60 = vsub.s32 0, %v6397_v18  ;;  %v8345_v18 = vld [vmem:[#allocation198_spill] sm:$0xff] }
 0x35e   :  { %5126 = vmatprep.subr.bf16.mxu1 %v8250_v9  ;;  %5250 = vmatprep.subr.bf16.mxu0 %v8271_v25  ;;  %v8287_v25 = vld [vmem:[#allocation99_spill] sm:$0xff] }
 0x35f   :  { %v7496_v27 = vrot.slane %v7488_v0, %v8285_v60 }
 0x361   :  { %5128 = vmatpush1.bf16.msra.mxu1 %v8272_v28  ;;  %5252 = vmatpush1.bf16.msra.mxu0 %v8273_v42  ;;  %8286 = vst [vmem:[#allocation80_spill] sm:$0xff] %v7496_v27  ;;  %v8288_v28 = vld [vmem:[#allocation163_spill] sm:$0xff]  ;;  %v8289_v42 = vld [vmem:[#allocation132_spill] sm:$0xff] }
 0x362   :  { %5129 = vmatprep.subr.bf16.mxu1 %v8250_v9  ;;  %5254 = vmatprep.subr.bf16.mxu0 %v8274_v39  ;;  %v8290_v39 = vld [vmem:[#allocation165_spill] sm:$0xff] }
 0x365   :  { %5131 = vmatpush1.bf16.msra.mxu1 %v8275_v63  ;;  %5256 = vmatpush1.bf16.msra.mxu0 %v8276_v37 }
 0x366   :  { %5132 = vmatprep.subr.bf16.mxu1 %v8250_v9  ;;  %5258 = vmatprep.subr.bf16.mxu0 %v8277_v48 }
 0x369   :  { %5134 = vmatpush1.bf16.msra.mxu1 %v8278_v43  ;;  %5260 = vmatpush1.bf16.msra.mxu0 %v8279_v62 }
 0x36a   :  { %5135 = vmatprep.subr.bf16.mxu1 %v8250_v9  ;;  %5262 = vmatprep.subr.bf16.mxu0 %v8280_v32  ;;  %v8295_v32 = vld [vmem:[#allocation134_spill] sm:$0xff] }
 0x36d   :  { %5137 = vmatpush1.bf16.msra.mxu1 %v8281_v47  ;;  %5264 = vmatpush1.bf16.msra.mxu0 %v8283_v40  ;;  %v8296_v47 = vld [vmem:[#allocation167_spill] sm:$0xff]  ;;  %v8297_v40 = vld [vmem:[#allocation136_spill] sm:$0xff] }
 0x36e   :  { %5138 = vmatprep.subr.bf16.mxu1 %v8250_v9  ;;  %5266 = vmatprep.subr.bf16.mxu0 %v8284_v11  ;;  %v8298_v11 = vld [vmem:[#allocation169_spill] sm:$0xff] }
 0x371   :  { %5140 = vmatpush1.bf16.msra.mxu1 %v8287_v25  ;;  %5268 = vmatpush1.bf16.msra.mxu0 %v8288_v28  ;;  %v8299_v28 = vld [vmem:[#allocation138_spill] sm:$0xff] }
 0x372   :  { %5142 = vmatprep.subr.bf16.mxu1 %v8289_v42  ;;  %5270 = vmatprep.subr.bf16.mxu0 %v8290_v39  ;;  %v8300_v42 = vld [vmem:[#allocation171_spill] sm:$0xff]  ;;  %v8301_v39 = vld [vmem:[#allocation140_spill] sm:$0xff] }
 0x373   :  { %v1604_v63 = vpop.f32.mrb[8].mxu1  ;;  %v7502_v37 = vpop.f32.mrb[2].mxu0 }
 0x374   :  { %8291 = vst [vmem:[#allocation82_spill] sm:$0xff] %v7502_v37  ;;  %v7505_v48 = vadd.f32 %v1604_v63, %v7496_v27  ;;  %2629 = vmatmul.mubr.f32.vlgmr.msra.gmra.mrb[18].mxu1 %v2187_v4  ;;  %v7507_v43 = vpop.f32.mrb[9].mxu1  ;;  %v7509_v62 = vpop.f32.mrb[3].mxu0  ;;  %v8302_v4 = vld [vmem:[#allocation173_spill] sm:$0xff]  ;;  %v8303_v63 = vld [vmem:[#allocation142_spill] sm:$0xff]  ;;  %v8304_v37 = vld [vmem:[#allocation175_spill] sm:$0xff] }
 0x375   :  { %8293 = vst [vmem:[#allocation85_spill] sm:$0xff] %v7507_v43  ;;  %8294 = vst [vmem:[#allocation86_spill] sm:$0xff] %v7509_v62  ;;  %5144 = vmatpush1.bf16.msra.mxu1 %v8295_v32  ;;  %5272 = vmatpush1.bf16.msra.mxu0 %v8296_v47  ;;  %v8305_v32 = vld [vmem:[#allocation144_spill] sm:$0xff]  ;;  %v8306_v47 = vld [vmem:[#allocation177_spill] sm:$0xff] }
 0x376   :  { %8292 = vst [vmem:[#allocation83_spill] sm:$0xff] %v7505_v48  ;;  %5146 = vmatprep.subr.bf16.mxu1 %v8297_v40  ;;  %5274 = vmatprep.subr.bf16.mxu0 %v8298_v11  ;;  %v8307_v40 = vld [vmem:[#allocation146_spill] sm:$0xff]  ;;  %v8308_v11 = vld [vmem:[#allocation179_spill] sm:$0xff] }
 0x377   :  { %v2150_v60 = vpop.f32.mrb[4].mxu0 }
 0x378   :  { %v4230_v25 = vpop.f32.mrb[5].mxu0 }
 0x379   :  { %5148 = vmatpush1.bf16.msra.mxu1 %v8299_v28  ;;  %5276 = vmatpush1.bf16.msra.mxu0 %v8300_v42  ;;  %v8309_v25 = vld [vmem:[#allocation148_spill] sm:$0xff]  ;;  %v8310_v28 = vld [vmem:[#allocation181_spill] sm:$0xff]  ;;  %v8311_v42 = vld [vmem:[#allocation150_spill] sm:$0xff] }
 0x37a   :  { %5150 = vmatprep.subr.bf16.mxu1 %v8301_v39  ;;  %5278 = vmatprep.subr.bf16.mxu0 %v8302_v4  ;;  %v8312_v39 = vld [vmem:[#allocation183_spill] sm:$0xff]  ;;  %v8313_v4 = vld [vmem:[#allocation152_spill] sm:$0xff] }
 0x37d   :  { %5152 = vmatpush1.bf16.msra.mxu1 %v8303_v63  ;;  %5280 = vmatpush1.bf16.msra.mxu0 %v8304_v37  ;;  %v8314_v63 = vld [vmem:[#allocation185_spill] sm:$0xff]  ;;  %v8315_v37 = vld [vmem:[#allocation154_spill] sm:$0xff] }
 0x37e   :  { %5154 = vmatprep.subr.bf16.mxu1 %v8305_v32  ;;  %5282 = vmatprep.subr.bf16.mxu0 %v8306_v47  ;;  %v8316_v32 = vld [vmem:[#allocation187_spill] sm:$0xff]  ;;  %v8317_v47 = vld [vmem:[#allocation156_spill] sm:$0xff] }
 0x381   :  { %5156 = vmatpush1.bf16.msra.mxu1 %v8307_v40  ;;  %5284 = vmatpush1.bf16.msra.mxu0 %v8308_v11  ;;  %v8318_v40 = vld [vmem:[#allocation189_spill] sm:$0xff]  ;;  %v8319_v11 = vld [vmem:[#allocation158_spill] sm:$0xff] }
 0x382   :  { %5158 = vmatprep.subr.bf16.mxu1 %v8309_v25  ;;  %5286 = vmatprep.subr.bf16.mxu0 %v8310_v28  ;;  %v8320_v25 = vld [vmem:[#allocation191_spill] sm:$0xff]  ;;  %v8321_v28 = vld [vmem:[#allocation160_spill] sm:$0xff] }
 0x385   :  { %5160 = vmatpush1.bf16.msra.mxu1 %v8311_v42  ;;  %5288 = vmatpush1.bf16.msra.mxu0 %v8312_v39  ;;  %v8322_v42 = vld [vmem:[#allocation193_spill] sm:$0xff]  ;;  %v8323_v39 = vld [vmem:[#allocation162_spill] sm:$0xff] }
 0x386   :  { %5162 = vmatprep.subr.bf16.mxu1 %v8313_v4  ;;  %5290 = vmatprep.subr.bf16.mxu0 %v8314_v63  ;;  %v8324_v4 = vld [vmem:[#allocation195_spill] sm:$0xff]  ;;  %v8325_v63 = vld [vmem:[#allocation164_spill] sm:$0xff] }
 0x389   :  { %5164 = vmatpush1.bf16.msra.mxu1 %v8315_v37  ;;  %5292 = vmatpush1.bf16.msra.mxu0 %v8316_v32  ;;  %v8326_v37 = vld [vmem:[#allocation197_spill] sm:$0xff]  ;;  %v8327_v32 = vld [vmem:[#allocation166_spill] sm:$0xff] }
 0x38a   :  { %5166 = vmatprep.subr.bf16.mxu1 %v8317_v47  ;;  %5294 = vmatprep.subr.bf16.mxu0 %v8318_v40  ;;  %v8328_v47 = vld [vmem:[#allocation168_spill] sm:$0xff]  ;;  %v8329_v40 = vld [vmem:[#allocation170_spill] sm:$0xff] }
 0x38d   :  { %5168 = vmatpush1.bf16.msra.mxu1 %v8319_v11  ;;  %5296 = vmatpush1.bf16.msra.mxu0 %v8320_v25  ;;  %v8330_v11 = vld [vmem:[#allocation172_spill] sm:$0xff]  ;;  %v8331_v25 = vld [vmem:[#allocation174_spill] sm:$0xff] }
 0x38e   :  { %5170 = vmatprep.subr.bf16.mxu1 %v8321_v28  ;;  %5298 = vmatprep.subr.bf16.mxu0 %v8322_v42  ;;  %v8332_v28 = vld [vmem:[#allocation176_spill] sm:$0xff]  ;;  %v8333_v42 = vld [vmem:[#allocation178_spill] sm:$0xff] }
 0x391   :  { %5172 = vmatpush1.bf16.msra.mxu1 %v8323_v39  ;;  %5300 = vmatpush1.bf16.msra.mxu0 %v8324_v4  ;;  %v8334_v39 = vld [vmem:[#allocation180_spill] sm:$0xff]  ;;  %v8335_v4 = vld [vmem:[#allocation182_spill] sm:$0xff] }
 0x392   :  { %5174 = vmatprep.subr.bf16.mxu1 %v8325_v63  ;;  %5302 = vmatprep.subr.bf16.mxu0 %v8326_v37  ;;  %v8336_v63 = vld [vmem:[#allocation184_spill] sm:$0xff]  ;;  %v8337_v37 = vld [vmem:[#allocation186_spill] sm:$0xff] }
 0x395   :  { %5176 = vmatpush1.bf16.msra.mxu1 %v8327_v32  ;;  %v8338_v32 = vld [vmem:[#allocation188_spill] sm:$0xff] }
 0x396   :  { %5178 = vmatprep.subr.bf16.mxu1 %v8328_v47  ;;  %v8339_v47 = vld [vmem:[#allocation190_spill] sm:$0xff] }
 0x399   :  { %5180 = vmatpush1.bf16.msra.mxu1 %v8329_v40  ;;  %v8340_v40 = vld [vmem:[#allocation192_spill] sm:$0xff] }
 0x39a   :  { %5182 = vmatprep.subr.bf16.mxu1 %v8330_v11  ;;  %v8341_v11 = vld [vmem:[#allocation194_spill] sm:$0xff] }
 0x39d   :  { %5184 = vmatpush1.bf16.msra.mxu1 %v8331_v25  ;;  %v8342_v25 = vld [vmem:[#allocation196_spill] sm:$0xff] }
 0x39e   :  { %5186 = vmatprep.subr.bf16.mxu1 %v8332_v28 }
 0x3a1   :  { %5188 = vmatpush1.bf16.msra.mxu1 %v8333_v42 }
 0x3a2   :  { %5190 = vmatprep.subr.bf16.mxu1 %v8334_v39 }
 0x3a5   :  { %5192 = vmatpush1.bf16.msra.mxu1 %v8335_v4 }
 0x3a6   :  { %5194 = vmatprep.subr.bf16.mxu1 %v8336_v63 }
 0x3a9   :  { %5196 = vmatpush1.bf16.msra.mxu1 %v8337_v37 }
 0x3aa   :  { %5198 = vmatprep.subr.bf16.mxu1 %v8338_v32 }
 0x3ad   :  { %5200 = vmatpush1.bf16.msra.mxu1 %v8339_v47 }
 0x3ae   :  { %5202 = vmatprep.subr.bf16.mxu1 %v8340_v40 }
 0x3b1   :  { %5204 = vmatpush1.bf16.msra.mxu1 %v8341_v11 }
 0x3b2   :  { %5206 = vmatprep.subr.bf16.mxu1 %v8342_v25 }
 0x3d3   :  { %v7559_v28 = vpop.f32.mrb[10].mxu1 }
 0x3d4   :  { %8343 = vst [vmem:[#allocation88_spill] sm:$0xff] %v7559_v28  ;;  %v7561_v42 = vpop.f32.mrb[11].mxu1 }
 0x3d5   :  { %8344 = vst [vmem:[#allocation32_spill] sm:$0xff] %v7561_v42 }
 0x3d7   :  { %v2079_v39 = vpop.f32.mrb[12].mxu1 }
 0x3d8   :  { %v2081_v4 = vpop.f32.mrb[13].mxu1 }
 0x3f7   :  { %v3939_v9 = vpop.f32.mrb[14].mxu1 }
 0x3f8   :  { %v3940_v63 = vpop.f32.mrb[15].mxu1 }
 0x3f9   :  { %v3941_v62 = vadd.f32 %v3940_v63, %v3939_v9  ;;  %v8347_v9 = vld [vmem:[#allocation200_spill] sm:$0xff]  ;;  %v8361_v63 = vld [vmem:[#allocation214_spill] sm:$0xff] }
 0x3fb   :  { %v2491_v37 = vadd.f32 %v3941_v62, %v2150_v60  ;;  %v8355_v62 = vld [vmem:[#allocation208_spill] sm:$0xff]  ;;  %v8356_v60 = vld [vmem:[#allocation209_spill] sm:$0xff] }
 0x417   :  { %v3974_v48 = vpop.f32.mrb[16].mxu1 }
 0x418   :  { %v3975_v32 = vpop.f32.mrb[17].mxu1 }
 0x419   :  { %v3976_v43 = vadd.f32 %v3975_v32, %v3974_v48  ;;  %v8353_v48 = vld [vmem:[#allocation206_spill] sm:$0xff]  ;;  %v8363_v32 = vld [vmem:[#allocation216_spill] sm:$0xff] }
 0x41b   :  { %v2561_v47 = vadd.f32 %v3976_v43, %v2491_v37  ;;  %v8354_v43 = vld [vmem:[#allocation207_spill] sm:$0xff] }
 0x41c   :  { %v8362_v37 = vld [vmem:[#allocation215_spill] sm:$0xff] }
 0x427   :  { %v2419_v27 = vpop.f32.mrb[6].mxu0 }
 0x428   :  { %v5675_v40 = vadd.f32 %v2419_v27, %v2079_v39  ;;  %v2421_v0 = vpop.f32.mrb[7].mxu0  ;;  %v8348_v27 = vld [vmem:[#allocation201_spill] sm:$0xff]  ;;  %v8359_v39 = vld [vmem:[#allocation212_spill] sm:$0xff] }
 0x429   :  { %v5676_v11 = vadd.f32 %v2421_v0, %v2081_v4  ;;  %v8349_v0 = vld [vmem:[#allocation202_spill] sm:$0xff]  ;;  %v8360_v4 = vld [vmem:[#allocation213_spill] sm:$0xff] }
 0x42a   :  { %v2634_v25 = vadd.f32 %v5675_v40, %v8345_v18  ;;  %v8350_v18 = vld [vmem:[#allocation203_spill] sm:$0xff]  ;;  %v8364_v40 = vld [vmem:[#allocation217_spill] sm:$0xff] }
 0x42b   :  { %v2635_v28 = vadd.f32 %v5676_v11, %v8346_v6  ;;  %v8352_v6 = vld [vmem:[#allocation205_spill] sm:$0xff]  ;;  %v8365_v11 = vld [vmem:[#allocation218_spill] sm:$0xff] }
 0x42c   :  { %v2637_v3 = vmul.f32 0.01, %v2634_v25 }
 0x42d   :  { %v2638_v42 = vmul.f32 0.01, %v2635_v28 }
 0x42e   :  { %v7565_v56 = vmax.f32 %v2634_v25, %v2637_v3  ;;  %v8351_v3 = vld [vmem:[#allocation204_spill] sm:$0xff] }
 0x42f   :  { %v2641_v36 = vmax.f32 %v2635_v28, %v2638_v42  ;;  %v8357_v28 = vld [vmem:[#allocation210_spill] sm:$0xff]  ;;  %v8358_v42 = vld [vmem:[#allocation211_spill] sm:$0xff] }
 0x431   :  { %2707 = vmatprep.mubr.f32.mxu1 %v2641_v36  ;;  %2849 = vmatprep.mubr.f32.mxu0 %v2641_v36 }
 0x432   :  { %2708 = vmatmul.mubr.f32.vlgmr.msra.gmra.mrb[20].mxu1 %v7565_v56  ;;  %2850 = vmatmul.mubr.f32.vlgmr.msra.gmra.mrb[8].mxu0 %v7565_v56 }
 0x433   :  { %5208 = vmatpush1.bf16.msra.mxu1 %v8347_v9  ;;  %5304 = vmatpush1.bf16.msra.mxu0 %v8348_v27  ;;  %v8367_v27 = vld [vmem:[#allocation221_spill] sm:$0xff] }
 0x434   :  { %5210 = vmatprep.subr.bf16.mxu1 %v8349_v0  ;;  %5306 = vmatprep.subr.bf16.mxu0 %v8350_v18  ;;  %v3098_v0 = vld [vmem:[#allocation14 + $0x380] sm:$0xff]  ;;  %v3099_v18 = vld [vmem:[#allocation14 + $0x388] sm:$0xff] }
 0x435   :  { %2778 = vmatprep.mubr.f32.mxu1 %v8136_v1  ;;  %2920 = vmatprep.mubr.f32.mxu0 %v8136_v1 }
 0x437   :  { %5212 = vmatpush1.bf16.msra.mxu1 %v8351_v3  ;;  %5308 = vmatpush1.bf16.msra.mxu0 %v8352_v6  ;;  %v8368_v3 = vld [vmem:[#allocation220_spill] sm:$0xff] }
 0x438   :  { %5214 = vmatprep.subr.bf16.mxu1 %v8353_v48  ;;  %5310 = vmatprep.subr.bf16.mxu0 %v8354_v43  ;;  %v8369_v48 = vld [vmem:[#allocation222_spill] sm:$0xff] }
 0x43b   :  { %5216 = vmatpush1.bf16.msra.mxu1 %v8355_v62  ;;  %5312 = vmatpush1.bf16.msra.mxu0 %v8356_v60  ;;  %v8370_v62 = vld [vmem:[#allocation223_spill] sm:$0xff]  ;;  %v8371_v60 = vld [vmem:[#allocation224_spill] sm:$0xff] }
 0x43c   :  { %5218 = vmatprep.subr.bf16.mxu1 %v7063_v20  ;;  %5314 = vmatprep.subr.bf16.mxu0 %v8357_v28  ;;  %v8366_v20 = vld [vmem:[#allocation219_spill] sm:$0xff]  ;;  %v5429_v28 = vpack.c.bf16 %v3099_v18, %v3098_v0 }
 0x43f   :  { %5220 = vmatpush1.bf16.msra.mxu1 %v8358_v42  ;;  %5316 = vmatpush1.bf16.msra.mxu0 %v8359_v39  ;;  %v3083_v42 = vld [vmem:[#allocation14 + $0x308] sm:$0xff]  ;;  %v3100_v39 = vld [vmem:[#allocation14 + $0x390] sm:$0xff] }
 0x440   :  { %5222 = vmatprep.subr.bf16.mxu1 %v7075_v23  ;;  %5318 = vmatprep.subr.bf16.mxu0 %v8360_v4  ;;  %v3101_v4 = vld [vmem:[#allocation14 + $0x398] sm:$0xff] }
 0x443   :  { %5224 = vmatpush1.bf16.msra.mxu1 %v8361_v63  ;;  %5320 = vmatpush1.bf16.msra.mxu0 %v8362_v37  ;;  %v8372_v63 = vld [vmem:[#allocation225_spill] sm:$0xff]  ;;  %v5433_v37 = vpack.c.bf16 %v3101_v4, %v3100_v39  ;;  %v3146_v4 = vld [vmem:[#allocation14 + $0x500] sm:$0xff] }
 0x444   :  { %5226 = vmatprep.subr.bf16.mxu1 %v8363_v32  ;;  %5322 = vmatprep.subr.bf16.mxu0 %v8364_v40  ;;  %v3084_v32 = vld [vmem:[#allocation14 + $0x310] sm:$0xff]  ;;  %v3085_v40 = vld [vmem:[#allocation14 + $0x318] sm:$0xff] }
 0x447   :  { %5228 = vmatpush1.bf16.msra.mxu1 %v8365_v11  ;;  %5324 = vmatpush1.bf16.msra.mxu0 %v8366_v20  ;;  %v2630_v25 = vpop.f32.mrb[18].mxu1  ;;  %v3102_v11 = vld [vmem:[#allocation14 + $0x3a0] sm:$0xff]  ;;  %v3103_v20 = vld [vmem:[#allocation14 + $0x3a8] sm:$0xff] }
 0x448   :  { %v2631_v9 = vadd.f32 %v2630_v25, %v2561_v47  ;;  %5230 = vmatprep.subr.bf16.mxu1 %v7105_v14  ;;  %5326 = vmatprep.subr.bf16.mxu0 %v8367_v27  ;;  %v2632_v23 = vpop.f32.mrb[19].mxu1  ;;  %v3082_v47 = vld [vmem:[#allocation14 + $0x300] sm:$0xff]  ;;  %v3104_v27 = vld [vmem:[#allocation14 + $0x3b0] sm:$0xff] }
 0x449   :  { %v3086_v25 = vld [vmem:[#allocation14 + $0x320] sm:$0xff]  ;;  %v3105_v23 = vld [vmem:[#allocation14 + $0x3b8] sm:$0xff] }
 0x44a   :  { %v2636_v6 = vadd.f32 %v2631_v9, %v8368_v3  ;;  %v3087_v9 = vld [vmem:[#allocation14 + $0x328] sm:$0xff]  ;;  %v5441_v18 = vpack.c.bf16 %v3105_v23, %v3104_v27  ;;  %v3106_v3 = vld [vmem:[#allocation14 + $0x3c0] sm:$0xff] }
 0x44b   :  { %5232 = vmatpush1.bf16.msra.mxu1 %v8369_v48  ;;  %5328 = vmatpush1.bf16.msra.mxu0 %v7113_v29  ;;  %v5431_v29 = vpack.c.bf16 %v3083_v42, %v3082_v47  ;;  %v5439_v0 = vpack.c.bf16 %v3087_v9, %v3086_v25  ;;  %v3092_v47 = vld [vmem:[#allocation14 + $0x350] sm:$0xff]  ;;  %v3163_v42 = vld [vmem:[#allocation14 + $0x588] sm:$0xff] }
 0x44c   :  { %v2639_v43 = vmul.f32 0.01, %v2636_v6  ;;  %5234 = vmatprep.subr.bf16.mxu1 %v8370_v62  ;;  %5330 = vmatprep.subr.bf16.mxu0 %v8371_v60  ;;  %v3108_v62 = vld [vmem:[#allocation14 + $0x3d0] sm:$0xff]  ;;  %v3167_v25 = vld [vmem:[#allocation14 + $0x5a8] sm:$0xff] }
 0x44d   :  { %v3151_v27 = vld [vmem:[#allocation14 + $0x528] sm:$0xff] }
 0x44e   :  { %v7600_v14 = vmax.f32 %v2636_v6, %v2639_v43  ;;  %v3090_v43 = vld [vmem:[#allocation14 + $0x340] sm:$0xff] }
 0x44f   :  { %5236 = vmatpush1.bf16.msra.mxu1 %v8372_v63  ;;  %5332 = vmatpush1.bf16.msra.mxu0 %v7129_v34  ;;  %v5435_v34 = vpack.c.bf16 %v3085_v40, %v3084_v32  ;;  %v3147_v63 = vld [vmem:[#allocation14 + $0x508] sm:$0xff]  ;;  %v3165_v32 = vld [vmem:[#allocation14 + $0x598] sm:$0xff] }
 0x450   :  { %5334 = vmatprep.subr.bf16.mxu1 %v7133_v45  ;;  %5430 = vmatprep.subr.bf16.mxu0 %v5429_v28  ;;  %v5437_v45 = vpack.c.bf16 %v3103_v20, %v3102_v11  ;;  %v3148_v11 = vld [vmem:[#allocation14 + $0x510] sm:$0xff]  ;;  %v3149_v20 = vld [vmem:[#allocation14 + $0x518] sm:$0xff] }
 0x452   :  { %2779 = vmatmul.mubr.f32.vlgmr.msra.gmra.mrb[20].mxu1 %v7600_v14  ;;  %2921 = vmatmul.mubr.f32.vlgmr.msra.gmra.mrb[8].mxu0 %v7600_v14 }
 0x453   :  { %5336 = vmatpush1.bf16.msra.mxu1 %v7140_v38  ;;  %2991 = vmatprep.mubr.f32.mxu1 %v2641_v36  ;;  %v3088_v38 = vld [vmem:[#allocation14 + $0x330] sm:$0xff]  ;;  %v3089_v36 = vld [vmem:[#allocation14 + $0x338] sm:$0xff] }
 0x454   :  { %5338 = vmatprep.subr.bf16.mxu1 %v7146_v13  ;;  %5432 = vmatpush3.bf16.msra.mxu0 %v5431_v29  ;;  %v3107_v13 = vld [vmem:[#allocation14 + $0x3c8] sm:$0xff]  ;;  %v5443_v6 = vpack.c.bf16 %v3089_v36, %v3088_v38  ;;  %v5495_v29 = vpack.c.bf16 %v3147_v63, %v3146_v4  ;;  %v3152_v36 = vld [vmem:[#allocation14 + $0x530] sm:$0xff]  ;;  %v3114_v4 = vld [vmem:[#allocation14 + $0x400] sm:$0xff] }
 0x455   :  { %5434 = vmatprep.subr.bf16.mxu0 %v5433_v37  ;;  %v5445_v48 = vpack.c.bf16 %v3107_v13, %v3106_v3  ;;  %v3164_v37 = vld [vmem:[#allocation14 + $0x590] sm:$0xff]  ;;  %v3153_v3 = vld [vmem:[#allocation14 + $0x538] sm:$0xff]  ;;  %v3115_v63 = vld [vmem:[#allocation14 + $0x408] sm:$0xff] }
 0x456   :  { %v5497_v40 = vpack.c.bf16 %v3165_v32, %v3164_v37  ;;  %v5507_v13 = vpack.c.bf16 %v3153_v3, %v3152_v36  ;;  %v3132_v32 = vld [vmem:[#allocation14 + $0x490] sm:$0xff]  ;;  %v3119_v36 = vld [vmem:[#allocation14 + $0x428] sm:$0xff] }
 0x457   :  { %5340 = vmatpush1.bf16.msra.mxu1 %v7157_v55  ;;  %v3091_v55 = vld [vmem:[#allocation14 + $0x348] sm:$0xff]  ;;  %v3136_v3 = vld [vmem:[#allocation14 + $0x4b0] sm:$0xff] }
 0x458   :  { %5342 = vmatprep.subr.bf16.mxu1 %v7162_v31  ;;  %5436 = vmatpush3.bf16.msra.mxu0 %v5435_v34  ;;  %v3109_v31 = vld [vmem:[#allocation14 + $0x3d8] sm:$0xff]  ;;  %v5447_v60 = vpack.c.bf16 %v3091_v55, %v3090_v43  ;;  %v5499_v34 = vpack.c.bf16 %v3149_v20, %v3148_v11  ;;  %v3154_v55 = vld [vmem:[#allocation14 + $0x540] sm:$0xff]  ;;  %v5463_v20 = vpack.c.bf16 %v3115_v63, %v3114_v4 }
 0x459   :  { %5438 = vmatprep.subr.bf16.mxu0 %v5437_v45  ;;  %v5449_v28 = vpack.c.bf16 %v3109_v31, %v3108_v62  ;;  %v3166_v45 = vld [vmem:[#allocation14 + $0x5a0] sm:$0xff]  ;;  %v3155_v62 = vld [vmem:[#allocation14 + $0x548] sm:$0xff] }
 0x45a   :  { %v5501_v9 = vpack.c.bf16 %v3167_v25, %v3166_v45  ;;  %v5511_v31 = vpack.c.bf16 %v3155_v62, %v3154_v55  ;;  %v3116_v25 = vld [vmem:[#allocation14 + $0x410] sm:$0xff]  ;;  %v3121_v55 = vld [vmem:[#allocation14 + $0x438] sm:$0xff]  ;;  %v3138_v62 = vld [vmem:[#allocation14 + $0x4c0] sm:$0xff] }
 0x45b   :  { %5344 = vmatpush1.bf16.msra.mxu1 %v7173_v59  ;;  %v3093_v59 = vld [vmem:[#allocation14 + $0x358] sm:$0xff]  ;;  %v1905_v63 = vld [vmem:[#allocation14] sm:$0xff] }
 0x45c   :  { %5346 = vmatprep.subr.bf16.mxu1 %v7177_v7  ;;  %5440 = vmatpush3.bf16.msra.mxu0 %v5439_v0  ;;  %v5451_v7 = vpack.c.bf16 %v3093_v59, %v3092_v47  ;;  %v3168_v0 = vld [vmem:[#allocation14 + $0x5b0] sm:$0xff] }
 0x45d   :  { %5442 = vmatprep.subr.bf16.mxu0 %v5441_v18  ;;  %v3169_v18 = vld [vmem:[#allocation14 + $0x5b8] sm:$0xff]  ;;  %v3156_v59 = vld [vmem:[#allocation14 + $0x550] sm:$0xff] }
 0x45e   :  { %v5505_v38 = vpack.c.bf16 %v3169_v18, %v3168_v0 }
 0x45f   :  { %5348 = vmatpush1.bf16.msra.mxu1 %v7182_v16  ;;  %v8373_v16 = vld [vmem:[#allocation226_spill] sm:$0xff] }
 0x460   :  { %5350 = vmatprep.subr.bf16.mxu1 %v7186_v22  ;;  %5444 = vmatpush3.bf16.msra.mxu0 %v5443_v6  ;;  %v8374_v22 = vld [vmem:[#allocation227_spill] sm:$0xff] }
 0x461   :  { %5446 = vmatprep.subr.bf16.mxu0 %v5445_v48  ;;  %v3170_v6 = vld [vmem:[#allocation14 + $0x5c0] sm:$0xff]  ;;  %v3171_v48 = vld [vmem:[#allocation14 + $0x5c8] sm:$0xff] }
 0x462   :  { %v5509_v43 = vpack.c.bf16 %v3171_v48, %v3170_v6 }
 0x463   :  { %5352 = vmatpush1.bf16.msra.mxu1 %v7190_v26  ;;  %v8375_v26 = vld [vmem:[#allocation228_spill] sm:$0xff] }
 0x464   :  { %5354 = vmatprep.subr.bf16.mxu1 %v7194_v30  ;;  %5448 = vmatpush3.bf16.msra.mxu0 %v5447_v60  ;;  %v8376_v30 = vld [vmem:[#allocation229_spill] sm:$0xff] }
 0x465   :  { %5450 = vmatprep.subr.bf16.mxu0 %v5449_v28  ;;  %v3172_v60 = vld [vmem:[#allocation14 + $0x5d0] sm:$0xff]  ;;  %v3173_v28 = vld [vmem:[#allocation14 + $0x5d8] sm:$0xff] }
 0x466   :  { %v5513_v47 = vpack.c.bf16 %v3173_v28, %v3172_v60 }
 0x467   :  { %5356 = vmatpush1.bf16.msra.mxu1 %v7198_v52  ;;  %v8377_v52 = vld [vmem:[#allocation65_spill] sm:$0xff] }
 0x468   :  { %5358 = vmatprep.subr.bf16.mxu1 %v7202_v46  ;;  %5452 = vmatpush3.bf16.msra.mxu0 %v5451_v7  ;;  %v8378_v46 = vld [vmem:[#allocation67_spill] sm:$0xff]  ;;  %v3157_v7 = vld [vmem:[#allocation14 + $0x558] sm:$0xff] }
 0x46b   :  { %5360 = vmatpush1.bf16.msra.mxu1 %v7206_v21  ;;  %v8379_v21 = vld [vmem:[#allocation68_spill] sm:$0xff] }
 0x46c   :  { %5362 = vmatprep.subr.bf16.mxu1 %v7210_v58  ;;  %v8380_v58 = vld [vmem:[#allocation70_spill] sm:$0xff] }
 0x46f   :  { %5364 = vmatpush1.bf16.msra.mxu1 %v7214_v51  ;;  %v3110_v51 = vld [vmem:[#allocation14 + $0x3e0] sm:$0xff] }
 0x470   :  { %5366 = vmatprep.subr.bf16.mxu1 %v7218_v12  ;;  %v3111_v12 = vld [vmem:[#allocation14 + $0x3e8] sm:$0xff] }
 0x473   :  { %5368 = vmatpush1.bf16.msra.mxu1 %v7222_v5  ;;  %v5453_v5 = vpack.c.bf16 %v3111_v12, %v3110_v51  ;;  %v3177_v51 = vld [vmem:[#allocation14 + $0x5f8] sm:$0xff] }
 0x474   :  { %5370 = vmatprep.subr.bf16.mxu1 %v7226_v33  ;;  %v3094_v33 = vld [vmem:[#allocation14 + $0x360] sm:$0xff] }
 0x475   :  { %5454 = vmatprep.subr.bf16.mxu0 %v5453_v5  ;;  %v3160_v5 = vld [vmem:[#allocation14 + $0x570] sm:$0xff] }
 0x477   :  { %5372 = vmatpush1.bf16.msra.mxu1 %v7230_v35  ;;  %v3095_v35 = vld [vmem:[#allocation14 + $0x368] sm:$0xff] }
 0x478   :  { %5374 = vmatprep.subr.bf16.mxu1 %v7234_v54  ;;  %v8381_v54 = vld [vmem:[#allocation71_spill] sm:$0xff] }
 0x47b   :  { %5376 = vmatpush1.bf16.msra.mxu1 %v7238_v50  ;;  %v5455_v50 = vpack.c.bf16 %v3095_v35, %v3094_v33  ;;  %v3161_v33 = vld [vmem:[#allocation14 + $0x578] sm:$0xff] }
 0x47c   :  { %5378 = vmatprep.subr.bf16.mxu1 %v7242_v10  ;;  %v3112_v10 = vld [vmem:[#allocation14 + $0x3f0] sm:$0xff]  ;;  %v5523_v35 = vpack.c.bf16 %v3161_v33, %v3160_v5  ;;  %v3127_v5 = vld [vmem:[#allocation14 + $0x468] sm:$0xff] }
 0x47d   :  { %5456 = vmatpush3.bf16.msra.mxu0 %v5455_v50  ;;  %v1954_v50 = vld [vmem:[#allocation14 + $0x188] sm:$0xff]  ;;  %v3144_v33 = vld [vmem:[#allocation14 + $0x4f0] sm:$0xff] }
 0x47f   :  { %5380 = vmatpush1.bf16.msra.mxu1 %v7246_v2  ;;  %v3113_v2 = vld [vmem:[#allocation14 + $0x3f8] sm:$0xff] }
 0x480   :  { %5382 = vmatprep.subr.bf16.mxu1 %v7250_v44  ;;  %v5457_v44 = vpack.c.bf16 %v3113_v2, %v3112_v10  ;;  %v8386_v2 = vld [vmem:[#allocation42_spill] sm:$0xff] }
 0x482   :  { %5458 = vmatprep.subr.bf16.mxu0 %v5457_v44  ;;  %v1451_v44 = vsub.s32 3, %v8386_v2 }
 0x483   :  { %5384 = vmatpush1.bf16.msra.mxu1 %v7254_v19  ;;  %v3096_v19 = vld [vmem:[#allocation14 + $0x370] sm:$0xff] }
 0x484   :  { %5386 = vmatprep.subr.bf16.mxu1 %v7258_v8  ;;  %v3097_v8 = vld [vmem:[#allocation14 + $0x378] sm:$0xff] }
 0x487   :  { %5388 = vmatpush1.bf16.msra.mxu1 %v7262_v41  ;;  %v8382_v41 = vld [vmem:[#allocation73_spill] sm:$0xff] }
 0x488   :  { %5390 = vmatprep.subr.bf16.mxu1 %v7266_v49  ;;  %v5459_v49 = vpack.c.bf16 %v3097_v8, %v3096_v19  ;;  %v8387_v19 = vsub.s32 1, %v8386_v2  ;;  %v8388_v8 = vld [vmem:[#allocation79_spill] sm:$0xff] }
 0x48a   :  { %5460 = vmatpush3.bf16.msra.mxu0 %v5459_v49  ;;  %v7664_v49 = vrot.slane %v8388_v8, %v1451_v44 }
 0x48b   :  { %5392 = vmatpush1.bf16.msra.mxu1 %v7270_v61  ;;  %v3130_v61 = vld [vmem:[#allocation14 + $0x480] sm:$0xff] }
 0x48c   :  { %5394 = vmatprep.subr.bf16.mxu1 %v7274_v17  ;;  %v3131_v17 = vld [vmem:[#allocation14 + $0x488] sm:$0xff] }
 0x48f   :  { %5396 = vmatpush1.bf16.msra.mxu1 %v7278_v24  ;;  %v8383_v24 = vld [vmem:[#allocation74_spill] sm:$0xff] }
 0x490   :  { %5398 = vmatprep.subr.bf16.mxu1 %v7282_v57  ;;  %v5461_v57 = vpack.c.bf16 %v3131_v17, %v3130_v61 }
 0x492   :  { %2992 = vmatmul.mubr.f32.vlgmr.msra.gmra.mrb[22].mxu1 %v7565_v56  ;;  %5462 = vmatprep.subr.bf16.mxu0 %v5461_v57  ;;  %v8385_v56 = vld [vmem:[#allocation77_spill] sm:$0xff] }
 0x493   :  { %5400 = vmatpush1.bf16.msra.mxu1 %v8373_v16  ;;  %3062 = vmatprep.mubr.f32.mxu1 %v8136_v1  ;;  %v5515_v16 = vpack.c.bf16 %v3157_v7, %v3156_v59  ;;  %v3123_v59 = vld [vmem:[#allocation14 + $0x448] sm:$0xff]  ;;  %v3140_v7 = vld [vmem:[#allocation14 + $0x4d0] sm:$0xff] }
 0x494   :  { %5402 = vmatprep.subr.bf16.mxu1 %v8374_v22  ;;  %v3174_v22 = vld [vmem:[#allocation14 + $0x5e0] sm:$0xff] }
 0x497   :  { %5404 = vmatpush1.bf16.msra.mxu1 %v8375_v26  ;;  %v3175_v26 = vld [vmem:[#allocation14 + $0x5e8] sm:$0xff] }
 0x498   :  { %5406 = vmatprep.subr.bf16.mxu1 %v8376_v30  ;;  %v5517_v30 = vpack.c.bf16 %v3175_v26, %v3174_v22 }
 0x49b   :  { %5408 = vmatpush1.bf16.msra.mxu1 %v8377_v52  ;;  %v3158_v52 = vld [vmem:[#allocation14 + $0x560] sm:$0xff] }
 0x49c   :  { %5410 = vmatprep.subr.bf16.mxu1 %v8378_v46  ;;  %v3159_v46 = vld [vmem:[#allocation14 + $0x568] sm:$0xff] }
 0x49f   :  { %5412 = vmatpush1.bf16.msra.mxu1 %v8379_v21  ;;  %v5519_v21 = vpack.c.bf16 %v3159_v46, %v3158_v52  ;;  %v3125_v52 = vld [vmem:[#allocation14 + $0x458] sm:$0xff]  ;;  %v3142_v46 = vld [vmem:[#allocation14 + $0x4e0] sm:$0xff] }
 0x4a0   :  { %5414 = vmatprep.subr.bf16.mxu1 %v8380_v58  ;;  %v3176_v58 = vld [vmem:[#allocation14 + $0x5f0] sm:$0xff] }
 0x4a1   :  { %v5521_v12 = vpack.c.bf16 %v3177_v51, %v3176_v58 }
 0x4a3   :  { %5416 = vmatpush1.bf16.msra.mxu1 %v7330_v53  ;;  %v8384_v53 = vld [vmem:[#allocation76_spill] sm:$0xff] }
 0x4a4   :  { %5418 = vmatprep.subr.bf16.mxu1 %v8381_v54  ;;  %v1953_v54 = vld [vmem:[#allocation14 + $0x180] sm:$0xff] }
 0x4a5   :  { %v5557_v10 = vpack.c.bf16 %v1954_v50, %v1953_v54  ;;  %v8390_v54 = vsub.s32 2, %v8386_v2 }
 0x4a7   :  { %5420 = vmatpush1.bf16.msra.mxu1 %v7338_v15  ;;  %v3162_v15 = vld [vmem:[#allocation14 + $0x580] sm:$0xff]  ;;  %v7674_v50 = vrot.slane %v8388_v8, %v8390_v54 }
 0x4a8   :  { %5422 = vmatprep.subr.bf16.mxu1 %v8382_v41  ;;  %v5493_v39 = vpack.c.bf16 %v3163_v42, %v3162_v15  ;;  %v7661_v41 = vrot.slane %v8388_v8, %v8387_v19 }
 0x4ab   :  { %5424 = vmatpush1.bf16.msra.mxu1 %v8383_v24  ;;  %v8389_v24 = vld [vmem:[#allocation80_spill] sm:$0xff] }
 0x4ac   :  { %5426 = vmatprep.subr.bf16.mxu1 %v8384_v53 }
 0x4af   :  { %5428 = vmatpush1.bf16.msra.mxu1 %v8385_v56 }
 0x4b0   :  { %5494 = vmatprep.subr.bf16.mxu1 %v5493_v39 }
 0x4b2   :  { %3063 = vmatmul.mubr.f32.vlgmr.msra.gmra.mrb[22].mxu1 %v7600_v14  ;;  %v3150_v14 = vld [vmem:[#allocation14 + $0x520] sm:$0xff] }
 0x4b3   :  { %5496 = vmatpush3.bf16.msra.mxu1 %v5495_v29  ;;  %v5503_v23 = vpack.c.bf16 %v3151_v27, %v3150_v14  ;;  %v3134_v27 = vld [vmem:[#allocation14 + $0x4a0] sm:$0xff] }
 0x4b4   :  { %5498 = vmatprep.subr.bf16.mxu1 %v5497_v40  ;;  %v3133_v40 = vld [vmem:[#allocation14 + $0x498] sm:$0xff] }
 0x4b5   :  { %v5465_v45 = vpack.c.bf16 %v3133_v40, %v3132_v32  ;;  %v1923_v32 = vld [vmem:[#allocation14 + $0x90] sm:$0xff]  ;;  %v1924_v40 = vld [vmem:[#allocation14 + $0x98] sm:$0xff] }
 0x4b7   :  { %5500 = vmatpush3.bf16.msra.mxu1 %v5499_v34 }
 0x4b8   :  { %5502 = vmatprep.subr.bf16.mxu1 %v5501_v9  ;;  %v3117_v9 = vld [vmem:[#allocation14 + $0x418] sm:$0xff] }
 0x4b9   :  { %v5467_v0 = vpack.c.bf16 %v3117_v9, %v3116_v25  ;;  %v1925_v25 = vld [vmem:[#allocation14 + $0xa0] sm:$0xff]  ;;  %v1926_v9 = vld [vmem:[#allocation14 + $0xa8] sm:$0xff] }
 0x4bb   :  { %5504 = vmatpush3.bf16.msra.mxu1 %v5503_v23  ;;  %v3135_v23 = vld [vmem:[#allocation14 + $0x4a8] sm:$0xff] }
 0x4bc   :  { %5506 = vmatprep.subr.bf16.mxu1 %v5505_v38  ;;  %v5469_v18 = vpack.c.bf16 %v3135_v23, %v3134_v27  ;;  %v3118_v38 = vld [vmem:[#allocation14 + $0x420] sm:$0xff]  ;;  %v5533_v27 = vpack.c.bf16 %v1926_v9, %v1925_v25 }
 0x4bd   :  { %v5471_v6 = vpack.c.bf16 %v3119_v36, %v3118_v38  ;;  %v1909_v23 = vld [vmem:[#allocation14 + $0x20] sm:$0xff]  ;;  %v1928_v38 = vld [vmem:[#allocation14 + $0xb8] sm:$0xff] }
 0x4be   :  { %v1973_v9 = vld [vmem:[#allocation14 + $0x220] sm:$0xff] }
 0x4bf   :  { %5508 = vmatpush3.bf16.msra.mxu1 %v5507_v13  ;;  %v3137_v13 = vld [vmem:[#allocation14 + $0x4b8] sm:$0xff] }
 0x4c0   :  { %5510 = vmatprep.subr.bf16.mxu1 %v5509_v43  ;;  %v5473_v48 = vpack.c.bf16 %v3137_v13, %v3136_v3  ;;  %v3120_v43 = vld [vmem:[#allocation14 + $0x430] sm:$0xff] }
 0x4c1   :  { %v5475_v60 = vpack.c.bf16 %v3121_v55, %v3120_v43  ;;  %v1911_v13 = vld [vmem:[#allocation14 + $0x30] sm:$0xff]  ;;  %v1930_v43 = vld [vmem:[#allocation14 + $0xc8] sm:$0xff] }
 0x4c3   :  { %5512 = vmatpush3.bf16.msra.mxu1 %v5511_v31  ;;  %v3139_v31 = vld [vmem:[#allocation14 + $0x4c8] sm:$0xff] }
 0x4c4   :  { %5514 = vmatprep.subr.bf16.mxu1 %v5513_v47  ;;  %v5477_v28 = vpack.c.bf16 %v3139_v31, %v3138_v62  ;;  %v3122_v47 = vld [vmem:[#allocation14 + $0x440] sm:$0xff] }
 0x4c5   :  { %v5479_v22 = vpack.c.bf16 %v3123_v59, %v3122_v47  ;;  %v1913_v31 = vld [vmem:[#allocation14 + $0x40] sm:$0xff]  ;;  %v1932_v47 = vld [vmem:[#allocation14 + $0xd8] sm:$0xff] }
 0x4c7   :  { %5516 = vmatpush3.bf16.msra.mxu1 %v5515_v16  ;;  %v3141_v16 = vld [vmem:[#allocation14 + $0x4d8] sm:$0xff] }
 0x4c8   :  { %5518 = vmatprep.subr.bf16.mxu1 %v5517_v30  ;;  %v5481_v26 = vpack.c.bf16 %v3141_v16, %v3140_v7  ;;  %v3124_v30 = vld [vmem:[#allocation14 + $0x450] sm:$0xff] }
 0x4c9   :  { %v5483_v58 = vpack.c.bf16 %v3125_v52, %v3124_v30  ;;  %v1915_v16 = vld [vmem:[#allocation14 + $0x50] sm:$0xff]  ;;  %v1933_v30 = vld [vmem:[#allocation14 + $0xe0] sm:$0xff]  ;;  %v1934_v52 = vld [vmem:[#allocation14 + $0xe8] sm:$0xff] }
 0x4cb   :  { %5520 = vmatpush3.bf16.msra.mxu1 %v5519_v21  ;;  %v3143_v21 = vld [vmem:[#allocation14 + $0x4e8] sm:$0xff] }
 0x4cc   :  { %5522 = vmatprep.subr.bf16.mxu1 %v5521_v12  ;;  %v5485_v51 = vpack.c.bf16 %v3143_v21, %v3142_v46  ;;  %v3126_v12 = vld [vmem:[#allocation14 + $0x460] sm:$0xff]  ;;  %v5549_v21 = vpack.c.bf16 %v1934_v52, %v1933_v30  ;;  %v5736_v30 = vld [vmem:[#allocation13] sm:$0x3f] }
 0x4cf   :  { %5524 = vmatpush3.bf16.msra.mxu1 %v5523_v35  ;;  %v3145_v35 = vld [vmem:[#allocation14 + $0x4f8] sm:$0xff] }
 0x4d0   :  { %5558 = vmatprep.subr.bf16.mxu1 %v5557_v10  ;;  %v5487_v10 = vpack.c.bf16 %v3127_v5, %v3126_v12  ;;  %v5489_v19 = vpack.c.bf16 %v3145_v35, %v3144_v33  ;;  %v1935_v5 = vld [vmem:[#allocation14 + $0xf0] sm:$0xff]  ;;  %v1936_v33 = vld [vmem:[#allocation14 + $0xf8] sm:$0xff] }
 0x4d1   :  { %v5553_v54 = vpack.c.bf16 %v1936_v33, %v1935_v5  ;;  %v2000_v5 = vld [vmem:[#allocation14 + $0x2f8] sm:$0xff] }
 0x525   :  { %v2780_v61 = vpop.f32.mrb[20].mxu1  ;;  %v7666_v17 = vpop.f32.mrb[8].mxu0 }
 0x526   :  { %v5677_v57 = vadd.f32 %v2780_v61, %v8389_v24  ;;  %v2782_v53 = vpop.f32.mrb[21].mxu1  ;;  %v2924_v56 = vpop.f32.mrb[9].mxu0  ;;  %v5679_v44 = vadd.f32 %v7666_v17, %v7674_v50  ;;  %v3128_v61 = vld [vmem:[#allocation14 + $0x470] sm:$0xff]  ;;  %v3129_v24 = vld [vmem:[#allocation14 + $0x478] sm:$0xff] }
 0x527   :  { %v5678_v15 = vadd.f32 %v2782_v53, %v7661_v41  ;;  %v5680_v42 = vadd.f32 %v2924_v56, %v7664_v49  ;;  %v1921_v56 = vld [vmem:[#allocation14 + $0x80] sm:$0xff] }
 0x528   :  { %v3069_v39 = vmul.f32 0.01, %v5677_v57 }
 0x529   :  { %v3070_v29 = vmul.f32 0.01, %v5678_v15  ;;  %v3072_v37 = vmul.f32 0.01, %v5680_v42 }
 0x52a   :  { %v3075_v34 = vmax.f32 %v5677_v57, %v3069_v39  ;;  %v8391_v57 = vld [vmem:[#allocation85_spill] sm:$0xff]  ;;  %v3071_v39 = vmul.f32 0.01, %v5679_v44 }
 0x52b   :  { %v3076_v11 = vmax.f32 %v5678_v15, %v3070_v29  ;;  %v3078_v14 = vmax.f32 %v5680_v42, %v3072_v37  ;;  %v5670_v53 = vadd.f32 %v8391_v57, %v7661_v41  ;;  %v1922_v15 = vld [vmem:[#allocation14 + $0x88] sm:$0xff]  ;;  %v5491_v42 = vpack.c.bf16 %v3129_v24, %v3128_v61  ;;  %v1985_v24 = vld [vmem:[#allocation14 + $0x280] sm:$0xff] }
 0x52c   :  { %v5525_v4 = vpack.c.bf16 %v1922_v15, %v1921_v56  ;;  %v1906_v29 = vld [vmem:[#allocation14 + $0x8] sm:$0xff]  ;;  %v8393_v56 = vld [vmem:[#allocation83_spill] sm:$0xff] }
 0x52d   :  { %3242 = vmatprep.mubr.f32.mxu0 %v3076_v11  ;;  %v1894_v37 = vmul.f32 0.01, %v5670_v53  ;;  %v5527_v17 = vpack.c.bf16 %v1906_v29, %v1905_v63  ;;  %v3077_v11 = vmax.f32 %v5679_v44, %v3071_v39  ;;  %v1920_v44 = vld [vmem:[#allocation14 + $0x78] sm:$0xff]  ;;  %v1986_v57 = vld [vmem:[#allocation14 + $0x288] sm:$0xff]  ;;  %v1893_v15 = vmul.f32 0.01, %v8393_v56 }
 0x52e   :  { %3243 = vmatmul.mubr.f32.vlgmr.msra.gmra.mrb[10].mxu0 %v3075_v34  ;;  %v1907_v34 = vld [vmem:[#allocation14 + $0x10] sm:$0xff]  ;;  %v1970_v39 = vld [vmem:[#allocation14 + $0x208] sm:$0xff]  ;;  %v1988_v29 = vld [vmem:[#allocation14 + $0x298] sm:$0xff] }
 0x52f   :  { %5464 = vmatpush3.bf16.msra.mxu0 %v5463_v20  ;;  %3312 = vmatprep.mubr.f32.mxu0 %v3078_v14  ;;  %v5529_v20 = vpack.c.bf16 %v1924_v40, %v1923_v32  ;;  %v1900_v41 = vmax.f32 %v5670_v53, %v1894_v37  ;;  %v1987_v63 = vld [vmem:[#allocation14 + $0x290] sm:$0xff]  ;;  %v1899_v32 = vmax.f32 %v8393_v56, %v1893_v15 }
 0x530   :  { %5466 = vmatprep.subr.bf16.mxu0 %v5465_v45  ;;  %v1908_v45 = vld [vmem:[#allocation14 + $0x18] sm:$0xff]  ;;  %v5593_v40 = vpack.c.bf16 %v1988_v29, %v1987_v63 }
 0x531   :  { %v5531_v14 = vpack.c.bf16 %v1908_v45, %v1907_v34  ;;  %v1989_v34 = vld [vmem:[#allocation14 + $0x2a0] sm:$0xff]  ;;  %v1990_v45 = vld [vmem:[#allocation14 + $0x2a8] sm:$0xff] }
 0x532   :  { %v5597_v25 = vpack.c.bf16 %v1990_v45, %v1989_v34  ;;  %v1939_v34 = vld [vmem:[#allocation14 + $0x110] sm:$0xff]  ;;  %v1940_v45 = vld [vmem:[#allocation14 + $0x118] sm:$0xff] }
 0x533   :  { %5468 = vmatpush3.bf16.msra.mxu0 %v5467_v0  ;;  %v1910_v0 = vld [vmem:[#allocation14 + $0x28] sm:$0xff] }
 0x534   :  { %5470 = vmatprep.subr.bf16.mxu0 %v5469_v18  ;;  %v1927_v18 = vld [vmem:[#allocation14 + $0xb0] sm:$0xff]  ;;  %v5535_v36 = vpack.c.bf16 %v1910_v0, %v1909_v23  ;;  %v1992_v23 = vld [vmem:[#allocation14 + $0x2b8] sm:$0xff] }
 0x535   :  { %v5537_v3 = vpack.c.bf16 %v1928_v38, %v1927_v18  ;;  %v1975_v38 = vld [vmem:[#allocation14 + $0x230] sm:$0xff] }
 0x537   :  { %5472 = vmatpush3.bf16.msra.mxu0 %v5471_v6  ;;  %v1912_v6 = vld [vmem:[#allocation14 + $0x38] sm:$0xff] }
 0x538   :  { %5474 = vmatprep.subr.bf16.mxu0 %v5473_v48  ;;  %v1929_v48 = vld [vmem:[#allocation14 + $0xc0] sm:$0xff]  ;;  %v5539_v55 = vpack.c.bf16 %v1912_v6, %v1911_v13  ;;  %v1994_v13 = vld [vmem:[#allocation14 + $0x2c8] sm:$0xff] }
 0x539   :  { %v5541_v62 = vpack.c.bf16 %v1930_v43, %v1929_v48  ;;  %v1977_v43 = vld [vmem:[#allocation14 + $0x240] sm:$0xff] }
 0x53b   :  { %5476 = vmatpush3.bf16.msra.mxu0 %v5475_v60  ;;  %v1914_v60 = vld [vmem:[#allocation14 + $0x48] sm:$0xff] }
 0x53c   :  { %5478 = vmatprep.subr.bf16.mxu0 %v5477_v28  ;;  %v1931_v28 = vld [vmem:[#allocation14 + $0xd0] sm:$0xff]  ;;  %v5543_v59 = vpack.c.bf16 %v1914_v60, %v1913_v31  ;;  %v1996_v31 = vld [vmem:[#allocation14 + $0x2d8] sm:$0xff] }
 0x53d   :  { %v5545_v7 = vpack.c.bf16 %v1932_v47, %v1931_v28  ;;  %v1455_v28 = vsub.s32 4, %v8386_v2 }
 0x53f   :  { %5480 = vmatpush3.bf16.msra.mxu0 %v5479_v22  ;;  %v1916_v22 = vld [vmem:[#allocation14 + $0x58] sm:$0xff]  ;;  %v1456_v52 = vrot.slane %v5736_v30, %v1455_v28  ;;  %v1963_v28 = vld [vmem:[#allocation14 + $0x1d0] sm:$0xff]  ;;  %v1966_v30 = vld [vmem:[#allocation14 + $0x1e8] sm:$0xff] }
 0x540   :  { %5482 = vmatprep.subr.bf16.mxu0 %v5481_v26  ;;  %v1459_v26 = vsub.s32 5, %v8386_v2  ;;  %v5547_v46 = vpack.c.bf16 %v1916_v22, %v1915_v16  ;;  %v1997_v16 = vld [vmem:[#allocation14 + $0x2e0] sm:$0xff]  ;;  %v1998_v22 = vld [vmem:[#allocation14 + $0x2e8] sm:$0xff] }
 0x542   :  { %v7682_v12 = vrot.slane %v8388_v8, %v1459_v26  ;;  %v5589_v8 = vpack.c.bf16 %v1986_v57, %v1985_v24 }
 0x543   :  { %5484 = vmatpush3.bf16.msra.mxu0 %v5483_v58  ;;  %v1917_v58 = vld [vmem:[#allocation14 + $0x60] sm:$0xff] }
 0x544   :  { %5486 = vmatprep.subr.bf16.mxu0 %v5485_v51  ;;  %v1918_v51 = vld [vmem:[#allocation14 + $0x68] sm:$0xff] }
 0x545   :  { %v5551_v35 = vpack.c.bf16 %v1918_v51, %v1917_v58  ;;  %v1982_v58 = vld [vmem:[#allocation14 + $0x268] sm:$0xff]  ;;  %v1999_v51 = vld [vmem:[#allocation14 + $0x2f0] sm:$0xff] }
 0x547   :  { %5488 = vmatpush3.bf16.msra.mxu0 %v5487_v10  ;;  %v1919_v10 = vld [vmem:[#allocation14 + $0x70] sm:$0xff] }
 0x548   :  { %5490 = vmatprep.subr.bf16.mxu0 %v5489_v19  ;;  %v8392_v19 = vld [vmem:[#allocation32_spill] sm:$0xff]  ;;  %v5555_v53 = vpack.c.bf16 %v1920_v44, %v1919_v10  ;;  %v1983_v10 = vld [vmem:[#allocation14 + $0x270] sm:$0xff]  ;;  %v1984_v44 = vld [vmem:[#allocation14 + $0x278] sm:$0xff] }
 0x549   :  { %v5674_v61 = vadd.f32 %v8392_v19, %v7682_v12  ;;  %v8395_v19 = vld [vmem:[#allocation86_spill] sm:$0xff]  ;;  %v5619_v15 = vpack.c.bf16 %v1984_v44, %v1983_v10  ;;  %v1951_v10 = vld [vmem:[#allocation14 + $0x170] sm:$0xff] }
 0x54a   :  { %v1952_v44 = vld [vmem:[#allocation14 + $0x178] sm:$0xff] }
 0x54b   :  { %5492 = vmatpush3.bf16.msra.mxu0 %v5491_v42  ;;  %v1969_v42 = vld [vmem:[#allocation14 + $0x200] sm:$0xff] }
 0x54c   :  { %5526 = vmatprep.subr.bf16.mxu0 %v5525_v4  ;;  %v1898_v4 = vmul.f32 0.01, %v5674_v61  ;;  %v5591_v37 = vpack.c.bf16 %v1970_v39, %v1969_v42  ;;  %v1937_v39 = vld [vmem:[#allocation14 + $0x100] sm:$0xff] }
 0x54e   :  { %3313 = vmatmul.mubr.f32.vlgmr.msra.gmra.mrb[12].mxu0 %v3077_v11  ;;  %v1972_v11 = vld [vmem:[#allocation14 + $0x218] sm:$0xff] }
 0x54f   :  { %5528 = vmatpush3.bf16.msra.mxu0 %v5527_v17  ;;  %3452 = vmatprep.mubr.f32.mxu0 %v1900_v41  ;;  %v1971_v17 = vld [vmem:[#allocation14 + $0x210] sm:$0xff] }
 0x550   :  { %5530 = vmatprep.subr.bf16.mxu0 %v5529_v20  ;;  %v1904_v20 = vmax.f32 %v5674_v61, %v1898_v4  ;;  %v5595_v41 = vpack.c.bf16 %v1972_v11, %v1971_v17  ;;  %v5672_v61 = vadd.f32 %v8395_v19, %v7664_v49  ;;  %v1938_v4 = vld [vmem:[#allocation14 + $0x108] sm:$0xff]  ;;  %v5587_v19 = vpack.c.bf16 %v1952_v44, %v1951_v10 }
 0x551   :  { %v5559_v17 = vpack.c.bf16 %v1938_v4, %v1937_v39  ;;  %v3612_v39 = vld [vmem:[#allocation17 + $0x28] sm:$0xff] }
 0x552   :  { %v1896_v63 = vmul.f32 0.01, %v5672_v61 }
 0x553   :  { %5532 = vmatpush3.bf16.msra.mxu0 %v5531_v14  ;;  %v1974_v14 = vld [vmem:[#allocation14 + $0x228] sm:$0xff] }
 0x554   :  { %5534 = vmatprep.subr.bf16.mxu0 %v5533_v27  ;;  %v1991_v27 = vld [vmem:[#allocation14 + $0x2b0] sm:$0xff]  ;;  %v5599_v0 = vpack.c.bf16 %v1974_v14, %v1973_v9  ;;  %v1958_v9 = vld [vmem:[#allocation14 + $0x1a8] sm:$0xff]  ;;  %v5563_v14 = vpack.c.bf16 %v1940_v45, %v1939_v34 }
 0x555   :  { %v5601_v18 = vpack.c.bf16 %v1992_v23, %v1991_v27  ;;  %v1941_v23 = vld [vmem:[#allocation14 + $0x120] sm:$0xff] }
 0x557   :  { %5536 = vmatpush3.bf16.msra.mxu0 %v5535_v36  ;;  %v1976_v36 = vld [vmem:[#allocation14 + $0x238] sm:$0xff] }
 0x558   :  { %5538 = vmatprep.subr.bf16.mxu0 %v5537_v3  ;;  %v1993_v3 = vld [vmem:[#allocation14 + $0x2c0] sm:$0xff]  ;;  %v5603_v6 = vpack.c.bf16 %v1976_v36, %v1975_v38  ;;  %v1960_v38 = vld [vmem:[#allocation14 + $0x1b8] sm:$0xff] }
 0x559   :  { %v5605_v48 = vpack.c.bf16 %v1994_v13, %v1993_v3  ;;  %v1943_v13 = vld [vmem:[#allocation14 + $0x130] sm:$0xff] }
 0x55b   :  { %5540 = vmatpush3.bf16.msra.mxu0 %v5539_v55  ;;  %v1978_v55 = vld [vmem:[#allocation14 + $0x248] sm:$0xff] }
 0x55c   :  { %5542 = vmatprep.subr.bf16.mxu0 %v5541_v62  ;;  %v1995_v62 = vld [vmem:[#allocation14 + $0x2d0] sm:$0xff]  ;;  %v5607_v60 = vpack.c.bf16 %v1978_v55, %v1977_v43  ;;  %v1962_v43 = vld [vmem:[#allocation14 + $0x1c8] sm:$0xff] }
 0x55d   :  { %v5609_v47 = vpack.c.bf16 %v1996_v31, %v1995_v62  ;;  %v1945_v31 = vld [vmem:[#allocation14 + $0x140] sm:$0xff] }
 0x55f   :  { %5544 = vmatpush3.bf16.msra.mxu0 %v5543_v59  ;;  %v1979_v59 = vld [vmem:[#allocation14 + $0x250] sm:$0xff] }
 0x560   :  { %5546 = vmatprep.subr.bf16.mxu0 %v5545_v7  ;;  %v1980_v7 = vld [vmem:[#allocation14 + $0x258] sm:$0xff] }
 0x561   :  { %v5611_v26 = vpack.c.bf16 %v1980_v7, %v1979_v59 }
 0x563   :  { %5548 = vmatpush3.bf16.msra.mxu0 %v5547_v46  ;;  %v5613_v46 = vpack.c.bf16 %v1998_v22, %v1997_v16  ;;  %v1947_v16 = vld [vmem:[#allocation14 + $0x150] sm:$0xff]  ;;  %v1948_v22 = vld [vmem:[#allocation14 + $0x158] sm:$0xff] }
 0x564   :  { %5550 = vmatprep.subr.bf16.mxu0 %v5549_v21  ;;  %v1981_v21 = vld [vmem:[#allocation14 + $0x260] sm:$0xff] }
 0x565   :  { %v5615_v33 = vpack.c.bf16 %v1982_v58, %v1981_v21  ;;  %v1949_v21 = vld [vmem:[#allocation14 + $0x160] sm:$0xff]  ;;  %v1950_v58 = vld [vmem:[#allocation14 + $0x168] sm:$0xff] }
 0x567   :  { %5552 = vmatpush3.bf16.msra.mxu0 %v5551_v35  ;;  %v8394_v35 = vld [vmem:[#allocation88_spill] sm:$0xff] }
 0x568   :  { %5554 = vmatprep.subr.bf16.mxu0 %v5553_v54  ;;  %v5673_v2 = vadd.f32 %v8394_v35, %v1456_v52  ;;  %v5617_v54 = vpack.c.bf16 %v2000_v5, %v1999_v51  ;;  %v1967_v51 = vld [vmem:[#allocation14 + $0x1f0] sm:$0xff]  ;;  %v1968_v5 = vld [vmem:[#allocation14 + $0x1f8] sm:$0xff] }
 0x569   :  { %v8397_v35 = vld [vmem:[#allocation82_spill] sm:$0xff] }
 0x56b   :  { %5556 = vmatpush3.bf16.msra.mxu0 %v5555_v53 }
 0x56c   :  { %5590 = vmatprep.subr.bf16.mxu0 %v5589_v8  ;;  %v1897_v8 = vmul.f32 0.01, %v5673_v2 }
 0x56e   :  { %3453 = vmatmul.mubr.f32.vlgmr.msra.gmra.mrb[14].mxu0 %v1899_v32  ;;  %v1956_v32 = vld [vmem:[#allocation14 + $0x198] sm:$0xff]  ;;  %v1903_v49 = vmax.f32 %v5673_v2, %v1897_v8  ;;  %v5671_v2 = vadd.f32 %v8397_v35, %v7674_v50 }
 0x56f   :  { %5592 = vmatpush3.bf16.msra.mxu0 %v5591_v37  ;;  %3592 = vmatprep.mubr.f32.mxu0 %v1904_v20  ;;  %v1955_v37 = vld [vmem:[#allocation14 + $0x190] sm:$0xff] }
 0x570   :  { %5594 = vmatprep.subr.bf16.mxu0 %v5593_v40  ;;  %v5561_v20 = vpack.c.bf16 %v1956_v32, %v1955_v37  ;;  %v3616_v32 = vld [vmem:[#allocation17 + $0x48] sm:$0xff] }
 0x573   :  { %5596 = vmatpush3.bf16.msra.mxu0 %v5595_v41  ;;  %v1902_v41 = vmax.f32 %v5672_v61, %v1896_v63  ;;  %v1895_v61 = vmul.f32 0.01, %v5671_v2  ;;  %v3613_v63 = vld [vmem:[#allocation17 + $0x30] sm:$0xff] }
 0x574   :  { %5598 = vmatprep.subr.bf16.mxu0 %v5597_v25  ;;  %v1957_v25 = vld [vmem:[#allocation14 + $0x1a0] sm:$0xff] }
 0x575   :  { %v5565_v27 = vpack.c.bf16 %v1958_v9, %v1957_v25  ;;  %v3620_v25 = vld [vmem:[#allocation17 + $0x68] sm:$0xff] }
 0x577   :  { %5600 = vmatpush3.bf16.msra.mxu0 %v5599_v0  ;;  %v1942_v0 = vld [vmem:[#allocation14 + $0x128] sm:$0xff] }
 0x578   :  { %5602 = vmatprep.subr.bf16.mxu0 %v5601_v18  ;;  %v1959_v18 = vld [vmem:[#allocation14 + $0x1b0] sm:$0xff]  ;;  %v5567_v36 = vpack.c.bf16 %v1942_v0, %v1941_v23  ;;  %v3701_v0 = vld [vmem:[#allocation20] sm:$0xff] }
 0x579   :  { %v5569_v3 = vpack.c.bf16 %v1960_v38, %v1959_v18  ;;  %v3702_v18 = vld [vmem:[#allocation20 + $0x8] sm:$0xff]  ;;  %v3703_v38 = vld [vmem:[#allocation20 + $0x10] sm:$0xff] }
 0x57b   :  { %5604 = vmatpush3.bf16.msra.mxu0 %v5603_v6  ;;  %v1944_v6 = vld [vmem:[#allocation14 + $0x138] sm:$0xff] }
 0x57c   :  { %5606 = vmatprep.subr.bf16.mxu0 %v5605_v48  ;;  %v1961_v48 = vld [vmem:[#allocation14 + $0x1c0] sm:$0xff]  ;;  %v5571_v55 = vpack.c.bf16 %v1944_v6, %v1943_v13 }
 0x57d   :  { %v5573_v62 = vpack.c.bf16 %v1962_v43, %v1961_v48  ;;  %v3705_v6 = vld [vmem:[#allocation20 + $0x20] sm:$0xff]  ;;  %v3706_v48 = vld [vmem:[#allocation20 + $0x28] sm:$0xff] }
 0x57e   :  { %v5652_v43 = vpack.c.bf16 %v3706_v48, %v3705_v6 }
 0x57f   :  { %5608 = vmatpush3.bf16.msra.mxu0 %v5607_v60  ;;  %v1946_v60 = vld [vmem:[#allocation14 + $0x148] sm:$0xff] }
 0x580   :  { %5610 = vmatprep.subr.bf16.mxu0 %v5609_v47  ;;  %v1964_v47 = vld [vmem:[#allocation14 + $0x1d8] sm:$0xff]  ;;  %v5575_v59 = vpack.c.bf16 %v1946_v60, %v1945_v31  ;;  %v3709_v60 = vld [vmem:[#allocation20 + $0x40] sm:$0xff] }
 0x581   :  { %v5577_v7 = vpack.c.bf16 %v1964_v47, %v1963_v28  ;;  %v3710_v28 = vld [vmem:[#allocation20 + $0x48] sm:$0xff] }
 0x582   :  { %v5658_v47 = vpack.c.bf16 %v3710_v28, %v3709_v60 }
 0x583   :  { %5612 = vmatpush3.bf16.msra.mxu0 %v5611_v26  ;;  %v1965_v26 = vld [vmem:[#allocation14 + $0x1e0] sm:$0xff] }
 0x584   :  { %5614 = vmatprep.subr.bf16.mxu0 %v5613_v46  ;;  %v5581_v46 = vpack.c.bf16 %v1966_v30, %v1965_v26  ;;  %v3713_v26 = vld [vmem:[#allocation20 + $0x60] sm:$0xff]  ;;  %v3714_v30 = vld [vmem:[#allocation20 + $0x68] sm:$0xff] }
 0x585   :  { %v3064_v24 = vpop.f32.mrb[22].mxu1 }
 0x586   :  { %v5681_v57 = vadd.f32 %v3064_v24, %v1456_v52  ;;  %v3066_v53 = vpop.f32.mrb[23].mxu1  ;;  %v5579_v52 = vpack.c.bf16 %v1948_v22, %v1947_v16  ;;  %v1901_v24 = vmax.f32 %v5671_v2, %v1895_v61 }
 0x587   :  { %v5682_v56 = vadd.f32 %v3066_v53, %v7682_v12  ;;  %5616 = vmatpush3.bf16.msra.mxu0 %v5615_v33  ;;  %v8396_v12 = vmov 0.0|0.0   ;;  %v5583_v33 = vpack.c.bf16 %v1950_v58, %v1949_v21  ;;  %v3608_v53 = vld [vmem:[#allocation17 + $0x8] sm:$0xff]  ;;  %v5664_v21 = vpack.c.bf16 %v3714_v30, %v3713_v26 }
 0x588   :  { %v3073_v42 = vmul.f32 0.01, %v5681_v57  ;;  %5618 = vmatprep.subr.bf16.mxu0 %v5617_v54  ;;  %v5585_v54 = vpack.c.bf16 %v1968_v5, %v1967_v51 }
 0x589   :  { %v3074_v29 = vmul.f32 0.01, %v5682_v56 }
 0x58a   :  { %v3079_v11 = vmax.f32 %v5681_v57, %v3073_v42  ;;  %v3607_v57 = vld [vmem:[#allocation17] sm:$0xff] }
 0x58b   :  { %v3080_v40 = vmax.f32 %v5682_v56, %v3074_v29  ;;  %5620 = vmatpush3.bf16.msra.mxu0 %v5619_v15  ;;  %v3609_v56 = vld [vmem:[#allocation17 + $0x10] sm:$0xff]  ;;  %v5622_v50 = vpack.c.bf16 %v3608_v53, %v3607_v57  ;;  %v3610_v15 = vld [vmem:[#allocation17 + $0x18] sm:$0xff]  ;;  %v3611_v42 = vld [vmem:[#allocation17 + $0x20] sm:$0xff] }
 0x58c   :  { %5645 = vmatprep.subr.bf16.mxu0 %v8396_v12  ;;  %v5625_v8 = vpack.c.bf16 %v3610_v15, %v3609_v56  ;;  %v5628_v4 = vpack.c.bf16 %v3612_v39, %v3611_v42  ;;  %v3614_v29 = vld [vmem:[#allocation17 + $0x38] sm:$0xff] }
 0x58d   :  { %3382 = vmatprep.mubr.f32.mxu1 %v3080_v40  ;;  %v5631_v37 = vpack.c.bf16 %v3614_v29, %v3613_v63  ;;  %v3830_v15 = vld [vmem:[#allocation16] ss:$0 sm:$0xff]  ;;  %v3831_v29 = vld [vmem:[#allocation19] ss:$0 sm:$0xff] }
 0x58e   :  { %3593 = vmatmul.mubr.f32.vlgmr.msra.gmra.mrb[16].mxu0 %v1903_v49  ;;  %3383 = vmatmul.mubr.f32.vlgmr.msra.gmra.mrb[24].mxu1 %v3079_v11  ;;  %v3618_v49 = vld [vmem:[#allocation17 + $0x58] sm:$0xff] }
 0x58f   :  { %5560 = vmatpush3.bf16.msra.mxu1 %v5559_v17  ;;  %3522 = vmatprep.mubr.f32.mxu1 %v1902_v41  ;;  %v3617_v17 = vld [vmem:[#allocation17 + $0x50] sm:$0xff]  ;;  %v3619_v41 = vld [vmem:[#allocation17 + $0x60] sm:$0xff] }
 0x590   :  { %5562 = vmatprep.subr.bf16.mxu1 %v5561_v20  ;;  %4298 = vmatprep.mubr.msk.f32.mxu0 %vm6085_vm0, %v8136_v1  ;;  %v5637_v11 = vpack.c.bf16 %v3618_v49, %v3617_v17  ;;  %v5640_v9 = vpack.c.bf16 %v3620_v25, %v3619_v41  ;;  %v3832_v17 = vld [vmem:[#allocation22] ss:$0 sm:$0xff] }
 0x593   :  { %5564 = vmatpush3.bf16.msra.mxu1 %v5563_v14  ;;  %v3621_v14 = vld [vmem:[#allocation17 + $0x70] sm:$0xff] }
 0x594   :  { %5566 = vmatprep.subr.bf16.mxu1 %v5565_v27  ;;  %v3622_v27 = vld [vmem:[#allocation17 + $0x78] sm:$0xff] }
 0x595   :  { %v5643_v23 = vpack.c.bf16 %v3622_v27, %v3621_v14 }
 0x597   :  { %5568 = vmatpush3.bf16.msra.mxu1 %v5567_v36  ;;  %v5646_v36 = vpack.c.bf16 %v3702_v18, %v3701_v0 }
 0x598   :  { %5570 = vmatprep.subr.bf16.mxu1 %v5569_v3  ;;  %v3704_v3 = vld [vmem:[#allocation20 + $0x18] sm:$0xff] }
 0x599   :  { %5647 = vmatpush3.bf16.msra.mxu0 %v5646_v36  ;;  %v5649_v13 = vpack.c.bf16 %v3704_v3, %v3703_v38 }
 0x59a   :  { %5648 = vmatprep.subr.bf16.mxu0 %v8396_v12 }
 0x59b   :  { %5572 = vmatpush3.bf16.msra.mxu1 %v5571_v55  ;;  %v3707_v55 = vld [vmem:[#allocation20 + $0x30] sm:$0xff] }
 0x59c   :  { %5574 = vmatprep.subr.bf16.mxu1 %v5573_v62  ;;  %v3708_v62 = vld [vmem:[#allocation20 + $0x38] sm:$0xff] }
 0x59d   :  { %5650 = vmatpush3.bf16.msra.mxu0 %v5649_v13  ;;  %v5655_v31 = vpack.c.bf16 %v3708_v62, %v3707_v55 }
 0x59e   :  { %5651 = vmatprep.subr.bf16.mxu0 %v8396_v12 }
 0x59f   :  { %5576 = vmatpush3.bf16.msra.mxu1 %v5575_v59  ;;  %v3711_v59 = vld [vmem:[#allocation20 + $0x50] sm:$0xff] }
 0x5a0   :  { %5578 = vmatprep.subr.bf16.mxu1 %v5577_v7  ;;  %v3712_v7 = vld [vmem:[#allocation20 + $0x58] sm:$0xff] }
 0x5a1   :  { %5653 = vmatpush3.bf16.msra.mxu0 %v5652_v43  ;;  %v5661_v16 = vpack.c.bf16 %v3712_v7, %v3711_v59 }
 0x5a2   :  { %5654 = vmatprep.subr.bf16.mxu0 %v8396_v12 }
 0x5a3   :  { %5580 = vmatpush3.bf16.msra.mxu1 %v5579_v52 }
 0x5a4   :  { %5582 = vmatprep.subr.bf16.mxu1 %v5581_v46 }
 0x5a5   :  { %5656 = vmatpush3.bf16.msra.mxu0 %v5655_v31 }
 0x5a6   :  { %5657 = vmatprep.subr.bf16.mxu0 %v8396_v12 }
 0x5a7   :  { %5584 = vmatpush3.bf16.msra.mxu1 %v5583_v33 }
 0x5a8   :  { %5586 = vmatprep.subr.bf16.mxu1 %v5585_v54 }
 0x5a9   :  { %5659 = vmatpush3.bf16.msra.mxu0 %v5658_v47 }
 0x5aa   :  { %5660 = vmatprep.subr.bf16.mxu0 %v8396_v12 }
 0x5ab   :  { %5588 = vmatpush3.bf16.msra.mxu1 %v5587_v19 }
 0x5ac   :  { %5621 = vmatprep.subr.bf16.mxu1 %v8396_v12 }
 0x5ad   :  { %5662 = vmatpush3.bf16.msra.mxu0 %v5661_v16 }
 0x5ae   :  { %3523 = vmatmul.mubr.f32.vlgmr.msra.gmra.mrb[26].mxu1 %v1901_v24  ;;  %5663 = vmatprep.subr.bf16.mxu0 %v8396_v12 }
 0x5af   :  { %4263 = vmatprep.mubr.msk.f32.mxu1 %vm6085_vm0, %v8136_v1  ;;  %5623 = vmatpush3.bf16.msra.mxu1 %v5622_v50  ;;  %v3615_v1 = vld [vmem:[#allocation17 + $0x40] sm:$0xff] }
 0x5b0   :  { %5624 = vmatprep.subr.bf16.mxu1 %v8396_v12  ;;  %v5634_v40 = vpack.c.bf16 %v3616_v32, %v3615_v1 }
 0x5b1   :  { %5665 = vmatpush3.bf16.msra.mxu0 %v5664_v21 }
 0x5b2   :  { %5666 = vmatprep.subr.bf16.mxu0 %v8396_v12 }
 0x5b3   :  { %5626 = vmatpush3.bf16.msra.mxu1 %v5625_v8 }
 0x5b4   :  { %5627 = vmatprep.subr.bf16.mxu1 %v8396_v12 }
 0x5b7   :  { %5629 = vmatpush3.bf16.msra.mxu1 %v5628_v4  ;;  %v3716_v4 = vld [vmem:[#allocation20 + $0x78] sm:$0xff] }
 0x5b8   :  { %5630 = vmatprep.subr.bf16.mxu1 %v8396_v12 }
 0x5bb   :  { %5632 = vmatpush3.bf16.msra.mxu1 %v5631_v37 }
 0x5bc   :  { %5633 = vmatprep.subr.bf16.mxu1 %v8396_v12 }
 0x5bf   :  { %5635 = vmatpush3.bf16.msra.mxu1 %v5634_v40 }
 0x5c0   :  { %5636 = vmatprep.subr.bf16.mxu1 %v8396_v12 }
 0x5c3   :  { %5638 = vmatpush3.bf16.msra.mxu1 %v5637_v11 }
 0x5c4   :  { %5639 = vmatprep.subr.bf16.mxu1 %v8396_v12 }
 0x5c7   :  { %5641 = vmatpush3.bf16.msra.mxu1 %v5640_v9 }
 0x5c8   :  { %5642 = vmatprep.subr.bf16.mxu1 %v8396_v12  ;;  %v3715_v12 = vld [vmem:[#allocation20 + $0x70] sm:$0xff] }
 0x5c9   :  { %v5667_v63 = vpack.c.bf16 %v3716_v4, %v3715_v12 }
 0x5cb   :  { %5644 = vmatpush3.bf16.msra.mxu1 %v5643_v23  ;;  %5668 = vmatpush3.bf16.msra.mxu0 %v5667_v63 }
 0x601   :  { %v4009_v20 = vpop.f32.mrb[10].mxu0 }
 0x602   :  { %v4010_v34 = vpop.f32.mrb[11].mxu0 }
 0x603   :  { %v4011_v45 = vadd.f32 %v4010_v34, %v4009_v20 }
 0x621   :  { %v4044_v22 = vpop.f32.mrb[12].mxu0 }
 0x622   :  { %v4045_v52 = vpop.f32.mrb[13].mxu0 }
 0x623   :  { %v4046_v46 = vadd.f32 %v4045_v52, %v4044_v22 }
 0x625   :  { %v3315_v58 = vadd.f32 %v4046_v46, %v4011_v45 }
 0x641   :  { %v4114_v51 = vpop.f32.mrb[14].mxu0 }
 0x642   :  { %v4115_v5 = vpop.f32.mrb[15].mxu0 }
 0x643   :  { %v4116_v33 = vadd.f32 %v4115_v5, %v4114_v51 }
 0x661   :  { %v4184_v35 = vpop.f32.mrb[16].mxu0  ;;  %v4079_v2 = vpop.f32.mrb[24].mxu1 }
 0x662   :  { %v4185_v54 = vpop.f32.mrb[17].mxu0  ;;  %v4080_v10 = vpop.f32.mrb[25].mxu1 }
 0x663   :  { %v4186_v44 = vadd.f32 %v4185_v54, %v4184_v35  ;;  %v4081_v19 = vadd.f32 %v4080_v10, %v4079_v2 }
 0x665   :  { %v3385_v61 = vadd.f32 %v4081_v19, %v3315_v58 }
 0x667   :  { %v3455_v24 = vadd.f32 %v4116_v33, %v3385_v61 }
 0x681   :  { %v4149_v57 = vpop.f32.mrb[26].mxu1 }
 0x682   :  { %v4150_v53 = vpop.f32.mrb[27].mxu1 }
 0x683   :  { %v4151_v56 = vadd.f32 %v4150_v53, %v4149_v57 }
 0x685   :  { %v3525_v50 = vadd.f32 %v4151_v56, %v3455_v24 }
 0x687   :  { %v3595_v8 = vadd.f32 %v4186_v44, %v3525_v50 }
 0x689   :  { %v3605_v42 = vadd.f32 %v3830_v15, %v3595_v8 }
 0x68b   :  { %v3606_v39 = vmax.f32 %v3605_v42, 0.0 }
 0x68d   :  { %4264 = vmatmul.mubr.f32.vlgmr.msra.gmra.mrb[28].mxu1 %v3606_v39 }
 0x760   :  { %v3696_v37 = vpop.f32.mrb[28].mxu1 }
 0x761   :  { %v3697_v1 = vadd.f32 %v3831_v29, %v3696_v37  ;;  %v4265_v32 = vpop.f32.mrb[29].mxu1 }
 0x763   :  { %v3700_v40 = vmax.f32 %v3697_v1, 0.0 }
 0x765   :  { %4299 = vmatmul.mubr.f32.vlgmr.msra.gmra.mrb[18].mxu0 %v3700_v40 }
 0x838   :  { %v3790_v49 = vpop.f32.mrb[18].mxu0 }
 0x839   :  { %v3791_v11 = vadd.f32 %v3832_v17, %v3790_v49  ;;  %v4300_v20 = vpop.f32.mrb[19].mxu0 }
 0x83b   :  { %3794 = vst [vmem:[#allocation23] sm:$0x3] %v3791_v11 }
 0x83c   :  { %6034 = shalt.err (!%p6031_p10)
}
 0x83d   :  { %s6035_s21 = scalar_lea.hbm %s7740_s13, 32 }
 0x83e   :  { %p6036_p11 = scmp.ne.s32.totalorder %s7740_s13, %s6035_s21  ;;  %p6039_p12 = scmp.lt.u32.totalorder %s6035_s21, %s7740_s13 }
 0x840   :  { %p6041_p13 = pnand %p6039_p12, %p6036_p11 }
 0x842   :  { %6044 = shalt.err (!%p6041_p13)
}
 0x843   :  { %3804 = dma.vmem_to_hbm [thread:$0]  %s3802_s20, 32, %s7740_s13, [#allocation4]  }
 0x844   :  { %6059 = dma.done.wait [#allocation4], 32  }
 0x845   :  { %6060 = vsyncadd [#allocation4], 4294967264 }
 0x846   :  { %3808 = vsyncpa [#allocation3], 1 }
 0x847   :  { %3809 = vsyncpa [#allocation6], 1 }
 0x848   :  { %3810 = vsyncpa [#allocation9], 1 }
 0x849   :  { %3811 = vsyncpa [#allocation12], 1 }
 0x84a   :  { %3812 = vsyncpa [#allocation15], 1 }
 0x84b   :  { %3813 = vsyncpa [#allocation18], 1 }
 0x84c   :  { %3814 = vsyncpa [#allocation21], 1 }
 0x84d   :  { %3815 = vsyncpa [#allocation4], 1 }

</bundles_post_ra>
